<compile_context>
chip_gen: v7x
topology: tpu7x:2x2x1
jax: 0.10.0
libtpu: 0.0.40
codegen_flags: <defaults>
</compile_context>

<pallas_src>
import functools

import numpy as np
import jax
import jax.numpy as jnp
from jax.experimental import pallas as pl
from jax.experimental.pallas import tpu as pltpu

LANES = 128         # lane width / padded class dim
FC1_OUT = 256
FC2_OUT = 128


# ----------------------------------------------------------------------------
# Fused Pallas kernel: TB images per grid step, everything resident in VMEM.
# ----------------------------------------------------------------------------
def _lenet_kernel(x_ref, w1_ref, b1_ref, w2_ref, b2_ref,
                  wf1_ref, bf1_ref, wf2_ref, bf2_ref, wf3_ref, bf3_ref,
                  o_ref, acc1_ref, acc2_ref, p1_ref, p2_ref):
    f32 = jnp.float32
    TB = o_ref.shape[0]

    # -------- conv1 (5x5 valid): 5 accumulated matmuls into VMEM scratch -----
    # LHS rows = (conv_row, image), K = lane-packed input row (w*cin + ci),
    # N = [even | odd] output columns, each half packed as x'*6 + cout.
    for ky in range(5):
        lhs = x_ref[pl.ds(ky, 24), :, :].reshape(24 * TB, LANES)
        part = jnp.dot(lhs, w1_ref[ky], preferred_element_type=f32)
        if ky == 0:
            acc1_ref[...] = part
        else:
            acc1_ref[...] += part

    c1 = acc1_ref[...]                                           # (24*TB, 256)
    # W-pool = max(even cols, odd cols); bias is per-channel so it commutes.
    cw = jnp.maximum(c1[:, :LANES], c1[:, LANES:]) + b1_ref[...]  # (24*TB, 128)
    # H-pool: rows are ordered (y, b); pair row-slabs 2i / 2i+1 (tile-aligned).
    cw = cw.reshape(12, 2 * TB, LANES)
    p1_ref[...] = jnp.maximum(jnp.maximum(cw[:, :TB, :], cw[:, TB:, :]), 0.0)

    # -------- conv2 (5x5 valid): 5 accumulated matmuls into VMEM scratch -----
    for ky in range(5):
        lhs = p1_ref[pl.ds(ky, 8), :, :].reshape(8 * TB, LANES)
        part = jnp.dot(lhs, w2_ref[ky], preferred_element_type=f32)
        if ky == 0:
            acc2_ref[...] = part
        else:
            acc2_ref[...] += part

    c2 = acc2_ref[...]                                           # (8*TB, 256)
    cw2 = jnp.maximum(c2[:, :LANES], c2[:, LANES:]) + b2_ref[...]
    cw2 = cw2.reshape(4, 2 * TB, LANES)
    p2_ref[...] = jnp.maximum(jnp.maximum(cw2[:, :TB, :], cw2[:, TB:, :]), 0.0)

    # -------- fc1 + relu -> fc2 + relu -> fc3 --------
    # The NCHW flatten permutation and the pooled lane layout are folded into
    # WF1 (4 accumulated (TB,128)@(128,256) matmuls, one per spatial row h).
    a = jnp.dot(p2_ref[0], wf1_ref[0], preferred_element_type=f32)
    for h in range(1, 4):
        a = a + jnp.dot(p2_ref[h], wf1_ref[h], preferred_element_type=f32)
    a = jnp.maximum(a + bf1_ref[...], 0.0)
    a = jnp.maximum(jnp.dot(a, wf2_ref[...], preferred_element_type=f32)
                    + bf2_ref[...], 0.0)
    out = jnp.dot(a, wf3_ref[...], preferred_element_type=f32) + bf3_ref[...]
    o_ref[...] = out.astype(o_ref.dtype)


# ----------------------------------------------------------------------------
# One-time weight re-layout (host-side, hoisted out of the hot path)
# ----------------------------------------------------------------------------
def prepare_params(params):
    f32 = np.float32
    w1 = np.asarray(params["conv1_w"], f32)          # (6, cin, 5, 5)
    w2 = np.asarray(params["conv2_w"], f32)          # (16, 6, 5, 5)
    cin = w1.shape[1]
    nc = np.asarray(params["fc3_w"]).shape[0]
    assert 28 * cin <= LANES, "lane-packed conv1 supports image_channel_size <= 4"
    assert nc <= LANES

    # conv1: per-ky (128, 256) weights; N = [even | odd] output cols, x'*6 + c.
    W1 = np.zeros((5, LANES, 2 * LANES), f32)
    for ky in range(5):
        for kx in range(5):
            tap = w1[:, :, ky, kx].T                  # (cin, 6) = [ci, co]
            for x in range(24):                       # conv1 output column
                par, xq = x % 2, x // 2
                w_in = x + kx                         # packed input column
                W1[ky, w_in * cin:(w_in + 1) * cin,
                   par * LANES + xq * 6: par * LANES + xq * 6 + 6] = tap
    b1p = np.zeros((1, LANES), f32)
    for xq in range(12):
        b1p[0, xq * 6: xq * 6 + 6] = np.asarray(params["conv1_b"], f32)

    # conv2: K = pooled-conv1 lanes (w'*6 + ci); N = [even | odd], x'*16 + co.
    W2 = np.zeros((5, LANES, 2 * LANES), f32)
    for ky in range(5):
        for kx in range(5):
            tap = w2[:, :, ky, kx].T                  # (6, 16) = [ci, co]
            for x in range(8):                        # conv2 output column
                par, xq = x % 2, x // 2
                wcol = x + kx                         # pooled-conv1 column
                W2[ky, wcol * 6: wcol * 6 + 6,
                   par * LANES + xq * 16: par * LANES + xq * 16 + 16] = tap
    b2p = np.zeros((1, LANES), f32)
    for xq in range(4):
        b2p[0, xq * 16: xq * 16 + 16] = np.asarray(params["conv2_b"], f32)

    # fc1: fold the PyTorch NCHW flatten (c*16 + h*4 + w) into the weight.
    fc1_w = np.asarray(params["fc1_w"], f32)          # (256, 256)
    WF1 = np.zeros((4, LANES, FC1_OUT), f32)
    for h in range(4):
        for xq in range(4):
            for co in range(16):
                WF1[h, xq * 16 + co, :] = fc1_w[:, co * 16 + h * 4 + xq]
    bf1 = np.asarray(params["fc1_b"], f32).reshape(1, FC1_OUT)

    WF2 = np.asarray(params["fc2_w"], f32).T          # (256, 128)
    bf2 = np.asarray(params["fc2_b"], f32).reshape(1, FC2_OUT)

    WF3 = np.zeros((FC2_OUT, LANES), f32)
    WF3[:, :nc] = np.asarray(params["fc3_w"], f32).T
    bf3 = np.zeros((1, LANES), f32)
    bf3[0, :nc] = np.asarray(params["fc3_b"], f32)

    hosted = dict(W1=W1, b1=b1p, W2=W2, b2=b2p, WF1=WF1, bf1=bf1,
                  WF2=WF2, bf2=bf2, WF3=WF3, bf3=bf3)
    return {k: jnp.asarray(v) for k, v in hosted.items()}


# ----------------------------------------------------------------------------
# Forward wrapper: one pallas_call for the whole network, TB images per step
# ----------------------------------------------------------------------------
def classifier_forward(x_nchw, p, *, num_classes, tb=8):
    B, cin, H, W = x_nchw.shape
    assert (H, W) == (28, 28), "LeNet head (fc1 = 16*4*4) requires 28x28 inputs"
    assert 28 * cin <= LANES
    assert tb % 8 == 0
    B_pad = ((B + tb - 1) // tb) * tb

    # Pack input rows into lanes: X[h, b, w*cin + ci] = x[b, ci, h, w].
    xp = jnp.transpose(x_nchw.astype(jnp.float32), (2, 0, 3, 1)).reshape(28, B, 28 * cin)
    xp = jnp.pad(xp, ((0, 0), (0, B_pad - B), (0, LANES - 28 * cin)))

    out = pl.pallas_call(
        _lenet_kernel,
        out_shape=jax.ShapeDtypeStruct((B_pad, LANES), jnp.float32),
        grid=(B_pad // tb,),
        in_specs=[
            pl.BlockSpec((28, tb, LANES), lambda b: (0, b, 0)),          # packed input
            pl.BlockSpec((5, LANES, 2 * LANES), lambda b: (0, 0, 0)),    # conv1 taps
            pl.BlockSpec((1, LANES), lambda b: (0, 0)),                  # conv1 bias
            pl.BlockSpec((5, LANES, 2 * LANES), lambda b: (0, 0, 0)),    # conv2 taps
            pl.BlockSpec((1, LANES), lambda b: (0, 0)),                  # conv2 bias
            pl.BlockSpec((4, LANES, FC1_OUT), lambda b: (0, 0, 0)),      # fc1 (per h)
            pl.BlockSpec((1, FC1_OUT), lambda b: (0, 0)),
            pl.BlockSpec((FC1_OUT, FC2_OUT), lambda b: (0, 0)),          # fc2
            pl.BlockSpec((1, FC2_OUT), lambda b: (0, 0)),
            pl.BlockSpec((FC2_OUT, LANES), lambda b: (0, 0)),            # fc3
            pl.BlockSpec((1, LANES), lambda b: (0, 0)),
        ],
        out_specs=pl.BlockSpec((tb, LANES), lambda b: (b, 0)),
        scratch_shapes=[
            pltpu.VMEM((24 * tb, 2 * LANES), jnp.float32),   # conv1 even|odd accumulator
            pltpu.VMEM((8 * tb, 2 * LANES), jnp.float32),    # conv2 even|odd accumulator
            pltpu.VMEM((12, tb, LANES), jnp.float32),        # pooled conv1 activations
            pltpu.VMEM((4, tb, LANES), jnp.float32),         # pooled conv2 activations
        ],
        compiler_params=pltpu.CompilerParams(
            dimension_semantics=("parallel",),
            vmem_limit_bytes=32 * 1024 * 1024,
        ),
    )(xp, p["W1"], p["b1"], p["W2"], p["b2"],
      p["WF1"], p["bf1"], p["WF2"], p["bf2"], p["WF3"], p["bf3"])

    return out[:B, :num_classes]


# ----------------------------------------------------------------------------
# Pure-JAX reference (sanity check)
# ----------------------------------------------------------------------------
def reference_forward(x, params):
    dn = ("NCHW", "OIHW", "NCHW")
    hp = jax.lax.Precision.HIGHEST
    y = jax.lax.conv_general_dilated(x, params["conv1_w"], (1, 1), "VALID",
                                     dimension_numbers=dn, precision=hp)
    y = y + params["conv1_b"].reshape(1, -1, 1, 1)
    y = jax.lax.reduce_window(y, -jnp.inf, jax.lax.max, (1, 1, 2, 2), (1, 1, 2, 2), "VALID")
    y = jnp.maximum(y, 0.0)
    y = jax.lax.conv_general_dilated(y, params["conv2_w"], (1, 1), "VALID",
                                     dimension_numbers=dn, precision=hp)
    y = y + params["conv2_b"].reshape(1, -1, 1, 1)
    y = jax.lax.reduce_window(y, -jnp.inf, jax.lax.max, (1, 1, 2, 2), (1, 1, 2, 2), "VALID")
    y = jnp.maximum(y, 0.0)
    y = y.reshape(y.shape[0], -1)
    y = jnp.maximum(jnp.dot(y, params["fc1_w"].T, precision=hp) + params["fc1_b"], 0.0)
    y = jnp.maximum(jnp.dot(y, params["fc2_w"].T, precision=hp) + params["fc2_b"], 0.0)
    y = jnp.dot(y, params["fc3_w"].T, precision=hp) + params["fc3_b"]
    return y


# ----------------------------------------------------------------------------
# Deterministic parameter init + driver
# ----------------------------------------------------------------------------
def init_params(key, image_channel_size, num_classes):
    ks = jax.random.split(key, 10)

    def u(k, shape, fan_in):
        bound = 1.0 / jnp.sqrt(float(fan_in))
        return jax.random.uniform(k, shape, jnp.float32, -bound, bound)

    return {
        "conv1_w": u(ks[0], (6, image_channel_size, 5, 5), image_channel_size * 25),
        "conv1_b": u(ks[1], (6,), image_channel_size * 25),
        "conv2_w": u(ks[2], (16, 6, 5, 5), 6 * 25),
        "conv2_b": u(ks[3], (16,), 6 * 25),
        "fc1_w": u(ks[4], (256, 16 * 4 * 4), 16 * 4 * 4),
        "fc1_b": u(ks[5], (256,), 16 * 4 * 4),
        "fc2_w": u(ks[6], (128, 256), 256),
        "fc2_b": u(ks[7], (128,), 256),
        "fc3_w": u(ks[8], (num_classes, 128), 128),
        "fc3_b": u(ks[9], (num_classes,), 128),
    }


if __name__ == "__main__":
    B, C_IMG, H, W = 2, 1, 28, 28   # 28x28 required so conv/pool stack yields 16*4*4 for fc1
    NUM_CLASSES = 10

    key = jax.random.PRNGKey(0)
    k_x, k_p = jax.random.split(key)
    x = jax.random.normal(k_x, (B, C_IMG, H, W), dtype=jnp.float32)
    params = init_params(k_p, C_IMG, NUM_CLASSES)

    prepped = prepare_params(params)   # one-time host-side weight re-layout
    fwd = jax.jit(functools.partial(classifier_forward, num_classes=NUM_CLASSES))

    out = jax.block_until_ready(fwd(x, prepped))
    assert out.shape == (B, NUM_CLASSES), out.shape

    ref = jax.block_until_ready(reference_forward(x, params))
    assert jnp.allclose(out, ref, atol=2e-3, rtol=2e-3), (
        "mismatch vs reference", float(jnp.max(jnp.abs(out - ref))))

    print("KERNEL_OK")
</pallas_src>

<mosaic_0001>
module attributes {stable_mosaic.version = 11 : i64} {
  func.func @_lenet_kernel(%arg0: i32, %arg1: memref<28x8x128xf32, #tpu.memory_space<vmem>>, %arg2: memref<5x128x256xf32, #tpu.memory_space<vmem>>, %arg3: memref<1x128xf32, #tpu.memory_space<vmem>>, %arg4: memref<5x128x256xf32, #tpu.memory_space<vmem>>, %arg5: memref<1x128xf32, #tpu.memory_space<vmem>>, %arg6: memref<4x128x256xf32, #tpu.memory_space<vmem>>, %arg7: memref<1x256xf32, #tpu.memory_space<vmem>>, %arg8: memref<256x128xf32, #tpu.memory_space<vmem>>, %arg9: memref<1x128xf32, #tpu.memory_space<vmem>>, %arg10: memref<128x128xf32, #tpu.memory_space<vmem>>, %arg11: memref<1x128xf32, #tpu.memory_space<vmem>>, %arg12: memref<8x128xf32, #tpu.memory_space<vmem>>, %arg13: memref<192x256xf32, #tpu.memory_space<vmem>>, %arg14: memref<64x256xf32, #tpu.memory_space<vmem>>, %arg15: memref<12x8x128xf32, #tpu.memory_space<vmem>>, %arg16: memref<4x8x128xf32, #tpu.memory_space<vmem>>) attributes {dimension_semantics = [#tpu.dimension_semantics<parallel>], iteration_bounds = array<i64: 1>, scalar_prefetch = 0 : i64, scratch_operands = 4 : i64, tpu.core_type = #tpu.core_type<tc>, window_params = [{transform_indices = @transform_0, window_bounds = array<i64: 28, 8, 128>}, {pipeline_mode = #tpu.pipeline_mode<synchronous>, transform_indices = @transform_1, window_bounds = array<i64: 5, 128, 256>}, {pipeline_mode = #tpu.pipeline_mode<synchronous>, transform_indices = @transform_2, window_bounds = array<i64: 1, 128>}, {pipeline_mode = #tpu.pipeline_mode<synchronous>, transform_indices = @transform_3, window_bounds = array<i64: 5, 128, 256>}, {pipeline_mode = #tpu.pipeline_mode<synchronous>, transform_indices = @transform_4, window_bounds = array<i64: 1, 128>}, {pipeline_mode = #tpu.pipeline_mode<synchronous>, transform_indices = @transform_5, window_bounds = array<i64: 4, 128, 256>}, {pipeline_mode = #tpu.pipeline_mode<synchronous>, transform_indices = @transform_6, window_bounds = array<i64: 1, 256>}, {pipeline_mode = #tpu.pipeline_mode<synchronous>, transform_indices = @transform_7, window_bounds = array<i64: 256, 128>}, {pipeline_mode = #tpu.pipeline_mode<synchronous>, transform_indices = @transform_8, window_bounds = array<i64: 1, 128>}, {pipeline_mode = #tpu.pipeline_mode<synchronous>, transform_indices = @transform_9, window_bounds = array<i64: 128, 128>}, {pipeline_mode = #tpu.pipeline_mode<synchronous>, transform_indices = @transform_10, window_bounds = array<i64: 1, 128>}, {transform_indices = @transform_11, window_bounds = array<i64: 8, 128>}]} {
    %c0 = arith.constant 0 : index
    %c0_0 = arith.constant 0 : index
    %c0_1 = arith.constant 0 : index
    %0 = vector.load %arg1[%c0, %c0_0, %c0_1] : memref<28x8x128xf32, #tpu.memory_space<vmem>>, vector<24x8x128xf32>
    %1 = vector.shape_cast %0 : vector<24x8x128xf32> to vector<192x128xf32>
    %c0_2 = arith.constant 0 : index
    %c0_3 = arith.constant 0 : index
    %c0_4 = arith.constant 0 : index
    %2 = vector.load %arg2[%c0_2, %c0_3, %c0_4] : memref<5x128x256xf32, #tpu.memory_space<vmem>>, vector<1x128x256xf32>
    %3 = vector.shape_cast %2 : vector<1x128x256xf32> to vector<128x256xf32>
    %cst = arith.constant dense<0.000000e+00> : vector<192x256xf32>
    %4 = tpu.matmul %1, %3, %cst {dimension_numbers = #tpu.dot_dimension_numbers<[1], [0], [0], [1], [0, 0, 1, 1], [], []>} : vector<192x128xf32>, vector<128x256xf32>, vector<192x256xf32> -> vector<192x256xf32>
    %c0_5 = arith.constant 0 : index
    %c0_6 = arith.constant 0 : index
    %5 = vector.load %arg13[%c0_5, %c0_6] : memref<192x256xf32, #tpu.memory_space<vmem>>, vector<192x256xf32>
    tpu.vector_store %arg13[%c0_5, %c0_6], %4 {strides = array<i32>} : memref<192x256xf32, #tpu.memory_space<vmem>>, vector<192x256xf32>,
    %c1 = arith.constant 1 : index
    %c0_7 = arith.constant 0 : index
    %c0_8 = arith.constant 0 : index
    %6 = vector.load %arg1[%c1, %c0_7, %c0_8] : memref<28x8x128xf32, #tpu.memory_space<vmem>>, vector<24x8x128xf32>
    %7 = vector.shape_cast %6 : vector<24x8x128xf32> to vector<192x128xf32>
    %c1_9 = arith.constant 1 : index
    %c0_10 = arith.constant 0 : index
    %c0_11 = arith.constant 0 : index
    %8 = vector.load %arg2[%c1_9, %c0_10, %c0_11] : memref<5x128x256xf32, #tpu.memory_space<vmem>>, vector<1x128x256xf32>
    %9 = vector.shape_cast %8 : vector<1x128x256xf32> to vector<128x256xf32>
    %cst_12 = arith.constant dense<0.000000e+00> : vector<192x256xf32>
    %10 = tpu.matmul %7, %9, %cst_12 {dimension_numbers = #tpu.dot_dimension_numbers<[1], [0], [0], [1], [0, 0, 1, 1], [], []>} : vector<192x128xf32>, vector<128x256xf32>, vector<192x256xf32> -> vector<192x256xf32>
    %c0_13 = arith.constant 0 : index
    %c0_14 = arith.constant 0 : index
    %11 = vector.load %arg13[%c0_13, %c0_14] : memref<192x256xf32, #tpu.memory_space<vmem>>, vector<192x256xf32>
    %12 = arith.addf %11, %10 : vector<192x256xf32>
    %c0_15 = arith.constant 0 : index
    %c0_16 = arith.constant 0 : index
    %13 = vector.load %arg13[%c0_15, %c0_16] : memref<192x256xf32, #tpu.memory_space<vmem>>, vector<192x256xf32>
    tpu.vector_store %arg13[%c0_15, %c0_16], %12 {strides = array<i32>} : memref<192x256xf32, #tpu.memory_space<vmem>>, vector<192x256xf32>,
    %c2 = arith.constant 2 : index
    %c0_17 = arith.constant 0 : index
    %c0_18 = arith.constant 0 : index
    %14 = vector.load %arg1[%c2, %c0_17, %c0_18] : memref<28x8x128xf32, #tpu.memory_space<vmem>>, vector<24x8x128xf32>
    %15 = vector.shape_cast %14 : vector<24x8x128xf32> to vector<192x128xf32>
    %c2_19 = arith.constant 2 : index
    %c0_20 = arith.constant 0 : index
    %c0_21 = arith.constant 0 : index
    %16 = vector.load %arg2[%c2_19, %c0_20, %c0_21] : memref<5x128x256xf32, #tpu.memory_space<vmem>>, vector<1x128x256xf32>
    %17 = vector.shape_cast %16 : vector<1x128x256xf32> to vector<128x256xf32>
    %cst_22 = arith.constant dense<0.000000e+00> : vector<192x256xf32>
    %18 = tpu.matmul %15, %17, %cst_22 {dimension_numbers = #tpu.dot_dimension_numbers<[1], [0], [0], [1], [0, 0, 1, 1], [], []>} : vector<192x128xf32>, vector<128x256xf32>, vector<192x256xf32> -> vector<192x256xf32>
    %c0_23 = arith.constant 0 : index
    %c0_24 = arith.constant 0 : index
    %19 = vector.load %arg13[%c0_23, %c0_24] : memref<192x256xf32, #tpu.memory_space<vmem>>, vector<192x256xf32>
    %20 = arith.addf %19, %18 : vector<192x256xf32>
    %c0_25 = arith.constant 0 : index
    %c0_26 = arith.constant 0 : index
    %21 = vector.load %arg13[%c0_25, %c0_26] : memref<192x256xf32, #tpu.memory_space<vmem>>, vector<192x256xf32>
    tpu.vector_store %arg13[%c0_25, %c0_26], %20 {strides = array<i32>} : memref<192x256xf32, #tpu.memory_space<vmem>>, vector<192x256xf32>,
    %c3 = arith.constant 3 : index
    %c0_27 = arith.constant 0 : index
    %c0_28 = arith.constant 0 : index
    %22 = vector.load %arg1[%c3, %c0_27, %c0_28] : memref<28x8x128xf32, #tpu.memory_space<vmem>>, vector<24x8x128xf32>
    %23 = vector.shape_cast %22 : vector<24x8x128xf32> to vector<192x128xf32>
    %c3_29 = arith.constant 3 : index
    %c0_30 = arith.constant 0 : index
    %c0_31 = arith.constant 0 : index
    %24 = vector.load %arg2[%c3_29, %c0_30, %c0_31] : memref<5x128x256xf32, #tpu.memory_space<vmem>>, vector<1x128x256xf32>
    %25 = vector.shape_cast %24 : vector<1x128x256xf32> to vector<128x256xf32>
    %cst_32 = arith.constant dense<0.000000e+00> : vector<192x256xf32>
    %26 = tpu.matmul %23, %25, %cst_32 {dimension_numbers = #tpu.dot_dimension_numbers<[1], [0], [0], [1], [0, 0, 1, 1], [], []>} : vector<192x128xf32>, vector<128x256xf32>, vector<192x256xf32> -> vector<192x256xf32>
    %c0_33 = arith.constant 0 : index
    %c0_34 = arith.constant 0 : index
    %27 = vector.load %arg13[%c0_33, %c0_34] : memref<192x256xf32, #tpu.memory_space<vmem>>, vector<192x256xf32>
    %28 = arith.addf %27, %26 : vector<192x256xf32>
    %c0_35 = arith.constant 0 : index
    %c0_36 = arith.constant 0 : index
    %29 = vector.load %arg13[%c0_35, %c0_36] : memref<192x256xf32, #tpu.memory_space<vmem>>, vector<192x256xf32>
    tpu.vector_store %arg13[%c0_35, %c0_36], %28 {strides = array<i32>} : memref<192x256xf32, #tpu.memory_space<vmem>>, vector<192x256xf32>,
    %c4 = arith.constant 4 : index
    %c0_37 = arith.constant 0 : index
    %c0_38 = arith.constant 0 : index
    %30 = vector.load %arg1[%c4, %c0_37, %c0_38] : memref<28x8x128xf32, #tpu.memory_space<vmem>>, vector<24x8x128xf32>
    %31 = vector.shape_cast %30 : vector<24x8x128xf32> to vector<192x128xf32>
    %c4_39 = arith.constant 4 : index
    %c0_40 = arith.constant 0 : index
    %c0_41 = arith.constant 0 : index
    %32 = vector.load %arg2[%c4_39, %c0_40, %c0_41] : memref<5x128x256xf32, #tpu.memory_space<vmem>>, vector<1x128x256xf32>
    %33 = vector.shape_cast %32 : vector<1x128x256xf32> to vector<128x256xf32>
    %cst_42 = arith.constant dense<0.000000e+00> : vector<192x256xf32>
    %34 = tpu.matmul %31, %33, %cst_42 {dimension_numbers = #tpu.dot_dimension_numbers<[1], [0], [0], [1], [0, 0, 1, 1], [], []>} : vector<192x128xf32>, vector<128x256xf32>, vector<192x256xf32> -> vector<192x256xf32>
    %c0_43 = arith.constant 0 : index
    %c0_44 = arith.constant 0 : index
    %35 = vector.load %arg13[%c0_43, %c0_44] : memref<192x256xf32, #tpu.memory_space<vmem>>, vector<192x256xf32>
    %36 = arith.addf %35, %34 : vector<192x256xf32>
    %c0_45 = arith.constant 0 : index
    %c0_46 = arith.constant 0 : index
    %37 = vector.load %arg13[%c0_45, %c0_46] : memref<192x256xf32, #tpu.memory_space<vmem>>, vector<192x256xf32>
    tpu.vector_store %arg13[%c0_45, %c0_46], %36 {strides = array<i32>} : memref<192x256xf32, #tpu.memory_space<vmem>>, vector<192x256xf32>,
    %c0_47 = arith.constant 0 : index
    %c0_48 = arith.constant 0 : index
    %38 = vector.load %arg13[%c0_47, %c0_48] : memref<192x256xf32, #tpu.memory_space<vmem>>, vector<192x256xf32>
    %39 = vector.extract_strided_slice %38 {offsets = [0, 0], sizes = [192, 128], strides = [1, 1]} : vector<192x256xf32> to vector<192x128xf32>
    %40 = vector.extract_strided_slice %38 {offsets = [0, 128], sizes = [192, 128], strides = [1, 1]} : vector<192x256xf32> to vector<192x128xf32>
    %41 = arith.maximumf %39, %40 : vector<192x128xf32>
    %c0_49 = arith.constant 0 : index
    %c0_50 = arith.constant 0 : index
    %42 = vector.load %arg3[%c0_49, %c0_50] : memref<1x128xf32, #tpu.memory_space<vmem>>, vector<1x128xf32>
    %43 = vector.broadcast %42 : vector<1x128xf32> to vector<192x128xf32>
    %44 = arith.addf %41, %43 : vector<192x128xf32>
    %45 = vector.shape_cast %44 : vector<192x128xf32> to vector<12x16x128xf32>
    %46 = vector.extract_strided_slice %45 {offsets = [0, 0, 0], sizes = [12, 8, 128], strides = [1, 1, 1]} : vector<12x16x128xf32> to vector<12x8x128xf32>
    %47 = vector.extract_strided_slice %45 {offsets = [0, 8, 0], sizes = [12, 8, 128], strides = [1, 1, 1]} : vector<12x16x128xf32> to vector<12x8x128xf32>
    %48 = arith.maximumf %46, %47 : vector<12x8x128xf32>
    %cst_51 = arith.constant 0.000000e+00 : f32
    %49 = vector.broadcast %cst_51 : f32 to vector<12x8x128xf32>
    %50 = arith.maximumf %48, %49 : vector<12x8x128xf32>
    %c0_52 = arith.constant 0 : index
    %c0_53 = arith.constant 0 : index
    %c0_54 = arith.constant 0 : index
    %51 = vector.load %arg15[%c0_52, %c0_53, %c0_54] : memref<12x8x128xf32, #tpu.memory_space<vmem>>, vector<12x8x128xf32>
    tpu.vector_store %arg15[%c0_52, %c0_53, %c0_54], %50 {strides = array<i32>} : memref<12x8x128xf32, #tpu.memory_space<vmem>>, vector<12x8x128xf32>,
    %c0_55 = arith.constant 0 : index
    %c0_56 = arith.constant 0 : index
    %c0_57 = arith.constant 0 : index
    %52 = vector.load %arg15[%c0_55, %c0_56, %c0_57] : memref<12x8x128xf32, #tpu.memory_space<vmem>>, vector<8x8x128xf32>
    %53 = vector.shape_cast %52 : vector<8x8x128xf32> to vector<64x128xf32>
    %c0_58 = arith.constant 0 : index
    %c0_59 = arith.constant 0 : index
    %c0_60 = arith.constant 0 : index
    %54 = vector.load %arg4[%c0_58, %c0_59, %c0_60] : memref<5x128x256xf32, #tpu.memory_space<vmem>>, vector<1x128x256xf32>
    %55 = vector.shape_cast %54 : vector<1x128x256xf32> to vector<128x256xf32>
    %cst_61 = arith.constant dense<0.000000e+00> : vector<64x256xf32>
    %56 = tpu.matmul %53, %55, %cst_61 {dimension_numbers = #tpu.dot_dimension_numbers<[1], [0], [0], [1], [0, 0, 1, 1], [], []>} : vector<64x128xf32>, vector<128x256xf32>, vector<64x256xf32> -> vector<64x256xf32>
    %c0_62 = arith.constant 0 : index
    %c0_63 = arith.constant 0 : index
    %57 = vector.load %arg14[%c0_62, %c0_63] : memref<64x256xf32, #tpu.memory_space<vmem>>, vector<64x256xf32>
    tpu.vector_store %arg14[%c0_62, %c0_63], %56 {strides = array<i32>} : memref<64x256xf32, #tpu.memory_space<vmem>>, vector<64x256xf32>,
    %c1_64 = arith.constant 1 : index
    %c0_65 = arith.constant 0 : index
    %c0_66 = arith.constant 0 : index
    %58 = vector.load %arg15[%c1_64, %c0_65, %c0_66] : memref<12x8x128xf32, #tpu.memory_space<vmem>>, vector<8x8x128xf32>
    %59 = vector.shape_cast %58 : vector<8x8x128xf32> to vector<64x128xf32>
    %c1_67 = arith.constant 1 : index
    %c0_68 = arith.constant 0 : index
    %c0_69 = arith.constant 0 : index
    %60 = vector.load %arg4[%c1_67, %c0_68, %c0_69] : memref<5x128x256xf32, #tpu.memory_space<vmem>>, vector<1x128x256xf32>
    %61 = vector.shape_cast %60 : vector<1x128x256xf32> to vector<128x256xf32>
    %cst_70 = arith.constant dense<0.000000e+00> : vector<64x256xf32>
    %62 = tpu.matmul %59, %61, %cst_70 {dimension_numbers = #tpu.dot_dimension_numbers<[1], [0], [0], [1], [0, 0, 1, 1], [], []>} : vector<64x128xf32>, vector<128x256xf32>, vector<64x256xf32> -> vector<64x256xf32>
    %c0_71 = arith.constant 0 : index
    %c0_72 = arith.constant 0 : index
    %63 = vector.load %arg14[%c0_71, %c0_72] : memref<64x256xf32, #tpu.memory_space<vmem>>, vector<64x256xf32>
    %64 = arith.addf %63, %62 : vector<64x256xf32>
    %c0_73 = arith.constant 0 : index
    %c0_74 = arith.constant 0 : index
    %65 = vector.load %arg14[%c0_73, %c0_74] : memref<64x256xf32, #tpu.memory_space<vmem>>, vector<64x256xf32>
    tpu.vector_store %arg14[%c0_73, %c0_74], %64 {strides = array<i32>} : memref<64x256xf32, #tpu.memory_space<vmem>>, vector<64x256xf32>,
    %c2_75 = arith.constant 2 : index
    %c0_76 = arith.constant 0 : index
    %c0_77 = arith.constant 0 : index
    %66 = vector.load %arg15[%c2_75, %c0_76, %c0_77] : memref<12x8x128xf32, #tpu.memory_space<vmem>>, vector<8x8x128xf32>
    %67 = vector.shape_cast %66 : vector<8x8x128xf32> to vector<64x128xf32>
    %c2_78 = arith.constant 2 : index
    %c0_79 = arith.constant 0 : index
    %c0_80 = arith.constant 0 : index
    %68 = vector.load %arg4[%c2_78, %c0_79, %c0_80] : memref<5x128x256xf32, #tpu.memory_space<vmem>>, vector<1x128x256xf32>
    %69 = vector.shape_cast %68 : vector<1x128x256xf32> to vector<128x256xf32>
    %cst_81 = arith.constant dense<0.000000e+00> : vector<64x256xf32>
    %70 = tpu.matmul %67, %69, %cst_81 {dimension_numbers = #tpu.dot_dimension_numbers<[1], [0], [0], [1], [0, 0, 1, 1], [], []>} : vector<64x128xf32>, vector<128x256xf32>, vector<64x256xf32> -> vector<64x256xf32>
    %c0_82 = arith.constant 0 : index
    %c0_83 = arith.constant 0 : index
    %71 = vector.load %arg14[%c0_82, %c0_83] : memref<64x256xf32, #tpu.memory_space<vmem>>, vector<64x256xf32>
    %72 = arith.addf %71, %70 : vector<64x256xf32>
    %c0_84 = arith.constant 0 : index
    %c0_85 = arith.constant 0 : index
    %73 = vector.load %arg14[%c0_84, %c0_85] : memref<64x256xf32, #tpu.memory_space<vmem>>, vector<64x256xf32>
    tpu.vector_store %arg14[%c0_84, %c0_85], %72 {strides = array<i32>} : memref<64x256xf32, #tpu.memory_space<vmem>>, vector<64x256xf32>,
    %c3_86 = arith.constant 3 : index
    %c0_87 = arith.constant 0 : index
    %c0_88 = arith.constant 0 : index
    %74 = vector.load %arg15[%c3_86, %c0_87, %c0_88] : memref<12x8x128xf32, #tpu.memory_space<vmem>>, vector<8x8x128xf32>
    %75 = vector.shape_cast %74 : vector<8x8x128xf32> to vector<64x128xf32>
    %c3_89 = arith.constant 3 : index
    %c0_90 = arith.constant 0 : index
    %c0_91 = arith.constant 0 : index
    %76 = vector.load %arg4[%c3_89, %c0_90, %c0_91] : memref<5x128x256xf32, #tpu.memory_space<vmem>>, vector<1x128x256xf32>
    %77 = vector.shape_cast %76 : vector<1x128x256xf32> to vector<128x256xf32>
    %cst_92 = arith.constant dense<0.000000e+00> : vector<64x256xf32>
    %78 = tpu.matmul %75, %77, %cst_92 {dimension_numbers = #tpu.dot_dimension_numbers<[1], [0], [0], [1], [0, 0, 1, 1], [], []>} : vector<64x128xf32>, vector<128x256xf32>, vector<64x256xf32> -> vector<64x256xf32>
    %c0_93 = arith.constant 0 : index
    %c0_94 = arith.constant 0 : index
    %79 = vector.load %arg14[%c0_93, %c0_94] : memref<64x256xf32, #tpu.memory_space<vmem>>, vector<64x256xf32>
    %80 = arith.addf %79, %78 : vector<64x256xf32>
    %c0_95 = arith.constant 0 : index
    %c0_96 = arith.constant 0 : index
    %81 = vector.load %arg14[%c0_95, %c0_96] : memref<64x256xf32, #tpu.memory_space<vmem>>, vector<64x256xf32>
    tpu.vector_store %arg14[%c0_95, %c0_96], %80 {strides = array<i32>} : memref<64x256xf32, #tpu.memory_space<vmem>>, vector<64x256xf32>,
    %c4_97 = arith.constant 4 : index
    %c0_98 = arith.constant 0 : index
    %c0_99 = arith.constant 0 : index
    %82 = vector.load %arg15[%c4_97, %c0_98, %c0_99] : memref<12x8x128xf32, #tpu.memory_space<vmem>>, vector<8x8x128xf32>
    %83 = vector.shape_cast %82 : vector<8x8x128xf32> to vector<64x128xf32>
    %c4_100 = arith.constant 4 : index
    %c0_101 = arith.constant 0 : index
    %c0_102 = arith.constant 0 : index
    %84 = vector.load %arg4[%c4_100, %c0_101, %c0_102] : memref<5x128x256xf32, #tpu.memory_space<vmem>>, vector<1x128x256xf32>
    %85 = vector.shape_cast %84 : vector<1x128x256xf32> to vector<128x256xf32>
    %cst_103 = arith.constant dense<0.000000e+00> : vector<64x256xf32>
    %86 = tpu.matmul %83, %85, %cst_103 {dimension_numbers = #tpu.dot_dimension_numbers<[1], [0], [0], [1], [0, 0, 1, 1], [], []>} : vector<64x128xf32>, vector<128x256xf32>, vector<64x256xf32> -> vector<64x256xf32>
    %c0_104 = arith.constant 0 : index
    %c0_105 = arith.constant 0 : index
    %87 = vector.load %arg14[%c0_104, %c0_105] : memref<64x256xf32, #tpu.memory_space<vmem>>, vector<64x256xf32>
    %88 = arith.addf %87, %86 : vector<64x256xf32>
    %c0_106 = arith.constant 0 : index
    %c0_107 = arith.constant 0 : index
    %89 = vector.load %arg14[%c0_106, %c0_107] : memref<64x256xf32, #tpu.memory_space<vmem>>, vector<64x256xf32>
    tpu.vector_store %arg14[%c0_106, %c0_107], %88 {strides = array<i32>} : memref<64x256xf32, #tpu.memory_space<vmem>>, vector<64x256xf32>,
    %c0_108 = arith.constant 0 : index
    %c0_109 = arith.constant 0 : index
    %90 = vector.load %arg14[%c0_108, %c0_109] : memref<64x256xf32, #tpu.memory_space<vmem>>, vector<64x256xf32>
    %91 = vector.extract_strided_slice %90 {offsets = [0, 0], sizes = [64, 128], strides = [1, 1]} : vector<64x256xf32> to vector<64x128xf32>
    %92 = vector.extract_strided_slice %90 {offsets = [0, 128], sizes = [64, 128], strides = [1, 1]} : vector<64x256xf32> to vector<64x128xf32>
    %93 = arith.maximumf %91, %92 : vector<64x128xf32>
    %c0_110 = arith.constant 0 : index
    %c0_111 = arith.constant 0 : index
    %94 = vector.load %arg5[%c0_110, %c0_111] : memref<1x128xf32, #tpu.memory_space<vmem>>, vector<1x128xf32>
    %95 = vector.broadcast %94 : vector<1x128xf32> to vector<64x128xf32>
    %96 = arith.addf %93, %95 : vector<64x128xf32>
    %97 = vector.shape_cast %96 : vector<64x128xf32> to vector<4x16x128xf32>
    %98 = vector.extract_strided_slice %97 {offsets = [0, 0, 0], sizes = [4, 8, 128], strides = [1, 1, 1]} : vector<4x16x128xf32> to vector<4x8x128xf32>
    %99 = vector.extract_strided_slice %97 {offsets = [0, 8, 0], sizes = [4, 8, 128], strides = [1, 1, 1]} : vector<4x16x128xf32> to vector<4x8x128xf32>
    %100 = arith.maximumf %98, %99 : vector<4x8x128xf32>
    %cst_112 = arith.constant 0.000000e+00 : f32
    %101 = vector.broadcast %cst_112 : f32 to vector<4x8x128xf32>
    %102 = arith.maximumf %100, %101 : vector<4x8x128xf32>
    %c0_113 = arith.constant 0 : index
    %c0_114 = arith.constant 0 : index
    %c0_115 = arith.constant 0 : index
    %103 = vector.load %arg16[%c0_113, %c0_114, %c0_115] : memref<4x8x128xf32, #tpu.memory_space<vmem>>, vector<4x8x128xf32>
    tpu.vector_store %arg16[%c0_113, %c0_114, %c0_115], %102 {strides = array<i32>} : memref<4x8x128xf32, #tpu.memory_space<vmem>>, vector<4x8x128xf32>,
    %c0_116 = arith.constant 0 : index
    %c0_117 = arith.constant 0 : index
    %c0_118 = arith.constant 0 : index
    %104 = vector.load %arg16[%c0_116, %c0_117, %c0_118] : memref<4x8x128xf32, #tpu.memory_space<vmem>>, vector<1x8x128xf32>
    %105 = vector.shape_cast %104 : vector<1x8x128xf32> to vector<8x128xf32>
    %c0_119 = arith.constant 0 : index
    %c0_120 = arith.constant 0 : index
    %c0_121 = arith.constant 0 : index
    %106 = vector.load %arg6[%c0_119, %c0_120, %c0_121] : memref<4x128x256xf32, #tpu.memory_space<vmem>>, vector<1x128x256xf32>
    %107 = vector.shape_cast %106 : vector<1x128x256xf32> to vector<128x256xf32>
    %cst_122 = arith.constant dense<0.000000e+00> : vector<8x256xf32>
    %108 = tpu.matmul %105, %107, %cst_122 {dimension_numbers = #tpu.dot_dimension_numbers<[1], [0], [0], [1], [0, 0, 1, 1], [], []>} : vector<8x128xf32>, vector<128x256xf32>, vector<8x256xf32> -> vector<8x256xf32>
    %c1_123 = arith.constant 1 : index
    %c0_124 = arith.constant 0 : index
    %c0_125 = arith.constant 0 : index
    %109 = vector.load %arg16[%c1_123, %c0_124, %c0_125] : memref<4x8x128xf32, #tpu.memory_space<vmem>>, vector<1x8x128xf32>
    %110 = vector.shape_cast %109 : vector<1x8x128xf32> to vector<8x128xf32>
    %c1_126 = arith.constant 1 : index
    %c0_127 = arith.constant 0 : index
    %c0_128 = arith.constant 0 : index
    %111 = vector.load %arg6[%c1_126, %c0_127, %c0_128] : memref<4x128x256xf32, #tpu.memory_space<vmem>>, vector<1x128x256xf32>
    %112 = vector.shape_cast %111 : vector<1x128x256xf32> to vector<128x256xf32>
    %cst_129 = arith.constant dense<0.000000e+00> : vector<8x256xf32>
    %113 = tpu.matmul %110, %112, %cst_129 {dimension_numbers = #tpu.dot_dimension_numbers<[1], [0], [0], [1], [0, 0, 1, 1], [], []>} : vector<8x128xf32>, vector<128x256xf32>, vector<8x256xf32> -> vector<8x256xf32>
    %114 = arith.addf %108, %113 : vector<8x256xf32>
    %c2_130 = arith.constant 2 : index
    %c0_131 = arith.constant 0 : index
    %c0_132 = arith.constant 0 : index
    %115 = vector.load %arg16[%c2_130, %c0_131, %c0_132] : memref<4x8x128xf32, #tpu.memory_space<vmem>>, vector<1x8x128xf32>
    %116 = vector.shape_cast %115 : vector<1x8x128xf32> to vector<8x128xf32>
    %c2_133 = arith.constant 2 : index
    %c0_134 = arith.constant 0 : index
    %c0_135 = arith.constant 0 : index
    %117 = vector.load %arg6[%c2_133, %c0_134, %c0_135] : memref<4x128x256xf32, #tpu.memory_space<vmem>>, vector<1x128x256xf32>
    %118 = vector.shape_cast %117 : vector<1x128x256xf32> to vector<128x256xf32>
    %cst_136 = arith.constant dense<0.000000e+00> : vector<8x256xf32>
    %119 = tpu.matmul %116, %118, %cst_136 {dimension_numbers = #tpu.dot_dimension_numbers<[1], [0], [0], [1], [0, 0, 1, 1], [], []>} : vector<8x128xf32>, vector<128x256xf32>, vector<8x256xf32> -> vector<8x256xf32>
    %120 = arith.addf %114, %119 : vector<8x256xf32>
    %c3_137 = arith.constant 3 : index
    %c0_138 = arith.constant 0 : index
    %c0_139 = arith.constant 0 : index
    %121 = vector.load %arg16[%c3_137, %c0_138, %c0_139] : memref<4x8x128xf32, #tpu.memory_space<vmem>>, vector<1x8x128xf32>
    %122 = vector.shape_cast %121 : vector<1x8x128xf32> to vector<8x128xf32>
    %c3_140 = arith.constant 3 : index
    %c0_141 = arith.constant 0 : index
    %c0_142 = arith.constant 0 : index
    %123 = vector.load %arg6[%c3_140, %c0_141, %c0_142] : memref<4x128x256xf32, #tpu.memory_space<vmem>>, vector<1x128x256xf32>
    %124 = vector.shape_cast %123 : vector<1x128x256xf32> to vector<128x256xf32>
    %cst_143 = arith.constant dense<0.000000e+00> : vector<8x256xf32>
    %125 = tpu.matmul %122, %124, %cst_143 {dimension_numbers = #tpu.dot_dimension_numbers<[1], [0], [0], [1], [0, 0, 1, 1], [], []>} : vector<8x128xf32>, vector<128x256xf32>, vector<8x256xf32> -> vector<8x256xf32>
    %126 = arith.addf %120, %125 : vector<8x256xf32>
    %c0_144 = arith.constant 0 : index
    %c0_145 = arith.constant 0 : index
    %127 = vector.load %arg7[%c0_144, %c0_145] : memref<1x256xf32, #tpu.memory_space<vmem>>, vector<1x256xf32>
    %128 = vector.broadcast %127 : vector<1x256xf32> to vector<8x256xf32>
    %129 = arith.addf %126, %128 : vector<8x256xf32>
    %cst_146 = arith.constant 0.000000e+00 : f32
    %130 = vector.broadcast %cst_146 : f32 to vector<8x256xf32>
    %131 = arith.maximumf %129, %130 : vector<8x256xf32>
    %c0_147 = arith.constant 0 : index
    %c0_148 = arith.constant 0 : index
    %132 = vector.load %arg8[%c0_147, %c0_148] : memref<256x128xf32, #tpu.memory_space<vmem>>, vector<256x128xf32>
    %cst_149 = arith.constant dense<0.000000e+00> : vector<8x128xf32>
    %133 = tpu.matmul %131, %132, %cst_149 {dimension_numbers = #tpu.dot_dimension_numbers<[1], [0], [0], [1], [0, 0, 1, 1], [], []>} : vector<8x256xf32>, vector<256x128xf32>, vector<8x128xf32> -> vector<8x128xf32>
    %c0_150 = arith.constant 0 : index
    %c0_151 = arith.constant 0 : index
    %134 = vector.load %arg9[%c0_150, %c0_151] : memref<1x128xf32, #tpu.memory_space<vmem>>, vector<1x128xf32>
    %135 = vector.broadcast %134 : vector<1x128xf32> to vector<8x128xf32>
    %136 = arith.addf %133, %135 : vector<8x128xf32>
    %cst_152 = arith.constant 0.000000e+00 : f32
    %137 = vector.broadcast %cst_152 : f32 to vector<8x128xf32>
    %138 = arith.maximumf %136, %137 : vector<8x128xf32>
    %c0_153 = arith.constant 0 : index
    %c0_154 = arith.constant 0 : index
    %139 = vector.load %arg10[%c0_153, %c0_154] : memref<128x128xf32, #tpu.memory_space<vmem>>, vector<128x128xf32>
    %cst_155 = arith.constant dense<0.000000e+00> : vector<8x128xf32>
    %140 = tpu.matmul %138, %139, %cst_155 {dimension_numbers = #tpu.dot_dimension_numbers<[1], [0], [0], [1], [0, 0, 1, 1], [], []>} : vector<8x128xf32>, vector<128x128xf32>, vector<8x128xf32> -> vector<8x128xf32>
    %c0_156 = arith.constant 0 : index
    %c0_157 = arith.constant 0 : index
    %141 = vector.load %arg11[%c0_156, %c0_157] : memref<1x128xf32, #tpu.memory_space<vmem>>, vector<1x128xf32>
    %142 = vector.broadcast %141 : vector<1x128xf32> to vector<8x128xf32>
    %143 = arith.addf %140, %142 : vector<8x128xf32>
    %c0_158 = arith.constant 0 : index
    %c0_159 = arith.constant 0 : index
    %144 = vector.load %arg12[%c0_158, %c0_159] : memref<8x128xf32, #tpu.memory_space<vmem>>, vector<8x128xf32>
    tpu.vector_store %arg12[%c0_158, %c0_159], %143 {strides = array<i32>} : memref<8x128xf32, #tpu.memory_space<vmem>>, vector<8x128xf32>,
    return
  }
  func.func @transform_0(%arg0: i32) -> (i32, i32, i32) {
    %c0_i32 = arith.constant 0 : i32
    %c0_i32_0 = arith.constant 0 : i32
    %c0_i32_1 = arith.constant 0 : i32
    return %c0_i32, %arg0, %c0_i32_0 : i32, i32, i32
  }
  func.func @transform_1(%arg0: i32) -> (i32, i32, i32) {
    %c0_i32 = arith.constant 0 : i32
    %c0_i32_0 = arith.constant 0 : i32
    %c0_i32_1 = arith.constant 0 : i32
    %c0_i32_2 = arith.constant 0 : i32
    return %c0_i32, %c0_i32_0, %c0_i32_1 : i32, i32, i32
  }
  func.func @transform_2(%arg0: i32) -> (i32, i32) {
    %c0_i32 = arith.constant 0 : i32
    %c0_i32_0 = arith.constant 0 : i32
    %c0_i32_1 = arith.constant 0 : i32
    return %c0_i32, %c0_i32_0 : i32, i32
  }
  func.func @transform_3(%arg0: i32) -> (i32, i32, i32) {
    %c0_i32 = arith.constant 0 : i32
    %c0_i32_0 = arith.constant 0 : i32
    %c0_i32_1 = arith.constant 0 : i32
    %c0_i32_2 = arith.constant 0 : i32
    return %c0_i32, %c0_i32_0, %c0_i32_1 : i32, i32, i32
  }
  func.func @transform_4(%arg0: i32) -> (i32, i32) {
    %c0_i32 = arith.constant 0 : i32
    %c0_i32_0 = arith.constant 0 : i32
    %c0_i32_1 = arith.constant 0 : i32
    return %c0_i32, %c0_i32_0 : i32, i32
  }
  func.func @transform_5(%arg0: i32) -> (i32, i32, i32) {
    %c0_i32 = arith.constant 0 : i32
    %c0_i32_0 = arith.constant 0 : i32
    %c0_i32_1 = arith.constant 0 : i32
    %c0_i32_2 = arith.constant 0 : i32
    return %c0_i32, %c0_i32_0, %c0_i32_1 : i32, i32, i32
  }
  func.func @transform_6(%arg0: i32) -> (i32, i32) {
    %c0_i32 = arith.constant 0 : i32
    %c0_i32_0 = arith.constant 0 : i32
    %c0_i32_1 = arith.constant 0 : i32
    return %c0_i32, %c0_i32_0 : i32, i32
  }
  func.func @transform_7(%arg0: i32) -> (i32, i32) {
    %c0_i32 = arith.constant 0 : i32
    %c0_i32_0 = arith.constant 0 : i32
    %c0_i32_1 = arith.constant 0 : i32
    return %c0_i32, %c0_i32_0 : i32, i32
  }
  func.func @transform_8(%arg0: i32) -> (i32, i32) {
    %c0_i32 = arith.constant 0 : i32
    %c0_i32_0 = arith.constant 0 : i32
    %c0_i32_1 = arith.constant 0 : i32
    return %c0_i32, %c0_i32_0 : i32, i32
  }
  func.func @transform_9(%arg0: i32) -> (i32, i32) {
    %c0_i32 = arith.constant 0 : i32
    %c0_i32_0 = arith.constant 0 : i32
    %c0_i32_1 = arith.constant 0 : i32
    return %c0_i32, %c0_i32_0 : i32, i32
  }
  func.func @transform_10(%arg0: i32) -> (i32, i32) {
    %c0_i32 = arith.constant 0 : i32
    %c0_i32_0 = arith.constant 0 : i32
    %c0_i32_1 = arith.constant 0 : i32
    return %c0_i32, %c0_i32_0 : i32, i32
  }
  func.func @transform_11(%arg0: i32) -> (i32, i32) {
    %c0_i32 = arith.constant 0 : i32
    %c0_i32_0 = arith.constant 0 : i32
    return %arg0, %c0_i32 : i32, i32
  }
}

</mosaic_0001>

<bundles_post_ra>
// kernel: classifier_forward.1
= control target key start
LH: loop header
LB: loop body
LE: loop exit
PB: predicated region body
PF: predicated region fallthrough
CT: control target
= control target key end

     0   :  { %16 = vsyncpa [#allocation7], 0  ;;  %s5992_s0 = inlined_call_operand.vmem [shape: f32[28,8,128], index: 0, kind: input, shape index: {}]   ;;  %s5993_s1 = inlined_call_operand.hbm [shape: f32[5,128,256], index: 1, kind: input, shape index: {}]   ;;  %s5994_s2 = inlined_call_operand.vmem [shape: f32[1,128], index: 2, kind: input, shape index: {}]   ;;  %s5995_s3 = inlined_call_operand.hbm [shape: f32[5,128,256], index: 3, kind: input, shape index: {}]   ;;  %s5996_s4 = inlined_call_operand.vmem [shape: f32[1,128], index: 4, kind: input, shape index: {}]   ;;  %s5997_s5 = inlined_call_operand.hbm [shape: f32[4,128,256], index: 5, kind: input, shape index: {}]   ;;  %s5998_s6 = inlined_call_operand.vmem [shape: f32[1,256], index: 6, kind: input, shape index: {}]   ;;  %s5999_s7 = inlined_call_operand.vmem [shape: f32[256,128], index: 7, kind: input, shape index: {}]   ;;  %s6000_s8 = inlined_call_operand.vmem [shape: f32[1,128], index: 8, kind: input, shape index: {}]   ;;  %s6001_s9 = inlined_call_operand.vmem [shape: f32[128,128], index: 9, kind: input, shape index: {}]   ;;  %s6002_s10 = inlined_call_operand.vmem [shape: f32[1,128], index: 10, kind: input, shape index: {}]   ;;  %s6003_s11 = inlined_call_operand.vmem [shape: f32[8,128], index: 11, kind: output, shape index: {}]  }
   0x1   :  { %17 = vsyncpa [#allocation9], 0  ;;  %s4906_s17 = smov [#allocation8]   ;;  %s4907_s19 = smov [#allocation6]  }
   0x2   :  { %s39_s18 = sshll.u32 %s4906_s17, 4  ;;  %s25_s20 = sshll.u32 %s4907_s19, 4  ;;  %s40_s18 = int_to_ptr.vmem [resolvable:$true] %s39_s18  ;;  %s4974_s20 = int_to_ptr.vmem [resolvable:$true] %s25_s20 }
   0x3   :  { %s4836_s23 = scalar_lea.hbm %s5995_s3, 20480 }
   0x4   :  { %p4837_p0 = scmp.ne.s32.totalorder %s5995_s3, %s4836_s23  ;;  %p4840_p1 = scmp.lt.u32.totalorder %s4836_s23, %s5995_s3 }
   0x6   :  { %p4842_p2 = pnand %p4840_p1, %p4837_p0 }
   0x8   :  { %4845 = shalt.err (!%p4842_p2)
}
   0x9   :  { %s4846_s28 = scalar_lea.vmem %s40_s18, 20480  ;;  %p4851_p4 = scmp.lt.s32.totalorder %s40_s18, %s40_s18 }
   0xa   :  { %p4847_p3 = scmp.ne.s32.totalorder %s40_s18, %s4846_s28  ;;  %p4852_p5 = scmp.lt.s32.totalorder %s4846_s28, %s4846_s28 }
   0xc   :  { %p4853_p6 = por %p4852_p5, %p4851_p4 }
   0xe   :  { %p4854_p7 = pnand %p4853_p6, %p4847_p3 }
  0x10   :  { %4857 = shalt.err (!%p4854_p7)
}
  0x11   :  { %s4908_s29 = smov 256   ;;  %s4909_s30 = smov 16  }
  0x12   :  { %45 = dma.hbm_to_vmem [thread:$0]  %s5995_s3, 20480, %s40_s18, [#allocation9], %s4908_s29, %s4908_s29, %s4909_s30  }
  0x13   :  { %s4858_s16 = scalar_lea.hbm %s5993_s1, 20480 }
  0x14   :  { %p4859_p8 = scmp.ne.s32.totalorder %s5993_s1, %s4858_s16  ;;  %p4862_p9 = scmp.lt.u32.totalorder %s4858_s16, %s5993_s1 }
  0x16   :  { %p4864_p10 = pnand %p4862_p9, %p4859_p8 }
  0x18   :  { %4867 = shalt.err (!%p4864_p10)
}
  0x19   :  { %s4868_s23 = scalar_lea.vmem %s4974_s20, 20480  ;;  %p4873_p12 = scmp.lt.s32.totalorder %s4974_s20, %s4974_s20 }
  0x1a   :  { %p4869_p11 = scmp.ne.s32.totalorder %s4974_s20, %s4868_s23  ;;  %p4874_p13 = scmp.lt.s32.totalorder %s4868_s23, %s4868_s23 }
  0x1c   :  { %p4875_p0 = por %p4874_p13, %p4873_p12 }
  0x1e   :  { %p4876_p1 = pnand %p4875_p0, %p4869_p11 }
  0x20   :  { %4879 = shalt.err (!%p4876_p1)
}
  0x21   :  { %31 = dma.hbm_to_vmem [thread:$0]  %s5993_s1, 20480, %s4974_s20, [#allocation7], %s4908_s29, %s4908_s29, %s4909_s30  }
  0x22   :  { %s4910_s24 = smov [#allocation10]   ;;  %s4880_s28 = scalar_lea.hbm %s5997_s5, 16384 }
  0x23   :  { %s53_s25 = sshll.u32 %s4910_s24, 4  ;;  %p4881_p2 = scmp.ne.s32.totalorder %s5997_s5, %s4880_s28  ;;  %s54_s25 = int_to_ptr.vmem [resolvable:$true] %s53_s25 }
  0x24   :  { %p4884_p3 = scmp.lt.u32.totalorder %s4880_s28, %s5997_s5 }
  0x26   :  { %p4886_p4 = pnand %p4884_p3, %p4881_p2 }
  0x28   :  { %4889 = shalt.err (!%p4886_p4)
}
  0x29   :  { %s4890_s16 = scalar_lea.vmem %s54_s25, 16384  ;;  %p4895_p6 = scmp.lt.s32.totalorder %s54_s25, %s54_s25 }
  0x2a   :  { %p4891_p5 = scmp.ne.s32.totalorder %s54_s25, %s4890_s16  ;;  %p4896_p7 = scmp.lt.s32.totalorder %s4890_s16, %s4890_s16 }
  0x2c   :  { %p4897_p8 = por %p4896_p7, %p4895_p6 }
  0x2e   :  { %p4898_p9 = pnand %p4897_p8, %p4891_p5 }
  0x30   :  { %4901 = shalt.err (!%p4898_p9)
}
  0x31   :  { %59 = dma.hbm_to_vmem [thread:$0]  %s5997_s5, 16384, %s54_s25, [#allocation9], %s4908_s29, %s4908_s29, %s4909_s30  }
  0x32   :  { %4902 = dma.done.wait [#allocation7], 20480  }
  0x33   :  { %4903 = vsyncadd [#allocation7], 4294946816 }
  0x34   :  { %4904 = dma.done.wait [#allocation9], 36864  }
  0x35   :  { %4905 = vsyncadd [#allocation9], 4294930432  ;;  %v4911_v0 = vmov 0.0   ;;  %v104_v1 = vld [vmem:[#allocation6 + $0x8] sm:$0xff]  ;;  %v106_v2 = vld [vmem:[#allocation6 + $0x18] sm:$0xff]  ;;  %vm4913_vm0 = vmmov 0  }
  0x36   :  { %199 = vmatprep.mubr.f32.mxu0 %v4911_v0  ;;  %1777 = vmatprep.mubr.f32.mxu1 %v4911_v0  ;;  %v103_v3 = vld [vmem:[#allocation6] sm:$0xff]  ;;  %v4046_v4 = vpack.c.bf16 %v106_v2, %v104_v1  ;;  %v105_v5 = vld [vmem:[#allocation6 + $0x10] sm:$0xff]  ;;  %v108_v6 = vld [vmem:[#allocation6 + $0x28] sm:$0xff] }
  0x37   :  { %v110_v7 = vld [vmem:[#allocation6 + $0x38] sm:$0xff]  ;;  %v4048_v8 = vpack.c.bf16 %v105_v5, %v103_v3  ;;  %v107_v10 = vld [vmem:[#allocation6 + $0x20] sm:$0xff]  ;;  %v109_v11 = vld [vmem:[#allocation6 + $0x30] sm:$0xff] }
  0x38   :  { %v4050_v9 = vpack.c.bf16 %v110_v7, %v108_v6  ;;  %v112_v12 = vld [vmem:[#allocation6 + $0x48] sm:$0xff]  ;;  %4047 = vmatprep.subr.bf16.mxu0 %v4046_v4  ;;  %v114_v13 = vld [vmem:[#allocation6 + $0x58] sm:$0xff]  ;;  %v4052_v14 = vpack.c.bf16 %v109_v11, %v107_v10  ;;  %v111_v16 = vld [vmem:[#allocation6 + $0x40] sm:$0xff] }
  0x39   :  { %4049 = vmatpush1.bf16.msra.mxu0 %v4048_v8  ;;  %v4054_v15 = vpack.c.bf16 %v114_v13, %v112_v12  ;;  %v113_v17 = vld [vmem:[#allocation6 + $0x50] sm:$0xff]  ;;  %v116_v18 = vld [vmem:[#allocation6 + $0x68] sm:$0xff]  ;;  %v118_v19 = vld [vmem:[#allocation6 + $0x78] sm:$0xff] }
  0x3a   :  { %4051 = vmatprep.subr.bf16.mxu0 %v4050_v9  ;;  %v4056_v20 = vpack.c.bf16 %v113_v17, %v111_v16  ;;  %v4058_v21 = vpack.c.bf16 %v118_v19, %v116_v18  ;;  %v115_v22 = vld [vmem:[#allocation6 + $0x60] sm:$0xff]  ;;  %v117_v23 = vld [vmem:[#allocation6 + $0x70] sm:$0xff]  ;;  %v120_v24 = vld [vmem:[#allocation6 + $0x88] sm:$0xff] }
  0x3b   :  { %v122_v25 = vld [vmem:[#allocation6 + $0x98] sm:$0xff]  ;;  %v4060_v26 = vpack.c.bf16 %v117_v23, %v115_v22  ;;  %v119_v28 = vld [vmem:[#allocation6 + $0x80] sm:$0xff]  ;;  %v121_v29 = vld [vmem:[#allocation6 + $0x90] sm:$0xff] }
  0x3c   :  { %v4062_v27 = vpack.c.bf16 %v122_v25, %v120_v24  ;;  %v124_v30 = vld [vmem:[#allocation6 + $0xa8] sm:$0xff]  ;;  %v126_v31 = vld [vmem:[#allocation6 + $0xb8] sm:$0xff]  ;;  %v4064_v32 = vpack.c.bf16 %v121_v29, %v119_v28  ;;  %v123_v34 = vld [vmem:[#allocation6 + $0xa0] sm:$0xff] }
  0x3d   :  { %4053 = vmatpush1.bf16.msra.mxu0 %v4052_v14  ;;  %v4066_v33 = vpack.c.bf16 %v126_v31, %v124_v30  ;;  %v125_v35 = vld [vmem:[#allocation6 + $0xb0] sm:$0xff]  ;;  %v128_v36 = vld [vmem:[#allocation6 + $0xc8] sm:$0xff]  ;;  %v130_v37 = vld [vmem:[#allocation6 + $0xd8] sm:$0xff] }
  0x3e   :  { %4055 = vmatprep.subr.bf16.mxu0 %v4054_v15  ;;  %v4068_v38 = vpack.c.bf16 %v125_v35, %v123_v34  ;;  %v4070_v39 = vpack.c.bf16 %v130_v37, %v128_v36  ;;  %v127_v40 = vld [vmem:[#allocation6 + $0xc0] sm:$0xff]  ;;  %v129_v41 = vld [vmem:[#allocation6 + $0xd0] sm:$0xff]  ;;  %v132_v42 = vld [vmem:[#allocation6 + $0xe8] sm:$0xff] }
  0x3f   :  { %v134_v43 = vld [vmem:[#allocation6 + $0xf8] sm:$0xff]  ;;  %v4072_v44 = vpack.c.bf16 %v129_v41, %v127_v40  ;;  %v131_v46 = vld [vmem:[#allocation6 + $0xe0] sm:$0xff]  ;;  %v133_v47 = vld [vmem:[#allocation6 + $0xf0] sm:$0xff] }
  0x40   :  { %v4074_v45 = vpack.c.bf16 %v134_v43, %v132_v42  ;;  %v419_v48 = vld [vmem:[#allocation6 + $0x108] sm:$0xff]  ;;  %v421_v49 = vld [vmem:[#allocation6 + $0x118] sm:$0xff]  ;;  %v4076_v50 = vpack.c.bf16 %v133_v47, %v131_v46  ;;  %v418_v52 = vld [vmem:[#allocation6 + $0x100] sm:$0xff] }
  0x41   :  { %4057 = vmatpush1.bf16.msra.mxu0 %v4056_v20  ;;  %v4078_v51 = vpack.c.bf16 %v421_v49, %v419_v48  ;;  %v420_v53 = vld [vmem:[#allocation6 + $0x110] sm:$0xff]  ;;  %v423_v54 = vld [vmem:[#allocation6 + $0x128] sm:$0xff]  ;;  %v425_v55 = vld [vmem:[#allocation6 + $0x138] sm:$0xff] }
  0x42   :  { %4059 = vmatprep.subr.bf16.mxu0 %v4058_v21  ;;  %v79_v56 = vld [vmem:[%s5992_s0] sm:$0xff]  ;;  %v4080_v57 = vpack.c.bf16 %v420_v53, %v418_v52  ;;  %v4082_v58 = vpack.c.bf16 %v425_v55, %v423_v54  ;;  %v424_v60 = vld [vmem:[#allocation6 + $0x130] sm:$0xff]  ;;  %v427_v61 = vld [vmem:[#allocation6 + $0x148] sm:$0xff] }
  0x43   :  { %v422_v59 = vld [vmem:[#allocation6 + $0x120] sm:$0xff]  ;;  %v429_v62 = vld [vmem:[#allocation6 + $0x158] sm:$0xff]  ;;  %v5035_v63 = vld [vmem:[%s5992_s0 + $0x8] sm:$0xff] }
  0x44   :  { %v4084_v1 = vpack.c.bf16 %v424_v60, %v422_v59  ;;  %v4086_v2 = vpack.c.bf16 %v429_v62, %v427_v61  ;;  %v426_v3 = vld [vmem:[#allocation6 + $0x140] sm:$0xff]  ;;  %v428_v4 = vld [vmem:[#allocation6 + $0x150] sm:$0xff]  ;;  %v431_v5 = vld [vmem:[#allocation6 + $0x168] sm:$0xff] }
  0x45   :  { %4061 = vmatpush1.bf16.msra.mxu0 %v4060_v26  ;;  %v433_v6 = vld [vmem:[#allocation6 + $0x178] sm:$0xff]  ;;  %v5042_v7 = vld [vmem:[%s5992_s0 + $0x10] sm:$0xff]  ;;  %v4088_v8 = vpack.c.bf16 %v428_v4, %v426_v3  ;;  %v430_v10 = vld [vmem:[#allocation6 + $0x160] sm:$0xff] }
  0x46   :  { %4063 = vmatprep.subr.bf16.mxu0 %v4062_v27  ;;  %v4090_v9 = vpack.c.bf16 %v433_v6, %v431_v5  ;;  %v432_v11 = vld [vmem:[#allocation6 + $0x170] sm:$0xff]  ;;  %v435_v12 = vld [vmem:[#allocation6 + $0x188] sm:$0xff]  ;;  %v437_v13 = vld [vmem:[#allocation6 + $0x198] sm:$0xff] }
  0x47   :  { %v5049_v14 = vld [vmem:[%s5992_s0 + $0x18] sm:$0xff]  ;;  %v4092_v15 = vpack.c.bf16 %v432_v11, %v430_v10  ;;  %v4094_v16 = vpack.c.bf16 %v437_v13, %v435_v12  ;;  %v434_v17 = vld [vmem:[#allocation6 + $0x180] sm:$0xff]  ;;  %v436_v18 = vld [vmem:[#allocation6 + $0x190] sm:$0xff] }
  0x48   :  { %v439_v19 = vld [vmem:[#allocation6 + $0x1a8] sm:$0xff]  ;;  %v441_v20 = vld [vmem:[#allocation6 + $0x1b8] sm:$0xff]  ;;  %v5056_v21 = vld [vmem:[%s5992_s0 + $0x20] sm:$0xff]  ;;  %v4096_v22 = vpack.c.bf16 %v436_v18, %v434_v17 }
  0x49   :  { %4065 = vmatpush1.bf16.msra.mxu0 %v4064_v32  ;;  %v4098_v23 = vpack.c.bf16 %v441_v20, %v439_v19  ;;  %v438_v24 = vld [vmem:[#allocation6 + $0x1a0] sm:$0xff]  ;;  %v440_v25 = vld [vmem:[#allocation6 + $0x1b0] sm:$0xff]  ;;  %v443_v26 = vld [vmem:[#allocation6 + $0x1c8] sm:$0xff] }
  0x4a   :  { %4067 = vmatprep.subr.bf16.mxu0 %v4066_v33  ;;  %v445_v27 = vld [vmem:[#allocation6 + $0x1d8] sm:$0xff]  ;;  %v5063_v28 = vld [vmem:[%s5992_s0 + $0x28] sm:$0xff]  ;;  %v4100_v29 = vpack.c.bf16 %v440_v25, %v438_v24  ;;  %v442_v31 = vld [vmem:[#allocation6 + $0x1c0] sm:$0xff] }
  0x4b   :  { %v4102_v30 = vpack.c.bf16 %v445_v27, %v443_v26  ;;  %v444_v32 = vld [vmem:[#allocation6 + $0x1d0] sm:$0xff]  ;;  %v447_v33 = vld [vmem:[#allocation6 + $0x1e8] sm:$0xff]  ;;  %v449_v34 = vld [vmem:[#allocation6 + $0x1f8] sm:$0xff] }
  0x4c   :  { %v5070_v35 = vld [vmem:[%s5992_s0 + $0x30] sm:$0xff]  ;;  %v4104_v36 = vpack.c.bf16 %v444_v32, %v442_v31  ;;  %v4106_v37 = vpack.c.bf16 %v449_v34, %v447_v33  ;;  %v830_v40 = vld [vmem:[#allocation6 + $0x208] sm:$0xff]  ;;  %v832_v41 = vld [vmem:[#allocation6 + $0x218] sm:$0xff] }
  0x4d   :  { %4069 = vmatpush1.bf16.msra.mxu0 %v4068_v38  ;;  %v446_v38 = vld [vmem:[#allocation6 + $0x1e0] sm:$0xff]  ;;  %v5077_v42 = vld [vmem:[%s5992_s0 + $0x38] sm:$0xff]  ;;  %v5091_v46 = vld [vmem:[%s5992_s0 + $0x48] sm:$0xff] }
  0x4e   :  { %4071 = vmatprep.subr.bf16.mxu0 %v4070_v39  ;;  %v448_v39 = vld [vmem:[#allocation6 + $0x1f0] sm:$0xff]  ;;  %v5105_v48 = vld [vmem:[%s5992_s0 + $0x58] sm:$0xff]  ;;  %v5112_v49 = vld [vmem:[%s5992_s0 + $0x60] sm:$0xff] }
  0x4f   :  { %v4108_v43 = vpack.c.bf16 %v448_v39, %v446_v38  ;;  %v5098_v47 = vld [vmem:[%s5992_s0 + $0x50] sm:$0xff]  ;;  %v5133_v52 = vld [vmem:[%s5992_s0 + $0x78] sm:$0xff]  ;;  %v5140_v53 = vld [vmem:[%s5992_s0 + $0x80] sm:$0xff] }
  0x50   :  { %v5147_v54 = vld [vmem:[%s5992_s0 + $0x88] sm:$0xff]  ;;  %v5154_v55 = vld [vmem:[%s5992_s0 + $0x90] sm:$0xff]  ;;  %v5189_v60 = vld [vmem:[%s5992_s0 + $0xb8] sm:$0xff] }
  0x51   :  { %4073 = vmatpush1.bf16.msra.mxu0 %v4072_v44  ;;  %v4110_v44 = vpack.c.bf16 %v832_v41, %v830_v40  ;;  %v5182_v59 = vld [vmem:[%s5992_s0 + $0xb0] sm:$0xff]  ;;  %v829_v61 = vld [vmem:[#allocation6 + $0x200] sm:$0xff]  ;;  %v846_v20 = vld [vmem:[#allocation6 + $0x288] sm:$0xff] }
  0x52   :  { %4075 = vmatprep.subr.bf16.mxu0 %v4074_v45  ;;  %v5084_v45 = vld [vmem:[%s5992_s0 + $0x40] sm:$0xff]  ;;  %v831_v62 = vld [vmem:[#allocation6 + $0x210] sm:$0xff]  ;;  %v850_v27 = vld [vmem:[#allocation6 + $0x2a8] sm:$0xff] }
  0x53   :  { %v4112_v3 = vpack.c.bf16 %v831_v62, %v829_v61  ;;  %v833_v5 = vld [vmem:[#allocation6 + $0x220] sm:$0xff]  ;;  %v835_v6 = vld [vmem:[#allocation6 + $0x230] sm:$0xff]  ;;  %v854_v34 = vld [vmem:[#allocation6 + $0x2c8] sm:$0xff] }
  0x54   :  { %v4116_v10 = vpack.c.bf16 %v835_v6, %v833_v5  ;;  %v837_v12 = vld [vmem:[#allocation6 + $0x240] sm:$0xff]  ;;  %v839_v13 = vld [vmem:[#allocation6 + $0x250] sm:$0xff]  ;;  %v858_v41 = vld [vmem:[#allocation6 + $0x2e8] sm:$0xff] }
  0x55   :  { %4077 = vmatpush1.bf16.msra.mxu0 %v4076_v50  ;;  %v5119_v50 = vld [vmem:[%s5992_s0 + $0x68] sm:$0xff]  ;;  %v4120_v17 = vpack.c.bf16 %v839_v13, %v837_v12  ;;  %v841_v19 = vld [vmem:[#allocation6 + $0x260] sm:$0xff]  ;;  %v847_v26 = vld [vmem:[#allocation6 + $0x290] sm:$0xff] }
  0x56   :  { %4079 = vmatprep.subr.bf16.mxu0 %v4078_v51  ;;  %v5126_v51 = vld [vmem:[%s5992_s0 + $0x70] sm:$0xff]  ;;  %v845_v25 = vld [vmem:[#allocation6 + $0x280] sm:$0xff]  ;;  %v1652_v6 = vld [vmem:[#allocation6 + $0x408] sm:$0xff] }
  0x57   :  { %v849_v32 = vld [vmem:[#allocation6 + $0x2a0] sm:$0xff]  ;;  %v851_v33 = vld [vmem:[#allocation6 + $0x2b0] sm:$0xff]  ;;  %v1656_v13 = vld [vmem:[#allocation6 + $0x428] sm:$0xff] }
  0x58   :  { %200 = vmatmul.mubr.f32.vlgmr.msra.gmra.mrb[0].mxu0 %v79_v56  ;;  %v5161_v56 = vld [vmem:[%s5992_s0 + $0x98] sm:$0xff]  ;;  %v853_v39 = vld [vmem:[#allocation6 + $0x2c0] sm:$0xff]  ;;  %v855_v40 = vld [vmem:[#allocation6 + $0x2d0] sm:$0xff] }
  0x59   :  { %4081 = vmatpush1.bf16.msra.mxu0 %v4080_v57  ;;  %205 = vmatprep.mubr.f32.mxu0 %v4911_v0  ;;  %v5168_v57 = vld [vmem:[%s5992_s0 + $0xa0] sm:$0xff] }
  0x5a   :  { %4083 = vmatprep.subr.bf16.mxu0 %v4082_v58  ;;  %v5175_v58 = vld [vmem:[%s5992_s0 + $0xa8] sm:$0xff]  ;;  %v857_v62 = vld [vmem:[#allocation6 + $0x2e0] sm:$0xff] }
  0x5c   :  { %206 = vmatmul.mubr.f32.gmra.mrb[2].mxu0 %v5035_v63 }
  0x5d   :  { %211 = vmatprep.mubr.f32.mxu0 %v4911_v0  ;;  %4085 = vmatpush1.bf16.msra.mxu0 %v4084_v1  ;;  %v834_v1 = vld [vmem:[#allocation6 + $0x228] sm:$0xff] }
  0x5e   :  { %4087 = vmatprep.subr.bf16.mxu0 %v4086_v2  ;;  %v836_v2 = vld [vmem:[#allocation6 + $0x238] sm:$0xff] }
  0x5f   :  { %v4114_v4 = vpack.c.bf16 %v836_v2, %v834_v1  ;;  %v859_v1 = vld [vmem:[#allocation6 + $0x2f0] sm:$0xff]  ;;  %v1241_v2 = vld [vmem:[#allocation6 + $0x308] sm:$0xff] }
  0x60   :  { %212 = vmatmul.mubr.f32.gmra.mrb[4].mxu0 %v5042_v7 }
  0x61   :  { %217 = vmatprep.mubr.f32.mxu0 %v4911_v0  ;;  %4089 = vmatpush1.bf16.msra.mxu0 %v4088_v8  ;;  %v838_v8 = vld [vmem:[#allocation6 + $0x248] sm:$0xff] }
  0x62   :  { %4091 = vmatprep.subr.bf16.mxu0 %v4090_v9  ;;  %v840_v9 = vld [vmem:[#allocation6 + $0x258] sm:$0xff] }
  0x63   :  { %v4118_v11 = vpack.c.bf16 %v840_v9, %v838_v8  ;;  %v1654_v8 = vld [vmem:[#allocation6 + $0x418] sm:$0xff] }
  0x64   :  { %218 = vmatmul.mubr.f32.gmra.mrb[6].mxu0 %v5049_v14  ;;  %v5219_v9 = vpack.c.bf16 %v1654_v8, %v1652_v6  ;;  %v1680_v8 = vld [vmem:[#allocation6 + $0x4e8] sm:$0xff] }
  0x65   :  { %223 = vmatprep.mubr.f32.mxu0 %v4911_v0  ;;  %4093 = vmatpush1.bf16.msra.mxu0 %v4092_v15  ;;  %v842_v15 = vld [vmem:[#allocation6 + $0x268] sm:$0xff] }
  0x66   :  { %4095 = vmatprep.subr.bf16.mxu0 %v4094_v16  ;;  %v844_v16 = vld [vmem:[#allocation6 + $0x278] sm:$0xff]  ;;  %4550 = vmatprep.subr.bf16.mxu1 %v5219_v9 }
  0x67   :  { %v4122_v18 = vpack.c.bf16 %v844_v16, %v842_v15  ;;  %v1658_v15 = vld [vmem:[#allocation6 + $0x438] sm:$0xff] }
  0x68   :  { %224 = vmatmul.mubr.f32.gmra.mrb[8].mxu0 %v5056_v21  ;;  %v5227_v16 = vpack.c.bf16 %v1658_v15, %v1656_v13  ;;  %v1679_v13 = vld [vmem:[#allocation6 + $0x4e0] sm:$0xff]  ;;  %v1681_v15 = vld [vmem:[#allocation6 + $0x4f0] sm:$0xff] }
  0x69   :  { %229 = vmatprep.mubr.f32.mxu0 %v4911_v0  ;;  %4097 = vmatpush1.bf16.msra.mxu0 %v4096_v22  ;;  %v848_v22 = vld [vmem:[#allocation6 + $0x298] sm:$0xff] }
  0x6a   :  { %4099 = vmatprep.subr.bf16.mxu0 %v4098_v23  ;;  %v4126_v24 = vpack.c.bf16 %v848_v22, %v846_v20  ;;  %v1662_v20 = vld [vmem:[#allocation6 + $0x458] sm:$0xff] }
  0x6c   :  { %230 = vmatmul.mubr.f32.gmra.mrb[10].mxu0 %v5063_v28 }
  0x6d   :  { %235 = vmatprep.mubr.f32.mxu0 %v4911_v0  ;;  %4101 = vmatpush1.bf16.msra.mxu0 %v4100_v29  ;;  %v852_v29 = vld [vmem:[#allocation6 + $0x2b8] sm:$0xff] }
  0x6e   :  { %4103 = vmatprep.subr.bf16.mxu0 %v4102_v30  ;;  %v4128_v30 = vpack.c.bf16 %v847_v26, %v845_v25  ;;  %v4130_v31 = vpack.c.bf16 %v852_v29, %v850_v27  ;;  %v1664_v26 = vld [vmem:[#allocation6 + $0x468] sm:$0xff]  ;;  %v1666_v27 = vld [vmem:[#allocation6 + $0x478] sm:$0xff] }
  0x6f   :  { %v5243_v29 = vpack.c.bf16 %v1666_v27, %v1664_v26 }
  0x70   :  { %236 = vmatmul.mubr.f32.gmra.mrb[12].mxu0 %v5070_v35 }
  0x71   :  { %241 = vmatprep.mubr.f32.mxu0 %v4911_v0  ;;  %4105 = vmatpush1.bf16.msra.mxu0 %v4104_v36  ;;  %v856_v36 = vld [vmem:[#allocation6 + $0x2d8] sm:$0xff] }
  0x72   :  { %4107 = vmatprep.subr.bf16.mxu0 %v4106_v37  ;;  %v4132_v37 = vpack.c.bf16 %v851_v33, %v849_v32  ;;  %v4134_v38 = vpack.c.bf16 %v856_v36, %v854_v34  ;;  %v1668_v33 = vld [vmem:[#allocation6 + $0x488] sm:$0xff]  ;;  %v1670_v34 = vld [vmem:[#allocation6 + $0x498] sm:$0xff] }
  0x73   :  { %v5251_v36 = vpack.c.bf16 %v1670_v34, %v1668_v33  ;;  %v1249_v33 = vld [vmem:[#allocation6 + $0x348] sm:$0xff]  ;;  %v1251_v34 = vld [vmem:[#allocation6 + $0x358] sm:$0xff] }
  0x74   :  { %242 = vmatmul.mubr.f32.gmra.mrb[14].mxu0 %v5077_v42 }
  0x75   :  { %247 = vmatprep.mubr.f32.mxu0 %v4911_v0  ;;  %4109 = vmatpush1.bf16.msra.mxu0 %v4108_v43  ;;  %v860_v43 = vld [vmem:[#allocation6 + $0x2f8] sm:$0xff] }
  0x76   :  { %4111 = vmatprep.subr.bf16.mxu0 %v4110_v44  ;;  %v4136_v44 = vpack.c.bf16 %v855_v40, %v853_v39  ;;  %v4138_v61 = vpack.c.bf16 %v860_v43, %v858_v41  ;;  %v1672_v40 = vld [vmem:[#allocation6 + $0x4a8] sm:$0xff]  ;;  %v1674_v41 = vld [vmem:[#allocation6 + $0x4b8] sm:$0xff] }
  0x77   :  { %v5259_v43 = vpack.c.bf16 %v1674_v41, %v1672_v40  ;;  %v1248_v40 = vld [vmem:[#allocation6 + $0x340] sm:$0xff]  ;;  %v1250_v41 = vld [vmem:[#allocation6 + $0x350] sm:$0xff] }
  0x78   :  { %248 = vmatmul.mubr.f32.gmra.mrb[16].mxu0 %v5084_v45 }
  0x79   :  { %253 = vmatprep.mubr.f32.mxu0 %v4911_v0 }
  0x7c   :  { %254 = vmatmul.mubr.f32.gmra.mrb[18].mxu0 %v5091_v46 }
  0x7d   :  { %259 = vmatprep.mubr.f32.mxu0 %v4911_v0 }
  0x80   :  { %260 = vmatmul.mubr.f32.gmra.mrb[20].mxu0 %v5098_v47 }
  0x81   :  { %265 = vmatprep.mubr.f32.mxu0 %v4911_v0 }
  0x84   :  { %266 = vmatmul.mubr.f32.gmra.mrb[22].mxu0 %v5105_v48 }
  0x85   :  { %271 = vmatprep.mubr.f32.mxu0 %v4911_v0 }
  0x88   :  { %272 = vmatmul.mubr.f32.gmra.mrb[24].mxu0 %v5112_v49 }
  0x89   :  { %277 = vmatprep.mubr.f32.mxu0 %v4911_v0 }
  0x8c   :  { %278 = vmatmul.mubr.f32.gmra.mrb[26].mxu0 %v5119_v50 }
  0x8d   :  { %283 = vmatprep.mubr.f32.mxu0 %v4911_v0 }
  0x90   :  { %284 = vmatmul.mubr.f32.gmra.mrb[28].mxu0 %v5126_v51 }
  0x91   :  { %289 = vmatprep.mubr.f32.mxu0 %v4911_v0 }
  0x94   :  { %290 = vmatmul.mubr.f32.gmra.mrb[30].mxu0 %v5133_v52 }
  0x95   :  { %295 = vmatprep.mubr.f32.mxu0 %v4911_v0 }
  0x98   :  { %296 = vmatmul.mubr.f32.gmra.mrb[32].mxu0 %v5140_v53 }
  0x99   :  { %301 = vmatprep.mubr.f32.mxu0 %v4911_v0 }
  0x9c   :  { %302 = vmatmul.mubr.f32.gmra.mrb[34].mxu0 %v5147_v54 }
  0x9d   :  { %307 = vmatprep.mubr.f32.mxu0 %v4911_v0 }
  0xa0   :  { %308 = vmatmul.mubr.f32.gmra.mrb[36].mxu0 %v5154_v55 }
  0xa1   :  { %313 = vmatprep.mubr.f32.mxu0 %v4911_v0 }
  0xa4   :  { %314 = vmatmul.mubr.f32.gmra.mrb[38].mxu0 %v5161_v56 }
  0xa5   :  { %319 = vmatprep.mubr.f32.mxu0 %v4911_v0 }
  0xa8   :  { %320 = vmatmul.mubr.f32.gmra.mrb[40].mxu0 %v5168_v57 }
  0xa9   :  { %325 = vmatprep.mubr.f32.mxu0 %v4911_v0 }
  0xac   :  { %326 = vmatmul.mubr.f32.gmra.mrb[42].mxu0 %v5175_v58 }
  0xad   :  { %331 = vmatprep.mubr.f32.mxu0 %v4911_v0 }
  0xb0   :  { %332 = vmatmul.mubr.f32.gmra.mrb[44].mxu0 %v5182_v59 }
  0xb1   :  { %337 = vmatprep.mubr.f32.mxu0 %v4911_v0 }
  0xb4   :  { %338 = vmatmul.mubr.f32.gmra.mrb[46].mxu0 %v5189_v60 }
  0xb5   :  { %514 = vmatprep.mubr.f32.mxu0 %v4911_v0 }
  0xb8   :  { %515 = vmatmul.mubr.f32.vlgmr.msra.gmra.mrb[0].mxu0 %v5035_v63  ;;  %v843_v63 = vld [vmem:[#allocation6 + $0x270] sm:$0xff] }
  0xb9   :  { %4113 = vmatpush1.bf16.msra.mxu0 %v4112_v3  ;;  %520 = vmatprep.mubr.f32.mxu0 %v4911_v0  ;;  %v4124_v23 = vpack.c.bf16 %v843_v63, %v841_v19  ;;  %v1243_v3 = vld [vmem:[#allocation6 + $0x318] sm:$0xff]  ;;  %v1660_v63 = vld [vmem:[#allocation6 + $0x448] sm:$0xff] }
  0xba   :  { %4115 = vmatprep.subr.bf16.mxu0 %v4114_v4  ;;  %v4140_v4 = vpack.c.bf16 %v859_v1, %v857_v62  ;;  %v4142_v5 = vpack.c.bf16 %v1243_v3, %v1241_v2  ;;  %v5235_v22 = vpack.c.bf16 %v1662_v20, %v1660_v63  ;;  %v1676_v1 = vld [vmem:[#allocation6 + $0x4c8] sm:$0xff]  ;;  %v1678_v2 = vld [vmem:[#allocation6 + $0x4d8] sm:$0xff]  ;;  %v1240_v63 = vld [vmem:[#allocation6 + $0x300] sm:$0xff] }
  0xbb   :  { %v5267_v3 = vpack.c.bf16 %v1678_v2, %v1676_v1  ;;  %v1242_v20 = vld [vmem:[#allocation6 + $0x310] sm:$0xff]  ;;  %v1252_v2 = vld [vmem:[#allocation6 + $0x360] sm:$0xff] }
  0xbc   :  { %521 = vmatmul.mubr.f32.gmra.mrb[2].mxu0 %v5042_v7  ;;  %v4144_v26 = vpack.c.bf16 %v1242_v20, %v1240_v63  ;;  %v1258_v63 = vld [vmem:[#allocation6 + $0x390] sm:$0xff]  ;;  %v1261_v20 = vld [vmem:[#allocation6 + $0x3a8] sm:$0xff] }
  0xbd   :  { %526 = vmatprep.mubr.f32.mxu0 %v4911_v0  ;;  %4117 = vmatpush1.bf16.msra.mxu0 %v4116_v10  ;;  %v1651_v10 = vld [vmem:[#allocation6 + $0x400] sm:$0xff] }
  0xbe   :  { %4119 = vmatprep.subr.bf16.mxu0 %v4118_v11  ;;  %v1653_v11 = vld [vmem:[#allocation6 + $0x410] sm:$0xff] }
  0xbf   :  { %v5221_v12 = vpack.c.bf16 %v1653_v11, %v1651_v10  ;;  %v1682_v10 = vld [vmem:[#allocation6 + $0x4f8] sm:$0xff] }
  0xc0   :  { %527 = vmatmul.mubr.f32.gmra.mrb[4].mxu0 %v5049_v14  ;;  %v5275_v11 = vpack.c.bf16 %v1682_v10, %v1680_v8  ;;  %v1259_v8 = vld [vmem:[#allocation6 + $0x398] sm:$0xff] }
  0xc1   :  { %532 = vmatprep.mubr.f32.mxu0 %v4911_v0  ;;  %4121 = vmatpush1.bf16.msra.mxu0 %v4120_v17  ;;  %v1655_v17 = vld [vmem:[#allocation6 + $0x420] sm:$0xff] }
  0xc2   :  { %4123 = vmatprep.subr.bf16.mxu0 %v4122_v18  ;;  %4558 = vmatpush1.bf16.msra.mxu1 %v5221_v12  ;;  %v1657_v18 = vld [vmem:[#allocation6 + $0x430] sm:$0xff] }
  0xc3   :  { %v5229_v19 = vpack.c.bf16 %v1657_v18, %v1655_v17  ;;  %4551 = vmatprep.subr.bf16.mxu1 %v5227_v16  ;;  %v5277_v17 = vpack.c.bf16 %v1681_v15, %v1679_v13  ;;  %v5293_v18 = vld [vmem:[%s5992_s0 + $0xc0] sm:$0xff] }
  0xc4   :  { %533 = vmatmul.mubr.f32.gmra.mrb[6].mxu0 %v5056_v21  ;;  %v1256_v15 = vld [vmem:[#allocation6 + $0x380] sm:$0xff] }
  0xc5   :  { %538 = vmatprep.mubr.f32.mxu0 %v4911_v0  ;;  %4125 = vmatpush1.bf16.msra.mxu0 %v4124_v23  ;;  %v1659_v23 = vld [vmem:[#allocation6 + $0x440] sm:$0xff] }
  0xc6   :  { %4127 = vmatprep.subr.bf16.mxu0 %v4126_v24  ;;  %4559 = vmatpush1.bf16.msra.mxu1 %v5229_v19  ;;  %v1661_v24 = vld [vmem:[#allocation6 + $0x450] sm:$0xff] }
  0xc7   :  { %v5237_v25 = vpack.c.bf16 %v1661_v24, %v1659_v23  ;;  %4552 = vmatprep.subr.bf16.mxu1 %v5235_v22  ;;  %v1245_v23 = vld [vmem:[#allocation6 + $0x328] sm:$0xff]  ;;  %v1247_v24 = vld [vmem:[#allocation6 + $0x338] sm:$0xff] }
  0xc8   :  { %539 = vmatmul.mubr.f32.gmra.mrb[8].mxu0 %v5063_v28  ;;  %v4146_v27 = vpack.c.bf16 %v1247_v24, %v1245_v23  ;;  %v1263_v23 = vld [vmem:[#allocation6 + $0x3b8] sm:$0xff]  ;;  %v4160_v24 = vpack.c.bf16 %v1258_v63, %v1256_v15  ;;  %v2192_v15 = vld [vmem:[#allocation8 + $0x48] sm:$0xff] }
  0xc9   :  { %544 = vmatprep.mubr.f32.mxu0 %v4911_v0  ;;  %4129 = vmatpush1.bf16.msra.mxu0 %v4128_v30  ;;  %v1663_v30 = vld [vmem:[#allocation6 + $0x460] sm:$0xff]  ;;  %v2194_v63 = vld [vmem:[#allocation8 + $0x58] sm:$0xff] }
  0xca   :  { %4131 = vmatprep.subr.bf16.mxu0 %v4130_v31  ;;  %4560 = vmatpush1.bf16.msra.mxu1 %v5237_v25  ;;  %v1665_v31 = vld [vmem:[#allocation6 + $0x470] sm:$0xff] }
  0xcb   :  { %v5245_v32 = vpack.c.bf16 %v1665_v31, %v1663_v30  ;;  %4553 = vmatprep.subr.bf16.mxu1 %v5243_v29  ;;  %v1244_v30 = vld [vmem:[#allocation6 + $0x320] sm:$0xff]  ;;  %v1246_v31 = vld [vmem:[#allocation6 + $0x330] sm:$0xff] }
  0xcc   :  { %545 = vmatmul.mubr.f32.gmra.mrb[10].mxu0 %v5070_v35 }
  0xcd   :  { %550 = vmatprep.mubr.f32.mxu0 %v4911_v0  ;;  %4133 = vmatpush1.bf16.msra.mxu0 %v4132_v37  ;;  %v1667_v37 = vld [vmem:[#allocation6 + $0x480] sm:$0xff] }
  0xce   :  { %4135 = vmatprep.subr.bf16.mxu0 %v4134_v38  ;;  %4561 = vmatpush1.bf16.msra.mxu1 %v5245_v32  ;;  %v1669_v38 = vld [vmem:[#allocation6 + $0x490] sm:$0xff] }
  0xcf   :  { %v5253_v39 = vpack.c.bf16 %v1669_v38, %v1667_v37  ;;  %4554 = vmatprep.subr.bf16.mxu1 %v5251_v36  ;;  %v4148_v37 = vpack.c.bf16 %v1246_v31, %v1244_v30  ;;  %v4150_v38 = vpack.c.bf16 %v1251_v34, %v1249_v33  ;;  %v1262_v30 = vld [vmem:[#allocation6 + $0x3b0] sm:$0xff]  ;;  %v1265_v31 = vld [vmem:[#allocation6 + $0x3c8] sm:$0xff]  ;;  %v1267_v33 = vld [vmem:[#allocation6 + $0x3d8] sm:$0xff] }
  0xd0   :  { %551 = vmatmul.mubr.f32.gmra.mrb[12].mxu0 %v5077_v42 }
  0xd1   :  { %556 = vmatprep.mubr.f32.mxu0 %v4911_v0  ;;  %4137 = vmatpush1.bf16.msra.mxu0 %v4136_v44  ;;  %v1671_v44 = vld [vmem:[#allocation6 + $0x4a0] sm:$0xff] }
  0xd2   :  { %4139 = vmatprep.subr.bf16.mxu0 %v4138_v61  ;;  %4562 = vmatpush1.bf16.msra.mxu1 %v5253_v39  ;;  %v1673_v61 = vld [vmem:[#allocation6 + $0x4b0] sm:$0xff] }
  0xd3   :  { %v5261_v62 = vpack.c.bf16 %v1673_v61, %v1671_v44  ;;  %4555 = vmatprep.subr.bf16.mxu1 %v5259_v43  ;;  %v1253_v44 = vld [vmem:[#allocation6 + $0x368] sm:$0xff]  ;;  %v1255_v61 = vld [vmem:[#allocation6 + $0x378] sm:$0xff] }
  0xd4   :  { %557 = vmatmul.mubr.f32.gmra.mrb[14].mxu0 %v5084_v45  ;;  %v4154_v1 = vpack.c.bf16 %v1255_v61, %v1253_v44  ;;  %v1271_v44 = vld [vmem:[#allocation6 + $0x3f8] sm:$0xff] }
  0xd5   :  { %562 = vmatprep.mubr.f32.mxu0 %v4911_v0  ;;  %4141 = vmatpush1.bf16.msra.mxu0 %v4140_v4  ;;  %v1675_v4 = vld [vmem:[#allocation6 + $0x4c0] sm:$0xff] }
  0xd6   :  { %4143 = vmatprep.subr.bf16.mxu0 %v4142_v5  ;;  %4563 = vmatpush1.bf16.msra.mxu1 %v5261_v62  ;;  %v1677_v5 = vld [vmem:[#allocation6 + $0x4d0] sm:$0xff] }
  0xd7   :  { %v5269_v6 = vpack.c.bf16 %v1677_v5, %v1675_v4  ;;  %4556 = vmatprep.subr.bf16.mxu1 %v5267_v3  ;;  %v1254_v4 = vld [vmem:[#allocation6 + $0x370] sm:$0xff]  ;;  %v1257_v5 = vld [vmem:[#allocation6 + $0x388] sm:$0xff] }
  0xd8   :  { %563 = vmatmul.mubr.f32.gmra.mrb[16].mxu0 %v5091_v46  ;;  %v4156_v10 = vpack.c.bf16 %v1254_v4, %v1252_v2  ;;  %v4158_v13 = vpack.c.bf16 %v1259_v8, %v1257_v5  ;;  %v1270_v2 = vld [vmem:[#allocation6 + $0x3f0] sm:$0xff]  ;;  %v3954_v8 = vld [vmem:[%s5992_s0 + $0xd8] sm:$0xff] }
  0xd9   :  { %568 = vmatprep.mubr.f32.mxu0 %v4911_v0  ;;  %v5365_v5 = vld [vmem:[%s5992_s0 + $0xd0] sm:$0xff] }
  0xda   :  { %4564 = vmatpush1.bf16.msra.mxu1 %v5269_v6 }
  0xdb   :  { %4557 = vmatprep.subr.bf16.mxu1 %v5275_v11 }
  0xdc   :  { %569 = vmatmul.mubr.f32.gmra.mrb[18].mxu0 %v5098_v47 }
  0xdd   :  { %574 = vmatprep.mubr.f32.mxu0 %v4911_v0 }
  0xde   :  { %4565 = vmatpush1.bf16.msra.mxu1 %v5277_v17 }
  0xe0   :  { %575 = vmatmul.mubr.f32.gmra.mrb[20].mxu0 %v5105_v48 }
  0xe1   :  { %580 = vmatprep.mubr.f32.mxu0 %v4911_v0  ;;  %1778 = vmatmul.mubr.f32.vlgmr.msra.gmra.mrb[0].mxu1 %v5091_v46 }
  0xe2   :  { %1783 = vmatprep.mubr.f32.mxu1 %v4911_v0 }
  0xe4   :  { %581 = vmatmul.mubr.f32.gmra.mrb[22].mxu0 %v5112_v49 }
  0xe5   :  { %586 = vmatprep.mubr.f32.mxu0 %v4911_v0  ;;  %1784 = vmatmul.mubr.f32.gmra.mrb[2].mxu1 %v5098_v47 }
  0xe6   :  { %1789 = vmatprep.mubr.f32.mxu1 %v4911_v0 }
  0xe8   :  { %587 = vmatmul.mubr.f32.gmra.mrb[24].mxu0 %v5119_v50 }
  0xe9   :  { %592 = vmatprep.mubr.f32.mxu0 %v4911_v0  ;;  %1790 = vmatmul.mubr.f32.gmra.mrb[4].mxu1 %v5105_v48 }
  0xea   :  { %1795 = vmatprep.mubr.f32.mxu1 %v4911_v0 }
  0xec   :  { %593 = vmatmul.mubr.f32.gmra.mrb[26].mxu0 %v5126_v51 }
  0xed   :  { %598 = vmatprep.mubr.f32.mxu0 %v4911_v0  ;;  %1796 = vmatmul.mubr.f32.gmra.mrb[6].mxu1 %v5112_v49 }
  0xee   :  { %1801 = vmatprep.mubr.f32.mxu1 %v4911_v0 }
  0xf0   :  { %599 = vmatmul.mubr.f32.gmra.mrb[28].mxu0 %v5133_v52 }
  0xf1   :  { %604 = vmatprep.mubr.f32.mxu0 %v4911_v0  ;;  %1802 = vmatmul.mubr.f32.gmra.mrb[8].mxu1 %v5119_v50 }
  0xf2   :  { %1807 = vmatprep.mubr.f32.mxu1 %v4911_v0 }
  0xf4   :  { %605 = vmatmul.mubr.f32.gmra.mrb[30].mxu0 %v5140_v53 }
  0xf5   :  { %610 = vmatprep.mubr.f32.mxu0 %v4911_v0  ;;  %1808 = vmatmul.mubr.f32.gmra.mrb[10].mxu1 %v5126_v51 }
  0xf6   :  { %1813 = vmatprep.mubr.f32.mxu1 %v4911_v0 }
  0xf8   :  { %611 = vmatmul.mubr.f32.gmra.mrb[32].mxu0 %v5147_v54 }
  0xf9   :  { %616 = vmatprep.mubr.f32.mxu0 %v4911_v0  ;;  %1814 = vmatmul.mubr.f32.gmra.mrb[12].mxu1 %v5133_v52 }
  0xfa   :  { %1819 = vmatprep.mubr.f32.mxu1 %v4911_v0 }
  0xfc   :  { %617 = vmatmul.mubr.f32.gmra.mrb[34].mxu0 %v5154_v55 }
  0xfd   :  { %622 = vmatprep.mubr.f32.mxu0 %v4911_v0  ;;  %1820 = vmatmul.mubr.f32.gmra.mrb[14].mxu1 %v5140_v53 }
  0xfe   :  { %1825 = vmatprep.mubr.f32.mxu1 %v4911_v0 }
 0x100   :  { %623 = vmatmul.mubr.f32.gmra.mrb[36].mxu0 %v5161_v56 }
 0x101   :  { %628 = vmatprep.mubr.f32.mxu0 %v4911_v0  ;;  %1826 = vmatmul.mubr.f32.gmra.mrb[16].mxu1 %v5147_v54 }
 0x102   :  { %1831 = vmatprep.mubr.f32.mxu1 %v4911_v0 }
 0x104   :  { %629 = vmatmul.mubr.f32.gmra.mrb[38].mxu0 %v5168_v57 }
 0x105   :  { %634 = vmatprep.mubr.f32.mxu0 %v4911_v0  ;;  %1832 = vmatmul.mubr.f32.gmra.mrb[18].mxu1 %v5154_v55 }
 0x106   :  { %1837 = vmatprep.mubr.f32.mxu1 %v4911_v0 }
 0x108   :  { %635 = vmatmul.mubr.f32.gmra.mrb[40].mxu0 %v5175_v58 }
 0x109   :  { %640 = vmatprep.mubr.f32.mxu0 %v4911_v0  ;;  %1838 = vmatmul.mubr.f32.gmra.mrb[20].mxu1 %v5161_v56 }
 0x10a   :  { %1843 = vmatprep.mubr.f32.mxu1 %v4911_v0 }
 0x10c   :  { %641 = vmatmul.mubr.f32.gmra.mrb[42].mxu0 %v5182_v59 }
 0x10d   :  { %646 = vmatprep.mubr.f32.mxu0 %v4911_v0  ;;  %1844 = vmatmul.mubr.f32.gmra.mrb[22].mxu1 %v5168_v57 }
 0x10e   :  { %1849 = vmatprep.mubr.f32.mxu1 %v4911_v0 }
 0x110   :  { %647 = vmatmul.mubr.f32.gmra.mrb[44].mxu0 %v5189_v60 }
 0x111   :  { %652 = vmatprep.mubr.f32.mxu0 %v4911_v0  ;;  %1850 = vmatmul.mubr.f32.gmra.mrb[24].mxu1 %v5175_v58 }
 0x112   :  { %1855 = vmatprep.mubr.f32.mxu1 %v4911_v0 }
 0x114   :  { %653 = vmatmul.mubr.f32.gmra.mrb[46].mxu0 %v5293_v18 }
 0x115   :  { %925 = vmatprep.mubr.f32.mxu0 %v4911_v0  ;;  %1856 = vmatmul.mubr.f32.gmra.mrb[26].mxu1 %v5182_v59 }
 0x116   :  { %1861 = vmatprep.mubr.f32.mxu1 %v4911_v0 }
 0x118   :  { %926 = vmatmul.mubr.f32.vlgmr.msra.gmra.mrb[0].mxu0 %v5042_v7  ;;  %v4152_v7 = vpack.c.bf16 %v1250_v41, %v1248_v40  ;;  %v1266_v40 = vld [vmem:[#allocation6 + $0x3d0] sm:$0xff]  ;;  %v1269_v41 = vld [vmem:[#allocation6 + $0x3e8] sm:$0xff] }
 0x119   :  { %4145 = vmatpush1.bf16.msra.mxu0 %v4144_v26  ;;  %931 = vmatprep.mubr.f32.mxu0 %v4911_v0  ;;  %v4162_v26 = vpack.c.bf16 %v1263_v23, %v1261_v20  ;;  %v2191_v20 = vld [vmem:[#allocation8 + $0x40] sm:$0xff]  ;;  %v4214_v23 = vpack.c.bf16 %v2194_v63, %v2192_v15  ;;  %v2210_v15 = vld [vmem:[#allocation8 + $0xd8] sm:$0xff] }
 0x11a   :  { %4147 = vmatprep.subr.bf16.mxu0 %v4146_v27  ;;  %v1260_v27 = vld [vmem:[#allocation6 + $0x3a0] sm:$0xff]  ;;  %1862 = vmatmul.mubr.f32.gmra.mrb[28].mxu1 %v5189_v60 }
 0x11b   :  { %v4164_v34 = vpack.c.bf16 %v1262_v30, %v1260_v27  ;;  %1867 = vmatprep.mubr.f32.mxu1 %v4911_v0  ;;  %v2207_v63 = vld [vmem:[#allocation8 + $0xc0] sm:$0xff] }
 0x11c   :  { %932 = vmatmul.mubr.f32.gmra.mrb[2].mxu0 %v5049_v14 }
 0x11d   :  { %937 = vmatprep.mubr.f32.mxu0 %v4911_v0  ;;  %4149 = vmatpush1.bf16.msra.mxu0 %v4148_v37  ;;  %v4166_v37 = vpack.c.bf16 %v1267_v33, %v1265_v31 }
 0x11e   :  { %4151 = vmatprep.subr.bf16.mxu0 %v4150_v38  ;;  %v1264_v38 = vld [vmem:[#allocation6 + $0x3c0] sm:$0xff]  ;;  %1868 = vmatmul.mubr.f32.gmra.mrb[30].mxu1 %v5293_v18 }
 0x11f   :  { %v4168_v61 = vpack.c.bf16 %v1266_v40, %v1264_v38  ;;  %1873 = vmatprep.mubr.f32.mxu1 %v4911_v0  ;;  %v2195_v38 = vld [vmem:[#allocation8 + $0x60] sm:$0xff] }
 0x120   :  { %938 = vmatmul.mubr.f32.gmra.mrb[4].mxu0 %v5056_v21 }
 0x121   :  { %943 = vmatprep.mubr.f32.mxu0 %v4911_v0  ;;  %4153 = vmatpush1.bf16.msra.mxu0 %v4152_v7  ;;  %v4170_v7 = vpack.c.bf16 %v1271_v44, %v1269_v41  ;;  %v2197_v41 = vld [vmem:[#allocation8 + $0x70] sm:$0xff] }
 0x122   :  { %4155 = vmatprep.subr.bf16.mxu0 %v4154_v1  ;;  %v1268_v1 = vld [vmem:[#allocation6 + $0x3e0] sm:$0xff]  ;;  %v4220_v44 = vpack.c.bf16 %v2197_v41, %v2195_v38 }
 0x123   :  { %v4172_v4 = vpack.c.bf16 %v1270_v2, %v1268_v1  ;;  %v2211_v38 = vld [vmem:[#allocation8 + $0xe0] sm:$0xff] }
 0x124   :  { %944 = vmatmul.mubr.f32.gmra.mrb[6].mxu0 %v5063_v28 }
 0x125   :  { %949 = vmatprep.mubr.f32.mxu0 %v4911_v0  ;;  %4157 = vmatpush1.bf16.msra.mxu0 %v4156_v10 }
 0x126   :  { %4159 = vmatprep.subr.bf16.mxu0 %v4158_v13 }
 0x128   :  { %950 = vmatmul.mubr.f32.gmra.mrb[8].mxu0 %v5070_v35 }
 0x129   :  { %955 = vmatprep.mubr.f32.mxu0 %v4911_v0  ;;  %4161 = vmatpush1.bf16.msra.mxu0 %v4160_v24  ;;  %v2193_v24 = vld [vmem:[#allocation8 + $0x50] sm:$0xff] }
 0x12a   :  { %4163 = vmatprep.subr.bf16.mxu0 %v4162_v26  ;;  %v4216_v26 = vpack.c.bf16 %v2193_v24, %v2191_v20 }
 0x12c   :  { %956 = vmatmul.mubr.f32.gmra.mrb[10].mxu0 %v5077_v42 }
 0x12d   :  { %961 = vmatprep.mubr.f32.mxu0 %v4911_v0  ;;  %4165 = vmatpush1.bf16.msra.mxu0 %v4164_v34  ;;  %v2196_v34 = vld [vmem:[#allocation8 + $0x68] sm:$0xff] }
 0x12e   :  { %4167 = vmatprep.subr.bf16.mxu0 %v4166_v37  ;;  %v2198_v37 = vld [vmem:[#allocation8 + $0x78] sm:$0xff] }
 0x12f   :  { %v4218_v40 = vpack.c.bf16 %v2198_v37, %v2196_v34  ;;  %v2214_v34 = vld [vmem:[#allocation8 + $0xf8] sm:$0xff] }
 0x130   :  { %962 = vmatmul.mubr.f32.gmra.mrb[12].mxu0 %v5084_v45 }
 0x131   :  { %967 = vmatprep.mubr.f32.mxu0 %v4911_v0  ;;  %4169 = vmatpush1.bf16.msra.mxu0 %v4168_v61 }
 0x132   :  { %4171 = vmatprep.subr.bf16.mxu0 %v4170_v7 }
 0x134   :  { %968 = vmatmul.mubr.f32.gmra.mrb[14].mxu0 %v5091_v46 }
 0x135   :  { %973 = vmatprep.mubr.f32.mxu0 %v4911_v0  ;;  %4173 = vmatpush1.bf16.msra.mxu0 %v4172_v4  ;;  %v2200_v4 = vld [vmem:[#allocation8 + $0x88] sm:$0xff] }
 0x136   :  { %4175 = vmatprep.subr.bf16.mxu0 %v5219_v9  ;;  %v5356_v9 = vld [vmem:[%s5992_s0 + $0xc8] sm:$0xff] }
 0x137   :  { %1874 = vmatmul.mubr.f32.gmra.mrb[32].mxu1 %v5356_v9 }
 0x138   :  { %974 = vmatmul.mubr.f32.gmra.mrb[16].mxu0 %v5098_v47  ;;  %1879 = vmatprep.mubr.f32.mxu1 %v4911_v0 }
 0x139   :  { %979 = vmatprep.mubr.f32.mxu0 %v4911_v0 }
 0x13b   :  { %1880 = vmatmul.mubr.f32.gmra.mrb[34].mxu1 %v5365_v5 }
 0x13c   :  { %980 = vmatmul.mubr.f32.gmra.mrb[18].mxu0 %v5105_v48  ;;  %1885 = vmatprep.mubr.f32.mxu1 %v4911_v0 }
 0x13d   :  { %985 = vmatprep.mubr.f32.mxu0 %v4911_v0 }
 0x13f   :  { %1886 = vmatmul.mubr.f32.gmra.mrb[36].mxu1 %v3954_v8 }
 0x140   :  { %986 = vmatmul.mubr.f32.gmra.mrb[20].mxu0 %v5112_v49  ;;  %2279 = vmatprep.mubr.f32.mxu1 %v4911_v0 }
 0x141   :  { %991 = vmatprep.mubr.f32.mxu0 %v4911_v0 }
 0x144   :  { %992 = vmatmul.mubr.f32.gmra.mrb[22].mxu0 %v5119_v50 }
 0x145   :  { %997 = vmatprep.mubr.f32.mxu0 %v4911_v0 }
 0x148   :  { %998 = vmatmul.mubr.f32.gmra.mrb[24].mxu0 %v5126_v51 }
 0x149   :  { %1003 = vmatprep.mubr.f32.mxu0 %v4911_v0 }
 0x14c   :  { %1004 = vmatmul.mubr.f32.gmra.mrb[26].mxu0 %v5133_v52 }
 0x14d   :  { %1009 = vmatprep.mubr.f32.mxu0 %v4911_v0 }
 0x150   :  { %1010 = vmatmul.mubr.f32.gmra.mrb[28].mxu0 %v5140_v53 }
 0x151   :  { %1015 = vmatprep.mubr.f32.mxu0 %v4911_v0 }
 0x154   :  { %1016 = vmatmul.mubr.f32.gmra.mrb[30].mxu0 %v5147_v54 }
 0x155   :  { %1021 = vmatprep.mubr.f32.mxu0 %v4911_v0 }
 0x158   :  { %1022 = vmatmul.mubr.f32.gmra.mrb[32].mxu0 %v5154_v55 }
 0x159   :  { %1027 = vmatprep.mubr.f32.mxu0 %v4911_v0 }
 0x15c   :  { %1028 = vmatmul.mubr.f32.gmra.mrb[34].mxu0 %v5161_v56 }
 0x15d   :  { %1033 = vmatprep.mubr.f32.mxu0 %v4911_v0 }
 0x160   :  { %1034 = vmatmul.mubr.f32.gmra.mrb[36].mxu0 %v5168_v57 }
 0x161   :  { %1039 = vmatprep.mubr.f32.mxu0 %v4911_v0 }
 0x164   :  { %1040 = vmatmul.mubr.f32.gmra.mrb[38].mxu0 %v5175_v58 }
 0x165   :  { %1045 = vmatprep.mubr.f32.mxu0 %v4911_v0 }
 0x168   :  { %1046 = vmatmul.mubr.f32.gmra.mrb[40].mxu0 %v5182_v59 }
 0x169   :  { %1051 = vmatprep.mubr.f32.mxu0 %v4911_v0 }
 0x16c   :  { %1052 = vmatmul.mubr.f32.gmra.mrb[42].mxu0 %v5189_v60 }
 0x16d   :  { %1057 = vmatprep.mubr.f32.mxu0 %v4911_v0 }
 0x170   :  { %1058 = vmatmul.mubr.f32.gmra.mrb[44].mxu0 %v5293_v18 }
 0x171   :  { %1063 = vmatprep.mubr.f32.mxu0 %v4911_v0 }
 0x174   :  { %1064 = vmatmul.mubr.f32.gmra.mrb[46].mxu0 %v5356_v9 }
 0x175   :  { %1336 = vmatprep.mubr.f32.mxu0 %v4911_v0 }
 0x178   :  { %1337 = vmatmul.mubr.f32.vlgmr.msra.gmra.mrb[0].mxu0 %v5049_v14  ;;  %v3931_v14 = vld [vmem:[%s5992_s0 + $0x20] sm:$0xff] }
 0x179   :  { %4177 = vmatpush1.bf16.msra.mxu0 %v5221_v12  ;;  %1342 = vmatprep.mubr.f32.mxu0 %v4911_v0  ;;  %v2183_v12 = vld [vmem:[#allocation8] sm:$0xff] }
 0x17a   :  { %4179 = vmatprep.subr.bf16.mxu0 %v5227_v16 }
 0x17c   :  { %1343 = vmatmul.mubr.f32.gmra.mrb[2].mxu0 %v5056_v21  ;;  %v3932_v21 = vld [vmem:[%s5992_s0 + $0x28] sm:$0xff] }
 0x17d   :  { %1348 = vmatprep.mubr.f32.mxu0 %v4911_v0  ;;  %4181 = vmatpush1.bf16.msra.mxu0 %v5229_v19  ;;  %v2185_v19 = vld [vmem:[#allocation8 + $0x10] sm:$0xff] }
 0x17e   :  { %4183 = vmatprep.subr.bf16.mxu0 %v5235_v22  ;;  %v4208_v22 = vpack.c.bf16 %v2185_v19, %v2183_v12  ;;  %v2206_v19 = vld [vmem:[#allocation8 + $0xb8] sm:$0xff] }
 0x180   :  { %1349 = vmatmul.mubr.f32.gmra.mrb[4].mxu0 %v5063_v28  ;;  %v3933_v28 = vld [vmem:[%s5992_s0 + $0x30] sm:$0xff] }
 0x181   :  { %1354 = vmatprep.mubr.f32.mxu0 %v4911_v0  ;;  %4185 = vmatpush1.bf16.msra.mxu0 %v5237_v25 }
 0x182   :  { %4187 = vmatprep.subr.bf16.mxu0 %v5243_v29 }
 0x184   :  { %1355 = vmatmul.mubr.f32.gmra.mrb[6].mxu0 %v5070_v35 }
 0x185   :  { %1360 = vmatprep.mubr.f32.mxu0 %v4911_v0  ;;  %4189 = vmatpush1.bf16.msra.mxu0 %v5245_v32 }
 0x186   :  { %4191 = vmatprep.subr.bf16.mxu0 %v5251_v36 }
 0x188   :  { %1361 = vmatmul.mubr.f32.gmra.mrb[8].mxu0 %v5077_v42 }
 0x189   :  { %1366 = vmatprep.mubr.f32.mxu0 %v4911_v0  ;;  %4193 = vmatpush1.bf16.msra.mxu0 %v5253_v39  ;;  %v2188_v39 = vld [vmem:[#allocation8 + $0x28] sm:$0xff] }
 0x18a   :  { %4195 = vmatprep.subr.bf16.mxu0 %v5259_v43  ;;  %v2190_v43 = vld [vmem:[#allocation8 + $0x38] sm:$0xff] }
 0x18c   :  { %1367 = vmatmul.mubr.f32.gmra.mrb[10].mxu0 %v5084_v45  ;;  %v3934_v45 = vld [vmem:[%s5992_s0 + $0x38] sm:$0xff] }
 0x18d   :  { %1372 = vmatprep.mubr.f32.mxu0 %v4911_v0  ;;  %4197 = vmatpush1.bf16.msra.mxu0 %v5261_v62  ;;  %v2187_v62 = vld [vmem:[#allocation8 + $0x20] sm:$0xff] }
 0x18e   :  { %4199 = vmatprep.subr.bf16.mxu0 %v5267_v3  ;;  %v4210_v3 = vpack.c.bf16 %v2190_v43, %v2188_v39  ;;  %v2205_v43 = vld [vmem:[#allocation8 + $0xb0] sm:$0xff] }
 0x190   :  { %1373 = vmatmul.mubr.f32.gmra.mrb[12].mxu0 %v5091_v46 }
 0x191   :  { %1378 = vmatprep.mubr.f32.mxu0 %v4911_v0  ;;  %4201 = vmatpush1.bf16.msra.mxu0 %v5269_v6  ;;  %v2189_v6 = vld [vmem:[#allocation8 + $0x30] sm:$0xff] }
 0x192   :  { %4203 = vmatprep.subr.bf16.mxu0 %v5275_v11  ;;  %v4212_v11 = vpack.c.bf16 %v2189_v6, %v2187_v62 }
 0x194   :  { %1379 = vmatmul.mubr.f32.gmra.mrb[14].mxu0 %v5098_v47 }
 0x195   :  { %1384 = vmatprep.mubr.f32.mxu0 %v4911_v0  ;;  %4205 = vmatpush1.bf16.msra.mxu0 %v5277_v17 }
 0x198   :  { %1385 = vmatmul.mubr.f32.gmra.mrb[16].mxu0 %v5105_v48  ;;  %v3935_v48 = vld [vmem:[%s5992_s0 + $0x40] sm:$0xff] }
 0x199   :  { %1390 = vmatprep.mubr.f32.mxu0 %v4911_v0 }
 0x19c   :  { %1391 = vmatmul.mubr.f32.gmra.mrb[18].mxu0 %v5112_v49 }
 0x19d   :  { %1396 = vmatprep.mubr.f32.mxu0 %v4911_v0 }
 0x1a0   :  { %1397 = vmatmul.mubr.f32.gmra.mrb[20].mxu0 %v5119_v50 }
 0x1a1   :  { %1402 = vmatprep.mubr.f32.mxu0 %v4911_v0 }
 0x1a4   :  { %1403 = vmatmul.mubr.f32.gmra.mrb[22].mxu0 %v5126_v51 }
 0x1a5   :  { %1408 = vmatprep.mubr.f32.mxu0 %v4911_v0 }
 0x1a8   :  { %1409 = vmatmul.mubr.f32.gmra.mrb[24].mxu0 %v5133_v52 }
 0x1a9   :  { %1414 = vmatprep.mubr.f32.mxu0 %v4911_v0 }
 0x1ac   :  { %1415 = vmatmul.mubr.f32.gmra.mrb[26].mxu0 %v5140_v53 }
 0x1ad   :  { %1420 = vmatprep.mubr.f32.mxu0 %v4911_v0 }
 0x1b0   :  { %1421 = vmatmul.mubr.f32.gmra.mrb[28].mxu0 %v5147_v54 }
 0x1b1   :  { %1426 = vmatprep.mubr.f32.mxu0 %v4911_v0 }
 0x1b4   :  { %1427 = vmatmul.mubr.f32.gmra.mrb[30].mxu0 %v5154_v55  ;;  %v5467_v35 = vpop.f32.mrb[0].mxu1 }
 0x1b5   :  { %1432 = vmatprep.mubr.f32.mxu0 %v4911_v0  ;;  %v5469_v42 = vpop.f32.mrb[1].mxu1 }
 0x1b8   :  { %1433 = vmatmul.mubr.f32.gmra.mrb[32].mxu0 %v5161_v56  ;;  %v5475_v46 = vpop.f32.mrb[2].mxu1 }
 0x1b9   :  { %1438 = vmatprep.mubr.f32.mxu0 %v4911_v0  ;;  %v5477_v47 = vpop.f32.mrb[3].mxu1 }
 0x1bc   :  { %1439 = vmatmul.mubr.f32.gmra.mrb[34].mxu0 %v5168_v57  ;;  %v5483_v49 = vpop.f32.mrb[4].mxu1 }
 0x1bd   :  { %1444 = vmatprep.mubr.f32.mxu0 %v4911_v0  ;;  %v5485_v50 = vpop.f32.mrb[5].mxu1 }
 0x1c0   :  { %1445 = vmatmul.mubr.f32.gmra.mrb[36].mxu0 %v5175_v58  ;;  %v5487_v51 = vpop.f32.mrb[6].mxu1 }
 0x1c1   :  { %1450 = vmatprep.mubr.f32.mxu0 %v4911_v0  ;;  %v5489_v52 = vpop.f32.mrb[7].mxu1 }
 0x1c4   :  { %1451 = vmatmul.mubr.f32.gmra.mrb[38].mxu0 %v5182_v59  ;;  %v5491_v53 = vpop.f32.mrb[8].mxu1  ;;  %v2184_v59 = vld [vmem:[#allocation8 + $0x8] sm:$0xff] }
 0x1c5   :  { %1456 = vmatprep.mubr.f32.mxu0 %v4911_v0  ;;  %v5493_v54 = vpop.f32.mrb[9].mxu1 }
 0x1c8   :  { %1457 = vmatmul.mubr.f32.gmra.mrb[40].mxu0 %v5189_v60  ;;  %v5495_v55 = vpop.f32.mrb[10].mxu1  ;;  %v2186_v60 = vld [vmem:[#allocation8 + $0x18] sm:$0xff] }
 0x1c9   :  { %1462 = vmatprep.mubr.f32.mxu0 %v4911_v0  ;;  %v5497_v56 = vpop.f32.mrb[11].mxu1  ;;  %v4206_v16 = vpack.c.bf16 %v2186_v60, %v2184_v59 }
 0x1cb   :  { %4207 = vmatprep.subr.bf16.mxu1 %v4206_v16  ;;  %v2204_v16 = vld [vmem:[#allocation8 + $0xa8] sm:$0xff] }
 0x1cc   :  { %1463 = vmatmul.mubr.f32.gmra.mrb[42].mxu0 %v5293_v18  ;;  %v5499_v57 = vpop.f32.mrb[12].mxu1  ;;  %4209 = vmatpush1.bf16.msra.mxu1 %v4208_v22  ;;  %v2203_v22 = vld [vmem:[#allocation8 + $0xa0] sm:$0xff]  ;;  %v4226_v39 = vpack.c.bf16 %v2206_v19, %v2204_v16 }
 0x1cd   :  { %1468 = vmatprep.mubr.f32.mxu0 %v4911_v0  ;;  %v5501_v58 = vpop.f32.mrb[13].mxu1  ;;  %4211 = vmatprep.subr.bf16.mxu1 %v4210_v3  ;;  %v4228_v62 = vpack.c.bf16 %v2205_v43, %v2203_v22 }
 0x1d0   :  { %1469 = vmatmul.mubr.f32.gmra.mrb[44].mxu0 %v5356_v9  ;;  %v5503_v25 = vpop.f32.mrb[14].mxu1  ;;  %4213 = vmatpush1.bf16.msra.mxu1 %v4212_v11  ;;  %v2202_v9 = vld [vmem:[#allocation8 + $0x98] sm:$0xff]  ;;  %v2208_v11 = vld [vmem:[#allocation8 + $0xc8] sm:$0xff] }
 0x1d1   :  { %1474 = vmatprep.mubr.f32.mxu0 %v4911_v0  ;;  %v5505_v29 = vpop.f32.mrb[15].mxu1  ;;  %4215 = vmatprep.subr.bf16.mxu1 %v4214_v23  ;;  %v4230_v20 = vpack.c.bf16 %v2210_v15, %v2208_v11  ;;  %v2209_v23 = vld [vmem:[#allocation8 + $0xd0] sm:$0xff] }
 0x1d2   :  { %v4232_v24 = vpack.c.bf16 %v2209_v23, %v2207_v63 }
 0x1d4   :  { %1475 = vmatmul.mubr.f32.gmra.mrb[46].mxu0 %v5365_v5  ;;  %v5507_v32 = vpop.f32.mrb[16].mxu1  ;;  %4217 = vmatpush1.bf16.msra.mxu1 %v4216_v26  ;;  %v4222_v5 = vpack.c.bf16 %v2202_v9, %v2200_v4  ;;  %v2212_v26 = vld [vmem:[#allocation8 + $0xe8] sm:$0xff]  ;;  %v2357_v4 = vld [vmem:[#allocation8 + $0x118] sm:$0xff] }
 0x1d5   :  { %1747 = vmatprep.mubr.f32.mxu0 %v4911_v0  ;;  %v5509_v36 = vpop.f32.mrb[17].mxu1  ;;  %4219 = vmatprep.subr.bf16.mxu1 %v4218_v40  ;;  %v4234_v37 = vpack.c.bf16 %v2214_v34, %v2212_v26  ;;  %v2213_v40 = vld [vmem:[#allocation8 + $0xf0] sm:$0xff] }
 0x1d6   :  { %v4236_v41 = vpack.c.bf16 %v2213_v40, %v2211_v38 }
 0x1d8   :  { %1748 = vmatmul.mubr.f32.vlgmr.msra.gmra.mrb[0].mxu0 %v3931_v14  ;;  %v5511_v17 = vpop.f32.mrb[18].mxu1  ;;  %4221 = vmatpush1.bf16.msra.mxu1 %v4220_v44  ;;  %v2355_v44 = vld [vmem:[#allocation8 + $0x108] sm:$0xff] }
 0x1d9   :  { %1753 = vmatprep.mubr.f32.mxu0 %v4911_v0  ;;  %v5513_v18 = vpop.f32.mrb[19].mxu1  ;;  %4223 = vmatprep.subr.bf16.mxu1 %v4222_v5  ;;  %v4238_v9 = vpack.c.bf16 %v2357_v4, %v2355_v44 }
 0x1dc   :  { %1754 = vmatmul.mubr.f32.gmra.mrb[2].mxu0 %v3932_v21  ;;  %v5515_v10 = vpop.f32.mrb[20].mxu1  ;;  %v2199_v21 = vld [vmem:[#allocation8 + $0x80] sm:$0xff] }
 0x1dd   :  { %1759 = vmatprep.mubr.f32.mxu0 %v4911_v0  ;;  %v5517_v13 = vpop.f32.mrb[21].mxu1 }
 0x1e0   :  { %1760 = vmatmul.mubr.f32.gmra.mrb[4].mxu0 %v3933_v28  ;;  %v5519_v27 = vpop.f32.mrb[22].mxu1  ;;  %v2201_v28 = vld [vmem:[#allocation8 + $0x90] sm:$0xff] }
 0x1e1   :  { %1765 = vmatprep.mubr.f32.mxu0 %v4911_v0  ;;  %v5521_v30 = vpop.f32.mrb[23].mxu1 }
 0x1e4   :  { %1766 = vmatmul.mubr.f32.gmra.mrb[6].mxu0 %v3934_v45  ;;  %v5523_v31 = vpop.f32.mrb[24].mxu1  ;;  %v4224_v45 = vpack.c.bf16 %v2201_v28, %v2199_v21 }
 0x1e5   :  { %1771 = vmatprep.mubr.f32.mxu0 %v4911_v0  ;;  %v5525_v33 = vpop.f32.mrb[25].mxu1 }
 0x1e6   :  { %4225 = vmatpush1.bf16.msra.mxu1 %v4224_v45 }
 0x1e7   :  { %4227 = vmatprep.subr.bf16.mxu1 %v4226_v39 }
 0x1e8   :  { %1772 = vmatmul.mubr.f32.gmra.mrb[8].mxu0 %v3935_v48  ;;  %v5527_v61 = vpop.f32.mrb[26].mxu1 }
 0x1e9   :  { %v5529_v7 = vpop.f32.mrb[27].mxu1 }
 0x1ea   :  { %4229 = vmatpush1.bf16.msra.mxu1 %v4228_v62 }
 0x1eb   :  { %4231 = vmatprep.subr.bf16.mxu1 %v4230_v20 }
 0x1ed   :  { %v5531_v1 = vpop.f32.mrb[28].mxu1 }
 0x1ee   :  { %v5533_v2 = vpop.f32.mrb[29].mxu1  ;;  %4233 = vmatpush1.bf16.msra.mxu1 %v4232_v24 }
 0x1ef   :  { %4235 = vmatprep.subr.bf16.mxu1 %v4234_v37 }
 0x1f1   :  { %v5535_v8 = vpop.f32.mrb[30].mxu1 }
 0x1f2   :  { %v5537_v14 = vpop.f32.mrb[31].mxu1  ;;  %4237 = vmatpush1.bf16.msra.mxu1 %v4236_v41 }
 0x1f3   :  { %4239 = vmatprep.subr.bf16.mxu1 %v4238_v9 }
 0x20a   :  { %v5539_v48 = vpop.f32.mrb[32].mxu1 }
 0x20b   :  { %v5541_v59 = vpop.f32.mrb[33].mxu1 }
 0x20e   :  { %v5543_v60 = vpop.f32.mrb[34].mxu1 }
 0x20f   :  { %v5545_v12 = vpop.f32.mrb[35].mxu1 }
 0x212   :  { %v5547_v3 = vpop.f32.mrb[36].mxu1 }
 0x213   :  { %v5549_v6 = vpop.f32.mrb[37].mxu1 }
 0x25f   :  { %v1368_v5 = vpop.f32.mrb[10].mxu0 }
 0x260   :  { %v5552_v21 = vadd.f32 %v5467_v35, %v1368_v5  ;;  %v1370_v28 = vpop.f32.mrb[11].mxu0 }
 0x261   :  { %v5555_v45 = vadd.f32 %v5469_v42, %v1370_v28  ;;  %v5566_v42 = vld [vmem:[%s5994_s2] ss:$0 sm:$0xff] }
 0x263   :  { %v2089_v16 = vmax.f32 %v5552_v21, %v5555_v45  ;;  %v1374_v19 = vpop.f32.mrb[12].mxu0 }
 0x264   :  { %v4568_v22 = vadd.f32 %v5475_v46, %v1374_v19  ;;  %v1376_v39 = vpop.f32.mrb[13].mxu0 }
 0x265   :  { %v4569_v43 = vadd.f32 %v5477_v47, %v1376_v39 }
 0x267   :  { %v2090_v62 = vmax.f32 %v4568_v22, %v4569_v43  ;;  %v1380_v11 = vpop.f32.mrb[14].mxu0 }
 0x268   :  { %v4570_v15 = vadd.f32 %v5483_v49, %v1380_v11  ;;  %v1382_v63 = vpop.f32.mrb[15].mxu0 }
 0x269   :  { %v4571_v35 = vadd.f32 %v5485_v50, %v1382_v63  ;;  %v5570_v26 = vadd.f32 %v5566_v42, %v2090_v62 }
 0x26b   :  { %v2091_v20 = vmax.f32 %v4570_v15, %v4571_v35  ;;  %v1386_v23 = vpop.f32.mrb[16].mxu0 }
 0x26c   :  { %v4572_v24 = vadd.f32 %v5487_v51, %v1386_v23  ;;  %v1388_v46 = vpop.f32.mrb[17].mxu0 }
 0x26d   :  { %v5573_v47 = vadd.f32 %v5566_v42, %v2091_v20  ;;  %v4573_v49 = vadd.f32 %v5489_v52, %v1388_v46 }
 0x26f   :  { %v2142_v50 = vmax.f32 %v5570_v26, %v5573_v47  ;;  %v2092_v34 = vmax.f32 %v4572_v24, %v4573_v49  ;;  %v1392_v37 = vpop.f32.mrb[18].mxu0  ;;  %v2378_v47 = vld [vmem:[#allocation8 + $0x1c0] sm:$0xff] }
 0x270   :  { %v4574_v38 = vadd.f32 %v5491_v53, %v1392_v37  ;;  %v1394_v40 = vpop.f32.mrb[19].mxu0 }
 0x271   :  { %v4575_v41 = vadd.f32 %v5493_v54, %v1394_v40  ;;  %v5582_v5 = vadd.f32 %v5566_v42, %v2092_v34 }
 0x273   :  { %v2093_v51 = vmax.f32 %v4574_v38, %v4575_v41  ;;  %v1398_v44 = vpop.f32.mrb[20].mxu0 }
 0x274   :  { %v4576_v4 = vadd.f32 %v5495_v55, %v1398_v44  ;;  %v1400_v9 = vpop.f32.mrb[21].mxu0 }
 0x275   :  { %v5585_v52 = vadd.f32 %v5566_v42, %v2093_v51  ;;  %v4577_v28 = vadd.f32 %v5497_v56, %v1400_v9 }
 0x277   :  { %v2143_v19 = vmax.f32 %v5582_v5, %v5585_v52  ;;  %v2094_v53 = vmax.f32 %v4576_v4, %v4577_v28  ;;  %v1404_v22 = vpop.f32.mrb[22].mxu0  ;;  %v2382_v52 = vld [vmem:[#allocation8 + $0x1e0] sm:$0xff] }
 0x278   :  { %v4578_v54 = vadd.f32 %v5499_v57, %v1404_v22  ;;  %v1406_v39 = vpop.f32.mrb[23].mxu0 }
 0x279   :  { %v4579_v43 = vadd.f32 %v5501_v58, %v1406_v39  ;;  %v5594_v63 = vadd.f32 %v5566_v42, %v2094_v53 }
 0x27b   :  { %v2095_v55 = vmax.f32 %v4578_v54, %v4579_v43  ;;  %v1410_v62 = vpop.f32.mrb[24].mxu0 }
 0x27c   :  { %v4580_v11 = vadd.f32 %v5503_v25, %v1410_v62  ;;  %v1412_v15 = vpop.f32.mrb[25].mxu0 }
 0x27d   :  { %v5597_v56 = vadd.f32 %v5566_v42, %v2095_v55  ;;  %v4581_v35 = vadd.f32 %v5505_v29, %v1412_v15 }
 0x27f   :  { %v2144_v20 = vmax.f32 %v5594_v63, %v5597_v56  ;;  %v2096_v57 = vmax.f32 %v4580_v11, %v4581_v35  ;;  %v1416_v23 = vpop.f32.mrb[26].mxu0 }
 0x280   :  { %v4582_v58 = vadd.f32 %v5507_v32, %v1416_v23  ;;  %v1418_v24 = vpop.f32.mrb[27].mxu0 }
 0x281   :  { %v4583_v46 = vadd.f32 %v5509_v36, %v1418_v24  ;;  %v5606_v38 = vadd.f32 %v5566_v42, %v2096_v57 }
 0x283   :  { %v2097_v25 = vmax.f32 %v4582_v58, %v4583_v46  ;;  %v1422_v49 = vpop.f32.mrb[28].mxu0 }
 0x284   :  { %v4584_v34 = vadd.f32 %v5511_v17, %v1422_v49  ;;  %v1424_v37 = vpop.f32.mrb[29].mxu0 }
 0x285   :  { %v5609_v29 = vadd.f32 %v5566_v42, %v2097_v25  ;;  %v4585_v40 = vadd.f32 %v5513_v18, %v1424_v37 }
 0x287   :  { %v2145_v41 = vmax.f32 %v5606_v38, %v5609_v29  ;;  %v2098_v32 = vmax.f32 %v4584_v34, %v4585_v40  ;;  %v1428_v51 = vpop.f32.mrb[30].mxu0 }
 0x288   :  { %v4586_v36 = vadd.f32 %v5515_v10, %v1428_v51  ;;  %v1430_v44 = vpop.f32.mrb[31].mxu0 }
 0x289   :  { %v4587_v4 = vadd.f32 %v5517_v13, %v1430_v44  ;;  %v5618_v22 = vadd.f32 %v5566_v42, %v2098_v32 }
 0x28b   :  { %v2099_v17 = vmax.f32 %v4586_v36, %v4587_v4  ;;  %v1434_v9 = vpop.f32.mrb[32].mxu0 }
 0x28c   :  { %v4588_v28 = vadd.f32 %v5519_v27, %v1434_v9  ;;  %v1436_v53 = vpop.f32.mrb[33].mxu0 }
 0x28d   :  { %v5621_v18 = vadd.f32 %v5566_v42, %v2099_v17  ;;  %v4589_v54 = vadd.f32 %v5521_v30, %v1436_v53 }
 0x28f   :  { %v2146_v39 = vmax.f32 %v5618_v22, %v5621_v18  ;;  %v2100_v10 = vmax.f32 %v4588_v28, %v4589_v54  ;;  %v1440_v43 = vpop.f32.mrb[34].mxu0 }
 0x290   :  { %v4590_v13 = vadd.f32 %v5523_v31, %v1440_v43  ;;  %v1442_v55 = vpop.f32.mrb[35].mxu0 }
 0x291   :  { %v4591_v62 = vadd.f32 %v5525_v33, %v1442_v55  ;;  %v5630_v57 = vadd.f32 %v5566_v42, %v2100_v10  ;;  %v5721_v56 = vmax.f32 %v2146_v39, 0.0  ;;  %v2565_v39 = vld [vmem:[#allocation8 + $0x240] sm:$0xff] }
 0x293   :  { %v2101_v27 = vmax.f32 %v4590_v13, %v4591_v62  ;;  %v1446_v11 = vpop.f32.mrb[36].mxu0 }
 0x294   :  { %v4592_v15 = vadd.f32 %v5527_v61, %v1446_v11  ;;  %v1448_v35 = vpop.f32.mrb[37].mxu0 }
 0x295   :  { %v5633_v30 = vadd.f32 %v5566_v42, %v2101_v27  ;;  %v4593_v23 = vadd.f32 %v5529_v7, %v1448_v35 }
 0x297   :  { %v2147_v58 = vmax.f32 %v5630_v57, %v5633_v30  ;;  %v2102_v31 = vmax.f32 %v4592_v15, %v4593_v23  ;;  %v1452_v24 = vpop.f32.mrb[38].mxu0  ;;  %v2771_v57 = vld [vmem:[#allocation8 + $0x358] sm:$0xff] }
 0x298   :  { %v4594_v33 = vadd.f32 %v5531_v1, %v1452_v24  ;;  %v1454_v46 = vpop.f32.mrb[39].mxu0 }
 0x299   :  { %v4595_v25 = vadd.f32 %v5533_v2, %v1454_v46  ;;  %v5642_v40 = vadd.f32 %v5566_v42, %v2102_v31  ;;  %v2354_v46 = vld [vmem:[#allocation8 + $0x100] sm:$0xff] }
 0x29b   :  { %v2103_v61 = vmax.f32 %v4594_v33, %v4595_v25  ;;  %v1458_v49 = vpop.f32.mrb[40].mxu0  ;;  %v2356_v25 = vld [vmem:[#allocation8 + $0x110] sm:$0xff] }
 0x29c   :  { %v4596_v34 = vadd.f32 %v5535_v8, %v1458_v49  ;;  %v1460_v37 = vpop.f32.mrb[41].mxu0  ;;  %v2359_v49 = vld [vmem:[#allocation8 + $0x128] sm:$0xff] }
 0x29d   :  { %v5645_v7 = vadd.f32 %v5566_v42, %v2103_v61  ;;  %v4597_v32 = vadd.f32 %v5537_v14, %v1460_v37 }
 0x29f   :  { %v2104_v51 = vmax.f32 %v4596_v34, %v4597_v32  ;;  %v1464_v36 = vpop.f32.mrb[42].mxu0  ;;  %v2148_v1 = vmax.f32 %v5642_v40, %v5645_v7  ;;  %v2361_v34 = vld [vmem:[#allocation8 + $0x138] sm:$0xff] }
 0x2a0   :  { %v4598_v2 = vadd.f32 %v5539_v48, %v1464_v36  ;;  %v1466_v44 = vpop.f32.mrb[43].mxu0  ;;  %v2974_v40 = vld [vmem:[#allocation8 + $0x458] sm:$0xff] }
 0x2a1   :  { %v4599_v4 = vadd.f32 %v5541_v59, %v1466_v44  ;;  %v5654_v53 = vadd.f32 %v5566_v42, %v2104_v51  ;;  %v4240_v51 = vpack.c.bf16 %v2356_v25, %v2354_v46  ;;  %v4242_v44 = vpack.c.bf16 %v2361_v34, %v2359_v49  ;;  %v2368_v49 = vld [vmem:[#allocation8 + $0x170] sm:$0xff]  ;;  %v2371_v34 = vld [vmem:[#allocation8 + $0x188] sm:$0xff] }
 0x2a3   :  { %v2105_v8 = vmax.f32 %v4598_v2, %v4599_v4  ;;  %v1470_v17 = vpop.f32.mrb[44].mxu0  ;;  %v2358_v4 = vld [vmem:[#allocation8 + $0x120] sm:$0xff] }
 0x2a4   :  { %v4600_v9 = vadd.f32 %v5543_v60, %v1470_v17  ;;  %v1472_v28 = vpop.f32.mrb[45].mxu0 }
 0x2a5   :  { %v5657_v14 = vadd.f32 %v5566_v42, %v2105_v8  ;;  %v4601_v54 = vadd.f32 %v5545_v12, %v1472_v28  ;;  %v2360_v8 = vld [vmem:[#allocation8 + $0x130] sm:$0xff]  ;;  %v2365_v28 = vld [vmem:[#allocation8 + $0x158] sm:$0xff] }
 0x2a7   :  { %v2106_v10 = vmax.f32 %v4600_v9, %v4601_v54  ;;  %v1476_v43 = vpop.f32.mrb[46].mxu0  ;;  %v2149_v48 = vmax.f32 %v5654_v53, %v5657_v14  ;;  %v2363_v9 = vld [vmem:[#allocation8 + $0x148] sm:$0xff] }
 0x2a8   :  { %v4602_v59 = vadd.f32 %v5547_v3, %v1476_v43  ;;  %v1478_v13 = vpop.f32.mrb[47].mxu0 }
 0x2a9   :  { %v4603_v55 = vadd.f32 %v5549_v6, %v1478_v13  ;;  %v5665_v11 = vadd.f32 %v5566_v42, %v2106_v10  ;;  %v4244_v10 = vpack.c.bf16 %v2360_v8, %v2358_v4  ;;  %v5693_v4 = vmax.f32 %v2142_v50, 0.0  ;;  %v2380_v50 = vld [vmem:[#allocation8 + $0x1d0] sm:$0xff] }
 0x2ab   :  { %v2107_v60 = vmax.f32 %v4602_v59, %v4603_v55  ;;  %v1749_v62 = vpop.f32.mrb[0].mxu0  ;;  %v4246_v55 = vpack.c.bf16 %v2365_v28, %v2363_v9  ;;  %v2376_v9 = vld [vmem:[#allocation8 + $0x1b0] sm:$0xff]  ;;  %v2379_v28 = vld [vmem:[#allocation8 + $0x1c8] sm:$0xff] }
 0x2ac   :  { %v1751_v27 = vpop.f32.mrb[1].mxu0 }
 0x2ad   :  { %v5668_v15 = vadd.f32 %v5566_v42, %v2107_v60  ;;  %v2084_v12 = vmax.f32 %v1749_v62, %v1751_v27  ;;  %v2362_v60 = vld [vmem:[#allocation8 + $0x140] sm:$0xff]  ;;  %v2364_v62 = vld [vmem:[#allocation8 + $0x150] sm:$0xff] }
 0x2af   :  { %v1755_v35 = vpop.f32.mrb[2].mxu0  ;;  %v2150_v23 = vmax.f32 %v5665_v11, %v5668_v15  ;;  %v2115_v3 = vadd.f32 %v5566_v42, %v2084_v12  ;;  %v2367_v12 = vld [vmem:[#allocation8 + $0x168] sm:$0xff]  ;;  %v3266_v15 = vld [vmem:[#allocation10 + $0x1b8] sm:$0xff] }
 0x2b0   :  { %v1757_v31 = vpop.f32.mrb[3].mxu0  ;;  %v3264_v11 = vld [vmem:[#allocation10 + $0x1a8] sm:$0xff] }
 0x2b1   :  { %v2085_v24 = vmax.f32 %v1755_v35, %v1757_v31  ;;  %v2369_v35 = vld [vmem:[#allocation8 + $0x178] sm:$0xff] }
 0x2b2   :  { %v4250_v25 = vpack.c.bf16 %v2369_v35, %v2367_v12  ;;  %v5714_v35 = vmax.f32 %v2145_v41, 0.0  ;;  %v2561_v41 = vld [vmem:[#allocation8 + $0x220] sm:$0xff] }
 0x2b3   :  { %v2116_v6 = vadd.f32 %v5566_v42, %v2085_v24  ;;  %v1761_v33 = vpop.f32.mrb[4].mxu0 }
 0x2b4   :  { %v1763_v61 = vpop.f32.mrb[5].mxu0 }
 0x2b5   :  { %v2139_v37 = vmax.f32 %v2115_v3, %v2116_v6  ;;  %v2086_v32 = vmax.f32 %v1761_v33, %v1763_v61  ;;  %v4248_v3 = vpack.c.bf16 %v2364_v62, %v2362_v60  ;;  %v2120_v6 = vadd.f32 %v5566_v42, %v2089_v16  ;;  %v2366_v61 = vld [vmem:[#allocation8 + $0x160] sm:$0xff]  ;;  %v2558_v62 = vld [vmem:[#allocation8 + $0x208] sm:$0xff] }
 0x2b6   :  { %v2370_v16 = vld [vmem:[#allocation8 + $0x180] sm:$0xff]  ;;  %v5707_v60 = vmax.f32 %v2144_v20, 0.0 }
 0x2b7   :  { %v2151_v36 = vmax.f32 %v2139_v37, 0.0  ;;  %v1767_v2 = vpop.f32.mrb[6].mxu0  ;;  %v2117_v43 = vadd.f32 %v5566_v42, %v2086_v32  ;;  %v2373_v37 = vld [vmem:[#allocation8 + $0x198] sm:$0xff]  ;;  %v2557_v20 = vld [vmem:[#allocation8 + $0x200] sm:$0xff] }
 0x2b8   :  { %v1769_v17 = vpop.f32.mrb[7].mxu0  ;;  %v4254_v45 = vpack.c.bf16 %v2373_v37, %v2371_v34  ;;  %v2572_v34 = vld [vmem:[#allocation8 + $0x278] sm:$0xff] }
 0x2b9   :  { %v2087_v54 = vmax.f32 %v1767_v2, %v1769_v17  ;;  %2280 = vmatmul.mubr.f32.vlgmr.msra.gmra.mrb[38].mxu1 %v2151_v36  ;;  %v2375_v36 = vld [vmem:[#allocation8 + $0x1a8] sm:$0xff]  ;;  %v2377_v2 = vld [vmem:[#allocation8 + $0x1b8] sm:$0xff]  ;;  %v2374_v17 = vld [vmem:[#allocation8 + $0x1a0] sm:$0xff] }
 0x2ba   :  { %4241 = vmatpush1.bf16.msra.mxu1 %v4240_v51  ;;  %2285 = vmatprep.mubr.f32.mxu1 %v4911_v0  ;;  %v4252_v51 = vpack.c.bf16 %v2368_v49, %v2366_v61  ;;  %v4258_v8 = vpack.c.bf16 %v2377_v2, %v2375_v36  ;;  %v2567_v61 = vld [vmem:[#allocation8 + $0x250] sm:$0xff]  ;;  %v2570_v49 = vld [vmem:[#allocation8 + $0x268] sm:$0xff]  ;;  %v2573_v2 = vld [vmem:[#allocation8 + $0x280] sm:$0xff] }
 0x2bb   :  { %v2118_v59 = vadd.f32 %v5566_v42, %v2087_v54  ;;  %v1773_v13 = vpop.f32.mrb[8].mxu0  ;;  %4243 = vmatprep.subr.bf16.mxu1 %v4242_v44  ;;  %v2381_v54 = vld [vmem:[#allocation8 + $0x1d8] sm:$0xff]  ;;  %v4280_v37 = vpack.c.bf16 %v2567_v61, %v2565_v39  ;;  %v2769_v39 = vld [vmem:[#allocation8 + $0x348] sm:$0xff]  ;;  %v2768_v61 = vld [vmem:[#allocation8 + $0x340] sm:$0xff] }
 0x2bc   :  { %v1775_v27 = vpop.f32.mrb[9].mxu0  ;;  %v4262_v26 = vpack.c.bf16 %v2381_v54, %v2379_v28  ;;  %v2577_v54 = vld [vmem:[#allocation8 + $0x2a0] sm:$0xff] }
 0x2bd   :  { %v2088_v31 = vmax.f32 %v1773_v13, %v1775_v27  ;;  %v2140_v24 = vmax.f32 %v2117_v43, %v2118_v59  ;;  %v5700_v43 = vmax.f32 %v2143_v19, 0.0  ;;  %v2383_v59 = vld [vmem:[#allocation8 + $0x1e8] sm:$0xff]  ;;  %v2385_v13 = vld [vmem:[#allocation8 + $0x1f8] sm:$0xff]  ;;  %v2384_v19 = vld [vmem:[#allocation8 + $0x1f0] sm:$0xff] }
 0x2be   :  { %4245 = vmatpush1.bf16.msra.mxu1 %v4244_v10  ;;  %v4260_v10 = vpack.c.bf16 %v2376_v9, %v2374_v17  ;;  %v4266_v5 = vpack.c.bf16 %v2385_v13, %v2383_v59  ;;  %v2560_v27 = vld [vmem:[#allocation8 + $0x218] sm:$0xff]  ;;  %v4268_v12 = vpack.c.bf16 %v2384_v19, %v2382_v52  ;;  %v2581_v13 = vld [vmem:[#allocation8 + $0x2c0] sm:$0xff] }
 0x2bf   :  { %v2119_v33 = vadd.f32 %v5566_v42, %v2088_v31  ;;  %v5682_v46 = vmax.f32 %v2140_v24, 0.0  ;;  %4247 = vmatprep.subr.bf16.mxu1 %v4246_v55  ;;  %v2372_v42 = vld [vmem:[#allocation8 + $0x190] sm:$0xff]  ;;  %v4264_v55 = vpack.c.bf16 %v2380_v50, %v2378_v47  ;;  %v4270_v63 = vpack.c.bf16 %v2560_v27, %v2558_v62  ;;  %v2562_v24 = vld [vmem:[#allocation8 + $0x228] sm:$0xff]  ;;  %v2580_v17 = vld [vmem:[#allocation8 + $0x2b8] sm:$0xff] }
 0x2c0   :  { %v4256_v44 = vpack.c.bf16 %v2372_v42, %v2370_v16  ;;  %v2559_v31 = vld [vmem:[#allocation8 + $0x210] sm:$0xff]  ;;  %v2576_v16 = vld [vmem:[#allocation8 + $0x298] sm:$0xff]  ;;  %v2585_v27 = vld [vmem:[#allocation8 + $0x2e0] sm:$0xff] }
 0x2c1   :  { %2286 = vmatmul.mubr.f32.gmra.mrb[40].mxu1 %v5682_v46  ;;  %v2141_v32 = vmax.f32 %v2119_v33, %v2120_v6  ;;  %v4272_v38 = vpack.c.bf16 %v2559_v31, %v2557_v20  ;;  %v2563_v6 = vld [vmem:[#allocation8 + $0x230] sm:$0xff]  ;;  %v2566_v33 = vld [vmem:[#allocation8 + $0x248] sm:$0xff]  ;;  %v2584_v47 = vld [vmem:[#allocation8 + $0x2d8] sm:$0xff] }
 0x2c2   :  { %2291 = vmatprep.mubr.f32.mxu1 %v4911_v0  ;;  %4249 = vmatpush1.bf16.msra.mxu1 %v4248_v3  ;;  %v2564_v3 = vld [vmem:[#allocation8 + $0x238] sm:$0xff]  ;;  %v4276_v22 = vpack.c.bf16 %v2563_v6, %v2561_v41  ;;  %v2765_v41 = vld [vmem:[#allocation8 + $0x328] sm:$0xff] }
 0x2c3   :  { %v5686_v21 = vmax.f32 %v2141_v32, 0.0  ;;  %4251 = vmatprep.subr.bf16.mxu1 %v4250_v25  ;;  %v4274_v29 = vpack.c.bf16 %v2564_v3, %v2562_v24  ;;  %v2568_v25 = vld [vmem:[#allocation8 + $0x258] sm:$0xff]  ;;  %v4282_v32 = vpack.c.bf16 %v2572_v34, %v2570_v49  ;;  %v5742_v24 = vmax.f32 %v2147_v58, 0.0  ;;  %v2770_v49 = vld [vmem:[#allocation8 + $0x350] sm:$0xff]  ;;  %v2773_v34 = vld [vmem:[#allocation8 + $0x368] sm:$0xff] }
 0x2c4   :  { %v4278_v18 = vpack.c.bf16 %v2568_v25, %v2566_v33  ;;  %v2588_v52 = vld [vmem:[#allocation8 + $0x2f8] sm:$0xff]  ;;  %v4310_v58 = vpack.c.bf16 %v2771_v57, %v2769_v39  ;;  %v2969_v39 = vld [vmem:[#allocation8 + $0x430] sm:$0xff]  ;;  %v2972_v57 = vld [vmem:[#allocation8 + $0x448] sm:$0xff] }
 0x2c5   :  { %2292 = vmatmul.mubr.f32.gmra.mrb[42].mxu1 %v5686_v21  ;;  %v2763_v20 = vld [vmem:[#allocation8 + $0x318] sm:$0xff] }
 0x2c6   :  { %2297 = vmatprep.mubr.f32.mxu1 %v4911_v0  ;;  %4253 = vmatpush1.bf16.msra.mxu1 %v4252_v51  ;;  %v2569_v51 = vld [vmem:[#allocation8 + $0x260] sm:$0xff]  ;;  %v2767_v6 = vld [vmem:[#allocation8 + $0x338] sm:$0xff] }
 0x2c7   :  { %4255 = vmatprep.subr.bf16.mxu1 %v4254_v45  ;;  %v2574_v45 = vld [vmem:[#allocation8 + $0x288] sm:$0xff]  ;;  %v4306_v25 = vpack.c.bf16 %v2767_v6, %v2765_v41  ;;  %v2965_v41 = vld [vmem:[#allocation8 + $0x410] sm:$0xff] }
 0x2c8   :  { %v4286_v36 = vpack.c.bf16 %v2576_v16, %v2574_v45  ;;  %v2777_v45 = vld [vmem:[#allocation8 + $0x388] sm:$0xff]  ;;  %v2779_v16 = vld [vmem:[#allocation8 + $0x398] sm:$0xff] }
 0x2c9   :  { %2298 = vmatmul.mubr.f32.gmra.mrb[44].mxu1 %v5693_v4  ;;  %v2968_v6 = vld [vmem:[#allocation8 + $0x428] sm:$0xff] }
 0x2ca   :  { %2303 = vmatprep.mubr.f32.mxu1 %v4911_v0  ;;  %4257 = vmatpush1.bf16.msra.mxu1 %v4256_v44  ;;  %v2575_v44 = vld [vmem:[#allocation8 + $0x290] sm:$0xff] }
 0x2cb   :  { %4259 = vmatprep.subr.bf16.mxu1 %v4258_v8  ;;  %v2578_v8 = vld [vmem:[#allocation8 + $0x2a8] sm:$0xff]  ;;  %v4288_v9 = vpack.c.bf16 %v2575_v44, %v2573_v2  ;;  %v2776_v2 = vld [vmem:[#allocation8 + $0x380] sm:$0xff]  ;;  %v2778_v44 = vld [vmem:[#allocation8 + $0x390] sm:$0xff] }
 0x2cc   :  { %v4290_v28 = vpack.c.bf16 %v2580_v17, %v2578_v8  ;;  %v2781_v8 = vld [vmem:[#allocation8 + $0x3a8] sm:$0xff]  ;;  %v2783_v17 = vld [vmem:[#allocation8 + $0x3b8] sm:$0xff] }
 0x2cd   :  { %2304 = vmatmul.mubr.f32.gmra.mrb[46].mxu1 %v5700_v43 }
 0x2ce   :  { %2309 = vmatprep.mubr.f32.mxu1 %v4911_v0  ;;  %4261 = vmatpush1.bf16.msra.mxu1 %v4260_v10  ;;  %v2579_v10 = vld [vmem:[#allocation8 + $0x2b0] sm:$0xff] }
 0x2cf   :  { %4263 = vmatprep.subr.bf16.mxu1 %v4262_v26  ;;  %v2582_v26 = vld [vmem:[#allocation8 + $0x2c8] sm:$0xff]  ;;  %v4292_v50 = vpack.c.bf16 %v2579_v10, %v2577_v54  ;;  %v2780_v54 = vld [vmem:[#allocation8 + $0x3a0] sm:$0xff]  ;;  %v2782_v10 = vld [vmem:[#allocation8 + $0x3b0] sm:$0xff] }
 0x2d0   :  { %v4294_v59 = vpack.c.bf16 %v2584_v47, %v2582_v26  ;;  %v2785_v26 = vld [vmem:[#allocation8 + $0x3c8] sm:$0xff]  ;;  %v2787_v47 = vld [vmem:[#allocation8 + $0x3d8] sm:$0xff] }
 0x2d1   :  { %2310 = vmatmul.mubr.f32.gmra.mrb[48].mxu1 %v5707_v60 }
 0x2d2   :  { %2315 = vmatprep.mubr.f32.mxu1 %v4911_v0  ;;  %4265 = vmatpush1.bf16.msra.mxu1 %v4264_v55  ;;  %v2583_v55 = vld [vmem:[#allocation8 + $0x2d0] sm:$0xff] }
 0x2d3   :  { %4267 = vmatprep.subr.bf16.mxu1 %v4266_v5  ;;  %v2586_v5 = vld [vmem:[#allocation8 + $0x2e8] sm:$0xff]  ;;  %v4296_v19 = vpack.c.bf16 %v2583_v55, %v2581_v13  ;;  %v2784_v13 = vld [vmem:[#allocation8 + $0x3c0] sm:$0xff]  ;;  %v2786_v55 = vld [vmem:[#allocation8 + $0x3d0] sm:$0xff] }
 0x2d4   :  { %v4298_v62 = vpack.c.bf16 %v2588_v52, %v2586_v5  ;;  %v2789_v5 = vld [vmem:[#allocation8 + $0x3e8] sm:$0xff]  ;;  %v2791_v52 = vld [vmem:[#allocation8 + $0x3f8] sm:$0xff] }
 0x2d5   :  { %2316 = vmatmul.mubr.f32.gmra.mrb[50].mxu1 %v5714_v35 }
 0x2d6   :  { %2321 = vmatprep.mubr.f32.mxu1 %v4911_v0  ;;  %4269 = vmatpush1.bf16.msra.mxu1 %v4268_v12  ;;  %v2587_v12 = vld [vmem:[#allocation8 + $0x2f0] sm:$0xff] }
 0x2d7   :  { %4271 = vmatprep.subr.bf16.mxu1 %v4270_v63  ;;  %v2761_v63 = vld [vmem:[#allocation8 + $0x308] sm:$0xff]  ;;  %v4300_v31 = vpack.c.bf16 %v2587_v12, %v2585_v27  ;;  %v2788_v27 = vld [vmem:[#allocation8 + $0x3e0] sm:$0xff]  ;;  %v2790_v12 = vld [vmem:[#allocation8 + $0x3f0] sm:$0xff] }
 0x2d8   :  { %v4302_v3 = vpack.c.bf16 %v2763_v20, %v2761_v63  ;;  %v2964_v63 = vld [vmem:[#allocation8 + $0x408] sm:$0xff]  ;;  %v2966_v20 = vld [vmem:[#allocation8 + $0x418] sm:$0xff] }
 0x2d9   :  { %2322 = vmatmul.mubr.f32.gmra.mrb[52].mxu1 %v5721_v56 }
 0x2da   :  { %2450 = vmatprep.mubr.f32.mxu1 %v4911_v0 }
 0x2dd   :  { %2451 = vmatmul.mubr.f32.vlgmr.msra.gmra.mrb[38].mxu1 %v5682_v46  ;;  %v2571_v46 = vld [vmem:[#allocation8 + $0x270] sm:$0xff] }
 0x2de   :  { %4273 = vmatpush1.bf16.msra.mxu1 %v4272_v38  ;;  %2456 = vmatprep.mubr.f32.mxu1 %v4911_v0  ;;  %v4284_v42 = vpack.c.bf16 %v2571_v46, %v2569_v51  ;;  %v2760_v38 = vld [vmem:[#allocation8 + $0x300] sm:$0xff] }
 0x2df   :  { %4275 = vmatprep.subr.bf16.mxu1 %v4274_v29  ;;  %v2762_v29 = vld [vmem:[#allocation8 + $0x310] sm:$0xff]  ;;  %v2772_v46 = vld [vmem:[#allocation8 + $0x360] sm:$0xff] }
 0x2e0   :  { %v4304_v33 = vpack.c.bf16 %v2762_v29, %v2760_v38  ;;  %v4334_v38 = vpack.c.bf16 %v2966_v20, %v2964_v63  ;;  %v2963_v29 = vld [vmem:[#allocation8 + $0x400] sm:$0xff]  ;;  %v2161_v63 = vmax.f32 %v2149_v48, 0.0 }
 0x2e1   :  { %2457 = vmatmul.mubr.f32.gmra.mrb[40].mxu1 %v5686_v21  ;;  %v3251_v48 = vld [vmem:[#allocation10 + $0x140] sm:$0xff] }
 0x2e2   :  { %4277 = vmatpush1.bf16.msra.mxu1 %v4276_v22  ;;  %2462 = vmatprep.mubr.f32.mxu1 %v4911_v0  ;;  %v2764_v22 = vld [vmem:[#allocation8 + $0x320] sm:$0xff] }
 0x2e3   :  { %4279 = vmatprep.subr.bf16.mxu1 %v4278_v18  ;;  %v2766_v18 = vld [vmem:[#allocation8 + $0x330] sm:$0xff] }
 0x2e4   :  { %v4308_v30 = vpack.c.bf16 %v2766_v18, %v2764_v22  ;;  %v2967_v18 = vld [vmem:[#allocation8 + $0x420] sm:$0xff] }
 0x2e5   :  { %2463 = vmatmul.mubr.f32.gmra.mrb[42].mxu1 %v5693_v4  ;;  %v4340_v7 = vpack.c.bf16 %v2969_v39, %v2967_v18  ;;  %v3252_v18 = vld [vmem:[#allocation10 + $0x148] sm:$0xff]  ;;  %v3254_v39 = vld [vmem:[#allocation10 + $0x158] sm:$0xff] }
 0x2e6   :  { %4281 = vmatpush1.bf16.msra.mxu1 %v4280_v37  ;;  %2468 = vmatprep.mubr.f32.mxu1 %v4911_v0  ;;  %v2775_v37 = vld [vmem:[#allocation8 + $0x378] sm:$0xff]  ;;  %v4374_v14 = vpack.c.bf16 %v3254_v39, %v3252_v18  ;;  %v3213_v18 = vld [vmem:[#allocation10 + $0x28] sm:$0xff] }
 0x2e7   :  { %4283 = vmatprep.subr.bf16.mxu1 %v4282_v32  ;;  %v4312_v32 = vpack.c.bf16 %v2770_v49, %v2768_v61  ;;  %v4314_v51 = vpack.c.bf16 %v2775_v37, %v2773_v34  ;;  %v2976_v61 = vld [vmem:[#allocation8 + $0x468] sm:$0xff]  ;;  %v2978_v49 = vld [vmem:[#allocation8 + $0x478] sm:$0xff] }
 0x2e8   :  { %v4346_v37 = vpack.c.bf16 %v2978_v49, %v2976_v61  ;;  %v3259_v61 = vld [vmem:[#allocation10 + $0x180] sm:$0xff]  ;;  %v3261_v49 = vld [vmem:[#allocation10 + $0x190] sm:$0xff]  ;;  %v3215_v39 = vld [vmem:[#allocation10 + $0x38] sm:$0xff] }
 0x2e9   :  { %2469 = vmatmul.mubr.f32.gmra.mrb[44].mxu1 %v5700_v43 }
 0x2ea   :  { %4285 = vmatpush1.bf16.msra.mxu1 %v4284_v42  ;;  %2474 = vmatprep.mubr.f32.mxu1 %v4911_v0 }
 0x2eb   :  { %4287 = vmatprep.subr.bf16.mxu1 %v4286_v36  ;;  %v4318_v36 = vpack.c.bf16 %v2779_v16, %v2777_v45  ;;  %v2979_v16 = vld [vmem:[#allocation8 + $0x480] sm:$0xff] }
 0x2ed   :  { %2475 = vmatmul.mubr.f32.gmra.mrb[46].mxu1 %v5707_v60 }
 0x2ee   :  { %4289 = vmatpush1.bf16.msra.mxu1 %v4288_v9  ;;  %2480 = vmatprep.mubr.f32.mxu1 %v4911_v0  ;;  %v4320_v9 = vpack.c.bf16 %v2778_v44, %v2776_v2  ;;  %v2986_v2 = vld [vmem:[#allocation8 + $0x4b8] sm:$0xff] }
 0x2ef   :  { %4291 = vmatprep.subr.bf16.mxu1 %v4290_v28  ;;  %v4322_v28 = vpack.c.bf16 %v2783_v17, %v2781_v8  ;;  %v2983_v17 = vld [vmem:[#allocation8 + $0x4a0] sm:$0xff] }
 0x2f1   :  { %2481 = vmatmul.mubr.f32.gmra.mrb[48].mxu1 %v5714_v35 }
 0x2f2   :  { %4293 = vmatpush1.bf16.msra.mxu1 %v4292_v50  ;;  %2486 = vmatprep.mubr.f32.mxu1 %v4911_v0  ;;  %v4324_v50 = vpack.c.bf16 %v2782_v10, %v2780_v54  ;;  %v2990_v54 = vld [vmem:[#allocation8 + $0x4d8] sm:$0xff] }
 0x2f3   :  { %4295 = vmatprep.subr.bf16.mxu1 %v4294_v59  ;;  %v4326_v59 = vpack.c.bf16 %v2787_v47, %v2785_v26  ;;  %v2987_v47 = vld [vmem:[#allocation8 + $0x4c0] sm:$0xff] }
 0x2f5   :  { %2487 = vmatmul.mubr.f32.gmra.mrb[50].mxu1 %v5721_v56 }
 0x2f6   :  { %4297 = vmatpush1.bf16.msra.mxu1 %v4296_v19  ;;  %2492 = vmatprep.mubr.f32.mxu1 %v4911_v0  ;;  %v4328_v19 = vpack.c.bf16 %v2786_v55, %v2784_v13  ;;  %v2994_v13 = vld [vmem:[#allocation8 + $0x4f8] sm:$0xff] }
 0x2f7   :  { %4299 = vmatprep.subr.bf16.mxu1 %v4298_v62  ;;  %v4330_v62 = vpack.c.bf16 %v2791_v52, %v2789_v5  ;;  %v2991_v52 = vld [vmem:[#allocation8 + $0x4e0] sm:$0xff] }
 0x2f9   :  { %2493 = vmatmul.mubr.f32.gmra.mrb[52].mxu1 %v5742_v24 }
 0x2fa   :  { %4301 = vmatpush1.bf16.msra.mxu1 %v4300_v31  ;;  %2653 = vmatprep.mubr.f32.mxu1 %v4911_v0  ;;  %v4332_v31 = vpack.c.bf16 %v2790_v12, %v2788_v27  ;;  %v3246_v27 = vld [vmem:[#allocation10 + $0x118] sm:$0xff] }
 0x2fb   :  { %4303 = vmatprep.subr.bf16.mxu1 %v4302_v3  ;;  %v5763_v3 = vmax.f32 %v2148_v1, 0.0  ;;  %v4342_v1 = vpack.c.bf16 %v2974_v40, %v2972_v57  ;;  %v3253_v57 = vld [vmem:[#allocation10 + $0x150] sm:$0xff] }
 0x2fc   :  { %v4376_v40 = vpack.c.bf16 %v3253_v57, %v3251_v48 }
 0x2fd   :  { %2654 = vmatmul.mubr.f32.vlgmr.msra.gmra.mrb[38].mxu1 %v5686_v21  ;;  %v2774_v21 = vld [vmem:[#allocation8 + $0x370] sm:$0xff] }
 0x2fe   :  { %4305 = vmatpush1.bf16.msra.mxu1 %v4304_v33  ;;  %2659 = vmatprep.mubr.f32.mxu1 %v4911_v0  ;;  %v4316_v42 = vpack.c.bf16 %v2774_v21, %v2772_v46  ;;  %v2970_v33 = vld [vmem:[#allocation8 + $0x438] sm:$0xff] }
 0x2ff   :  { %4307 = vmatprep.subr.bf16.mxu1 %v4306_v25  ;;  %v4336_v25 = vpack.c.bf16 %v2965_v41, %v2963_v29  ;;  %v4338_v22 = vpack.c.bf16 %v2970_v33, %v2968_v6  ;;  %v2982_v46 = vld [vmem:[#allocation8 + $0x498] sm:$0xff]  ;;  %v3248_v29 = vld [vmem:[#allocation10 + $0x128] sm:$0xff] }
 0x300   :  { %v3250_v41 = vld [vmem:[#allocation10 + $0x138] sm:$0xff] }
 0x301   :  { %2660 = vmatmul.mubr.f32.gmra.mrb[40].mxu1 %v5693_v4  ;;  %v4370_v33 = vpack.c.bf16 %v3250_v41, %v3248_v29 }
 0x302   :  { %4309 = vmatpush1.bf16.msra.mxu1 %v4308_v30  ;;  %2665 = vmatprep.mubr.f32.mxu1 %v4911_v0  ;;  %v2971_v30 = vld [vmem:[#allocation8 + $0x440] sm:$0xff] }
 0x303   :  { %4311 = vmatprep.subr.bf16.mxu1 %v4310_v58  ;;  %v2973_v58 = vld [vmem:[#allocation8 + $0x450] sm:$0xff] }
 0x304   :  { %v4344_v34 = vpack.c.bf16 %v2973_v58, %v2971_v30  ;;  %v3262_v30 = vld [vmem:[#allocation10 + $0x198] sm:$0xff] }
 0x305   :  { %2666 = vmatmul.mubr.f32.gmra.mrb[42].mxu1 %v5700_v43 }
 0x306   :  { %4313 = vmatpush1.bf16.msra.mxu1 %v4312_v32  ;;  %2671 = vmatprep.mubr.f32.mxu1 %v4911_v0  ;;  %v2975_v32 = vld [vmem:[#allocation8 + $0x460] sm:$0xff] }
 0x307   :  { %4315 = vmatprep.subr.bf16.mxu1 %v4314_v51  ;;  %v2980_v51 = vld [vmem:[#allocation8 + $0x488] sm:$0xff] }
 0x308   :  { %v4350_v45 = vpack.c.bf16 %v2982_v46, %v2980_v51  ;;  %v3268_v51 = vld [vmem:[#allocation10 + $0x1c8] sm:$0xff]  ;;  %v3270_v46 = vld [vmem:[#allocation10 + $0x1d8] sm:$0xff] }
 0x309   :  { %2672 = vmatmul.mubr.f32.gmra.mrb[44].mxu1 %v5707_v60 }
 0x30a   :  { %4317 = vmatpush1.bf16.msra.mxu1 %v4316_v42  ;;  %2677 = vmatprep.mubr.f32.mxu1 %v4911_v0  ;;  %v2981_v42 = vld [vmem:[#allocation8 + $0x490] sm:$0xff] }
 0x30b   :  { %4319 = vmatprep.subr.bf16.mxu1 %v4318_v36  ;;  %v2984_v36 = vld [vmem:[#allocation8 + $0x4a8] sm:$0xff]  ;;  %v4352_v44 = vpack.c.bf16 %v2981_v42, %v2979_v16  ;;  %v3269_v16 = vld [vmem:[#allocation10 + $0x1d0] sm:$0xff] }
 0x30c   :  { %v4354_v8 = vpack.c.bf16 %v2986_v2, %v2984_v36  ;;  %v3272_v36 = vld [vmem:[#allocation10 + $0x1e8] sm:$0xff]  ;;  %v3274_v2 = vld [vmem:[#allocation10 + $0x1f8] sm:$0xff] }
 0x30d   :  { %2678 = vmatmul.mubr.f32.gmra.mrb[46].mxu1 %v5714_v35 }
 0x30e   :  { %4321 = vmatpush1.bf16.msra.mxu1 %v4320_v9  ;;  %2683 = vmatprep.mubr.f32.mxu1 %v4911_v0  ;;  %v2985_v9 = vld [vmem:[#allocation8 + $0x4b0] sm:$0xff] }
 0x30f   :  { %4323 = vmatprep.subr.bf16.mxu1 %v4322_v28  ;;  %v2988_v28 = vld [vmem:[#allocation8 + $0x4c8] sm:$0xff]  ;;  %v4356_v10 = vpack.c.bf16 %v2985_v9, %v2983_v17  ;;  %v3273_v17 = vld [vmem:[#allocation10 + $0x1f0] sm:$0xff] }
 0x310   :  { %v4358_v26 = vpack.c.bf16 %v2990_v54, %v2988_v28  ;;  %v3209_v28 = vld [vmem:[#allocation10 + $0x8] sm:$0xff]  ;;  %v3211_v54 = vld [vmem:[#allocation10 + $0x18] sm:$0xff] }
 0x311   :  { %2684 = vmatmul.mubr.f32.gmra.mrb[48].mxu1 %v5721_v56 }
 0x312   :  { %4325 = vmatpush1.bf16.msra.mxu1 %v4324_v50  ;;  %2689 = vmatprep.mubr.f32.mxu1 %v4911_v0  ;;  %v2989_v50 = vld [vmem:[#allocation8 + $0x4d0] sm:$0xff] }
 0x313   :  { %4327 = vmatprep.subr.bf16.mxu1 %v4326_v59  ;;  %v2992_v59 = vld [vmem:[#allocation8 + $0x4e8] sm:$0xff]  ;;  %v4360_v55 = vpack.c.bf16 %v2989_v50, %v2987_v47 }
 0x314   :  { %v4362_v5 = vpack.c.bf16 %v2994_v13, %v2992_v59  ;;  %v3956_v13 = vld [vmem:[%s5996_s4] ss:$0 sm:$0xff] }
 0x315   :  { %2690 = vmatmul.mubr.f32.gmra.mrb[50].mxu1 %v5742_v24 }
 0x316   :  { %4329 = vmatpush1.bf16.msra.mxu1 %v4328_v19  ;;  %2695 = vmatprep.mubr.f32.mxu1 %v4911_v0  ;;  %v2993_v19 = vld [vmem:[#allocation8 + $0x4f0] sm:$0xff] }
 0x317   :  { %4331 = vmatprep.subr.bf16.mxu1 %v4330_v62  ;;  %v3244_v62 = vld [vmem:[#allocation10 + $0x108] sm:$0xff]  ;;  %v4364_v12 = vpack.c.bf16 %v2993_v19, %v2991_v52 }
 0x318   :  { %v4366_v20 = vpack.c.bf16 %v3246_v27, %v3244_v62 }
 0x319   :  { %2696 = vmatmul.mubr.f32.gmra.mrb[52].mxu1 %v5763_v3 }
 0x31a   :  { %4333 = vmatpush1.bf16.msra.mxu1 %v4332_v31  ;;  %2856 = vmatprep.mubr.f32.mxu1 %v4911_v0  ;;  %v3243_v31 = vld [vmem:[#allocation10 + $0x100] sm:$0xff] }
 0x31b   :  { %4335 = vmatprep.subr.bf16.mxu1 %v4334_v38  ;;  %v3245_v38 = vld [vmem:[#allocation10 + $0x110] sm:$0xff] }
 0x31c   :  { %v4368_v6 = vpack.c.bf16 %v3245_v38, %v3243_v31 }
 0x31d   :  { %2857 = vmatmul.mubr.f32.vlgmr.msra.gmra.mrb[38].mxu1 %v5693_v4  ;;  %v2977_v4 = vld [vmem:[#allocation8 + $0x470] sm:$0xff] }
 0x31e   :  { %4337 = vmatpush1.bf16.msra.mxu1 %v4336_v25  ;;  %2862 = vmatprep.mubr.f32.mxu1 %v4911_v0  ;;  %v4348_v21 = vpack.c.bf16 %v2977_v4, %v2975_v32  ;;  %v3247_v25 = vld [vmem:[#allocation10 + $0x120] sm:$0xff]  ;;  %v3265_v32 = vld [vmem:[#allocation10 + $0x1b0] sm:$0xff] }
 0x31f   :  { %4339 = vmatprep.subr.bf16.mxu1 %v4338_v22  ;;  %v3249_v22 = vld [vmem:[#allocation10 + $0x130] sm:$0xff] }
 0x320   :  { %v4372_v53 = vpack.c.bf16 %v3249_v22, %v3247_v25  ;;  %v3210_v25 = vld [vmem:[#allocation10 + $0x10] sm:$0xff] }
 0x321   :  { %2863 = vmatmul.mubr.f32.gmra.mrb[40].mxu1 %v5700_v43 }
 0x322   :  { %4341 = vmatpush1.bf16.msra.mxu1 %v4340_v7  ;;  %2868 = vmatprep.mubr.f32.mxu1 %v4911_v0  ;;  %v3257_v7 = vld [vmem:[#allocation10 + $0x170] sm:$0xff] }
 0x323   :  { %4343 = vmatprep.subr.bf16.mxu1 %v4342_v1 }
 0x325   :  { %2869 = vmatmul.mubr.f32.gmra.mrb[42].mxu1 %v5707_v60 }
 0x326   :  { %4345 = vmatpush1.bf16.msra.mxu1 %v4344_v34  ;;  %2874 = vmatprep.mubr.f32.mxu1 %v4911_v0  ;;  %v4384_v34 = vpack.c.bf16 %v3261_v49, %v3259_v61 }
 0x327   :  { %4347 = vmatprep.subr.bf16.mxu1 %v4346_v37  ;;  %v3263_v37 = vld [vmem:[#allocation10 + $0x1a0] sm:$0xff] }
 0x328   :  { %v4388_v4 = vpack.c.bf16 %v3265_v32, %v3263_v37  ;;  %v3223_v37 = vld [vmem:[#allocation10 + $0x78] sm:$0xff] }
 0x329   :  { %2875 = vmatmul.mubr.f32.gmra.mrb[44].mxu1 %v5714_v35 }
 0x32a   :  { %4349 = vmatpush1.bf16.msra.mxu1 %v4348_v21  ;;  %2880 = vmatprep.mubr.f32.mxu1 %v4911_v0  ;;  %v4390_v21 = vpack.c.bf16 %v3270_v46, %v3268_v51 }
 0x32b   :  { %4351 = vmatprep.subr.bf16.mxu1 %v4350_v45  ;;  %v3267_v45 = vld [vmem:[#allocation10 + $0x1c0] sm:$0xff] }
 0x32c   :  { %v4392_v42 = vpack.c.bf16 %v3269_v16, %v3267_v45  ;;  %v3220_v16 = vld [vmem:[#allocation10 + $0x60] sm:$0xff] }
 0x32d   :  { %2881 = vmatmul.mubr.f32.gmra.mrb[46].mxu1 %v5721_v56 }
 0x32e   :  { %4353 = vmatpush1.bf16.msra.mxu1 %v4352_v44  ;;  %2886 = vmatprep.mubr.f32.mxu1 %v4911_v0  ;;  %v4394_v44 = vpack.c.bf16 %v3274_v2, %v3272_v36  ;;  %v3225_v2 = vld [vmem:[#allocation10 + $0x88] sm:$0xff] }
 0x32f   :  { %4355 = vmatprep.subr.bf16.mxu1 %v4354_v8  ;;  %v3271_v8 = vld [vmem:[#allocation10 + $0x1e0] sm:$0xff] }
 0x330   :  { %v4396_v9 = vpack.c.bf16 %v3273_v17, %v3271_v8 }
 0x331   :  { %2887 = vmatmul.mubr.f32.gmra.mrb[48].mxu1 %v5742_v24 }
 0x332   :  { %4357 = vmatpush1.bf16.msra.mxu1 %v4356_v10  ;;  %2892 = vmatprep.mubr.f32.mxu1 %v4911_v0  ;;  %v4398_v10 = vpack.c.bf16 %v3211_v54, %v3209_v28  ;;  %v3224_v54 = vld [vmem:[#allocation10 + $0x80] sm:$0xff] }
 0x333   :  { %4359 = vmatprep.subr.bf16.mxu1 %v4358_v26 }
 0x335   :  { %2893 = vmatmul.mubr.f32.gmra.mrb[50].mxu1 %v5763_v3 }
 0x336   :  { %4361 = vmatpush1.bf16.msra.mxu1 %v4360_v55  ;;  %2898 = vmatprep.mubr.f32.mxu1 %v4911_v0 }
 0x337   :  { %4363 = vmatprep.subr.bf16.mxu1 %v4362_v5 }
 0x339   :  { %2899 = vmatmul.mubr.f32.gmra.mrb[52].mxu1 %v2161_v63 }
 0x33a   :  { %4365 = vmatpush1.bf16.msra.mxu1 %v4364_v12  ;;  %3059 = vmatprep.mubr.f32.mxu1 %v4911_v0 }
 0x33b   :  { %4367 = vmatprep.subr.bf16.mxu1 %v4366_v20 }
 0x33d   :  { %3060 = vmatmul.mubr.f32.vlgmr.msra.gmra.mrb[38].mxu1 %v5700_v43  ;;  %v2162_v43 = vmax.f32 %v2150_v23, 0.0  ;;  %v4386_v23 = vpack.c.bf16 %v3266_v15, %v3264_v11  ;;  %v3218_v11 = vld [vmem:[#allocation10 + $0x50] sm:$0xff] }
 0x33e   :  { %3065 = vmatprep.mubr.f32.mxu1 %v4911_v0  ;;  %4369 = vmatpush1.bf16.msra.mxu1 %v4368_v6 }
 0x33f   :  { %4371 = vmatprep.subr.bf16.mxu1 %v4370_v33  ;;  %v3208_v33 = vld [vmem:[#allocation10] sm:$0xff] }
 0x340   :  { %v4400_v48 = vpack.c.bf16 %v3210_v25, %v3208_v33  ;;  %v3236_v25 = vld [vmem:[#allocation10 + $0xe0] sm:$0xff] }
 0x341   :  { %3066 = vmatmul.mubr.f32.gmra.mrb[40].mxu1 %v5707_v60  ;;  %v3256_v60 = vld [vmem:[#allocation10 + $0x168] sm:$0xff] }
 0x342   :  { %3071 = vmatprep.mubr.f32.mxu1 %v4911_v0  ;;  %4373 = vmatpush1.bf16.msra.mxu1 %v4372_v53 }
 0x343   :  { %4375 = vmatprep.subr.bf16.mxu1 %v4374_v14 }
 0x345   :  { %3072 = vmatmul.mubr.f32.gmra.mrb[42].mxu1 %v5714_v35  ;;  %v3258_v35 = vld [vmem:[#allocation10 + $0x178] sm:$0xff] }
 0x346   :  { %3077 = vmatprep.mubr.f32.mxu1 %v4911_v0  ;;  %4377 = vmatpush1.bf16.msra.mxu1 %v4376_v40 }
 0x349   :  { %3078 = vmatmul.mubr.f32.gmra.mrb[44].mxu1 %v5721_v56  ;;  %v4378_v56 = vpack.c.bf16 %v3258_v35, %v3256_v60  ;;  %v4402_v60 = vpack.c.bf16 %v3215_v39, %v3213_v18  ;;  %v3212_v35 = vld [vmem:[#allocation10 + $0x20] sm:$0xff]  ;;  %v3421_v18 = vld [vmem:[#allocation10 + $0x208] sm:$0xff]  ;;  %v3423_v39 = vld [vmem:[#allocation10 + $0x218] sm:$0xff] }
 0x34a   :  { %3083 = vmatprep.mubr.f32.mxu1 %v4911_v0 }
 0x34b   :  { %4379 = vmatprep.subr.bf16.mxu1 %v4378_v56  ;;  %v3214_v56 = vld [vmem:[#allocation10 + $0x30] sm:$0xff] }
 0x34d   :  { %3084 = vmatmul.mubr.f32.gmra.mrb[46].mxu1 %v5742_v24  ;;  %v3255_v24 = vld [vmem:[#allocation10 + $0x160] sm:$0xff] }
 0x34e   :  { %3089 = vmatprep.mubr.f32.mxu1 %v4911_v0  ;;  %v4380_v1 = vpack.c.bf16 %v3257_v7, %v3255_v24  ;;  %v3217_v7 = vld [vmem:[#allocation10 + $0x48] sm:$0xff] }
 0x350   :  { %4381 = vmatpush1.bf16.msra.mxu1 %v4380_v1  ;;  %v3219_v1 = vld [vmem:[#allocation10 + $0x58] sm:$0xff] }
 0x351   :  { %3090 = vmatmul.mubr.f32.gmra.mrb[48].mxu1 %v5763_v3  ;;  %v3260_v3 = vld [vmem:[#allocation10 + $0x188] sm:$0xff]  ;;  %v4406_v49 = vpack.c.bf16 %v3219_v1, %v3217_v7  ;;  %v3424_v7 = vld [vmem:[#allocation10 + $0x220] sm:$0xff]  ;;  %v3426_v1 = vld [vmem:[#allocation10 + $0x230] sm:$0xff] }
 0x352   :  { %3095 = vmatprep.mubr.f32.mxu1 %v4911_v0  ;;  %v4382_v58 = vpack.c.bf16 %v3262_v30, %v3260_v3  ;;  %v4404_v30 = vpack.c.bf16 %v3214_v56, %v3212_v35 }
 0x354   :  { %4383 = vmatprep.subr.bf16.mxu1 %v4382_v58 }
 0x355   :  { %3096 = vmatmul.mubr.f32.gmra.mrb[50].mxu1 %v2161_v63 }
 0x356   :  { %3101 = vmatprep.mubr.f32.mxu1 %v4911_v0  ;;  %4385 = vmatpush1.bf16.msra.mxu1 %v4384_v34  ;;  %v3216_v34 = vld [vmem:[#allocation10 + $0x40] sm:$0xff] }
 0x357   :  { %4387 = vmatprep.subr.bf16.mxu1 %v4386_v23  ;;  %v3221_v23 = vld [vmem:[#allocation10 + $0x68] sm:$0xff]  ;;  %v4408_v51 = vpack.c.bf16 %v3218_v11, %v3216_v34  ;;  %v3428_v34 = vld [vmem:[#allocation10 + $0x240] sm:$0xff]  ;;  %v3430_v11 = vld [vmem:[#allocation10 + $0x250] sm:$0xff] }
 0x358   :  { %v4410_v45 = vpack.c.bf16 %v3223_v37, %v3221_v23  ;;  %v3435_v23 = vld [vmem:[#allocation10 + $0x278] sm:$0xff]  ;;  %v3434_v37 = vld [vmem:[#allocation10 + $0x270] sm:$0xff] }
 0x359   :  { %3102 = vmatmul.mubr.f32.gmra.mrb[52].mxu1 %v2162_v43 }
 0x35a   :  { %3339 = vmatprep.mubr.f32.mxu1 %v4911_v0  ;;  %4389 = vmatpush1.bf16.msra.mxu1 %v4388_v4 }
 0x35b   :  { %4391 = vmatprep.subr.bf16.mxu1 %v4390_v21 }
 0x35e   :  { %4393 = vmatpush1.bf16.msra.mxu1 %v4392_v42  ;;  %v3222_v42 = vld [vmem:[#allocation10 + $0x70] sm:$0xff] }
 0x35f   :  { %4395 = vmatprep.subr.bf16.mxu1 %v4394_v44  ;;  %v3227_v44 = vld [vmem:[#allocation10 + $0x98] sm:$0xff]  ;;  %v4412_v17 = vpack.c.bf16 %v3222_v42, %v3220_v16  ;;  %v3436_v16 = vld [vmem:[#allocation10 + $0x280] sm:$0xff]  ;;  %v3438_v42 = vld [vmem:[#allocation10 + $0x290] sm:$0xff] }
 0x360   :  { %v4414_v28 = vpack.c.bf16 %v3227_v44, %v3225_v2  ;;  %v3443_v2 = vld [vmem:[#allocation10 + $0x2b8] sm:$0xff]  ;;  %v4448_v44 = vpack.c.bf16 %v3438_v42, %v3436_v16  ;;  %v3552_v42 = vld [vmem:[#allocation10 + $0x3c0] sm:$0xff] }
 0x362   :  { %4397 = vmatpush1.bf16.msra.mxu1 %v4396_v9 }
 0x363   :  { %4399 = vmatprep.subr.bf16.mxu1 %v4398_v10  ;;  %v3226_v10 = vld [vmem:[#allocation10 + $0x90] sm:$0xff] }
 0x410   :  { %v3061_v26 = vpop.f32.mrb[38].mxu1 }
 0x411   :  { %v3063_v47 = vpop.f32.mrb[39].mxu1 }
 0x412   :  { %v3172_v50 = vmax.f32 %v3061_v26, %v3063_v47  ;;  %v3229_v26 = vld [vmem:[#allocation10 + $0xa8] sm:$0xff]  ;;  %v3231_v47 = vld [vmem:[#allocation10 + $0xb8] sm:$0xff] }
 0x414   :  { %v3067_v59 = vpop.f32.mrb[40].mxu1  ;;  %v5805_v52 = vadd.f32 %v3956_v13, %v3172_v50 }
 0x415   :  { %v3069_v55 = vpop.f32.mrb[41].mxu1 }
 0x416   :  { %v3173_v5 = vmax.f32 %v3067_v59, %v3069_v55  ;;  %v4416_v59 = vpack.c.bf16 %v3226_v10, %v3224_v54  ;;  %v4418_v55 = vpack.c.bf16 %v3231_v47, %v3229_v26  ;;  %v3445_v54 = vld [vmem:[#allocation10 + $0x2c8] sm:$0xff]  ;;  %v3447_v10 = vld [vmem:[#allocation10 + $0x2d8] sm:$0xff] }
 0x417   :  { %v4454_v47 = vpack.c.bf16 %v3447_v10, %v3445_v54  ;;  %v3558_v54 = vld [vmem:[#allocation10 + $0x3f0] sm:$0xff]  ;;  %v3665_v10 = vld [vmem:[%s5999_s7 + $0x80] sm:$0xff] }
 0x418   :  { %v5807_v19 = vadd.f32 %v3956_v13, %v3173_v5  ;;  %v3073_v62 = vpop.f32.mrb[42].mxu1  ;;  %v3228_v5 = vld [vmem:[#allocation10 + $0xa0] sm:$0xff] }
 0x419   :  { %v3075_v27 = vpop.f32.mrb[43].mxu1 }
 0x41a   :  { %v3195_v12 = vmax.f32 %v5805_v52, %v5807_v19  ;;  %v3174_v63 = vmax.f32 %v3073_v62, %v3075_v27  ;;  %v3230_v62 = vld [vmem:[#allocation10 + $0xb0] sm:$0xff]  ;;  %v3233_v27 = vld [vmem:[#allocation10 + $0xc8] sm:$0xff]  ;;  %v4440_v52 = vpack.c.bf16 %v3430_v11, %v3428_v34  ;;  %v3544_v11 = vld [vmem:[#allocation10 + $0x380] sm:$0xff] }
 0x41c   :  { %v3079_v20 = vpop.f32.mrb[44].mxu1  ;;  %v3189_v29 = vadd.f32 %v3956_v13, %v3174_v63  ;;  %v3235_v63 = vld [vmem:[#allocation10 + $0xd8] sm:$0xff]  ;;  %v3199_v56 = vmax.f32 %v3195_v12, 0.0  ;;  %v3432_v12 = vld [vmem:[#allocation10 + $0x260] sm:$0xff] }
 0x41d   :  { %v3081_v31 = vpop.f32.mrb[45].mxu1 }
 0x41e   :  { %v3175_v38 = vmax.f32 %v3079_v20, %v3081_v31  ;;  %v4422_v20 = vpack.c.bf16 %v3235_v63, %v3233_v27  ;;  %v3232_v31 = vld [vmem:[#allocation10 + $0xc0] sm:$0xff] }
 0x420   :  { %v3190_v41 = vadd.f32 %v3956_v13, %v3175_v38  ;;  %v3085_v6 = vpop.f32.mrb[46].mxu1  ;;  %v3234_v38 = vld [vmem:[#allocation10 + $0xd0] sm:$0xff] }
 0x421   :  { %v3087_v22 = vpop.f32.mrb[47].mxu1 }
 0x422   :  { %v3196_v53 = vmax.f32 %v3189_v29, %v3190_v41  ;;  %v3176_v14 = vmax.f32 %v3085_v6, %v3087_v22  ;;  %v3237_v29 = vld [vmem:[#allocation10 + $0xe8] sm:$0xff]  ;;  %v3239_v41 = vld [vmem:[#allocation10 + $0xf8] sm:$0xff]  ;;  %v4424_v6 = vpack.c.bf16 %v3234_v38, %v3232_v31  ;;  %v3238_v22 = vld [vmem:[#allocation10 + $0xf0] sm:$0xff] }
 0x423   :  { %v4426_v33 = vpack.c.bf16 %v3239_v41, %v3237_v29  ;;  %v3529_v31 = vld [vmem:[#allocation10 + $0x308] sm:$0xff]  ;;  %v3531_v38 = vld [vmem:[#allocation10 + $0x318] sm:$0xff] }
 0x424   :  { %v3200_v57 = vmax.f32 %v3196_v53, 0.0  ;;  %v5811_v40 = vadd.f32 %v3956_v13, %v3176_v14  ;;  %v3091_v43 = vpop.f32.mrb[48].mxu1  ;;  %v4428_v53 = vpack.c.bf16 %v3238_v22, %v3236_v25  ;;  %v4430_v14 = vpack.c.bf16 %v3423_v39, %v3421_v18  ;;  %v3533_v25 = vld [vmem:[#allocation10 + $0x328] sm:$0xff]  ;;  %v3535_v22 = vld [vmem:[#allocation10 + $0x338] sm:$0xff] }
 0x425   :  { %v3093_v24 = vpop.f32.mrb[49].mxu1  ;;  %v4462_v41 = vpack.c.bf16 %v3531_v38, %v3529_v31  ;;  %v3651_v31 = vld [vmem:[%s5999_s7 + $0x10] sm:$0xff]  ;;  %v3652_v38 = vld [vmem:[%s5999_s7 + $0x18] sm:$0xff] }
 0x426   :  { %v3177_v3 = vmax.f32 %v3091_v43, %v3093_v24  ;;  %3340 = vmatmul.mubr.f32.vlgmr.msra.gmra.mrb[54].mxu1 %v3200_v57  ;;  %v3422_v57 = vld [vmem:[#allocation10 + $0x210] sm:$0xff]  ;;  %v3425_v43 = vld [vmem:[#allocation10 + $0x228] sm:$0xff] }
 0x427   :  { %4401 = vmatpush1.bf16.msra.mxu1 %v4400_v48  ;;  %3410 = vmatprep.mubr.f32.mxu1 %v4911_v0  ;;  %v3420_v48 = vld [vmem:[#allocation10 + $0x200] sm:$0xff] }
 0x428   :  { %v5814_v58 = vadd.f32 %v3956_v13, %v3177_v3  ;;  %v3097_v61 = vpop.f32.mrb[50].mxu1  ;;  %4403 = vmatprep.subr.bf16.mxu1 %v4402_v60  ;;  %v3427_v60 = vld [vmem:[#allocation10 + $0x238] sm:$0xff]  ;;  %v4432_v35 = vpack.c.bf16 %v3422_v57, %v3420_v48  ;;  %v3429_v3 = vld [vmem:[#allocation10 + $0x248] sm:$0xff]  ;;  %v3534_v48 = vld [vmem:[#allocation10 + $0x330] sm:$0xff] }
 0x429   :  { %v3099_v15 = vpop.f32.mrb[51].mxu1  ;;  %v4434_v24 = vpack.c.bf16 %v3427_v60, %v3425_v43  ;;  %v3537_v57 = vld [vmem:[#allocation10 + $0x348] sm:$0xff]  ;;  %v3539_v43 = vld [vmem:[#allocation10 + $0x358] sm:$0xff] }
 0x42a   :  { %v3197_v32 = vmax.f32 %v5811_v40, %v5814_v58  ;;  %v3178_v4 = vmax.f32 %v3097_v61, %v3099_v15  ;;  %v4436_v61 = vpack.c.bf16 %v3426_v1, %v3424_v7  ;;  %v3433_v15 = vld [vmem:[#allocation10 + $0x268] sm:$0xff]  ;;  %v3543_v1 = vld [vmem:[#allocation10 + $0x378] sm:$0xff] }
 0x42b   :  { %4405 = vmatpush1.bf16.msra.mxu1 %v4404_v30  ;;  %v3431_v30 = vld [vmem:[#allocation10 + $0x258] sm:$0xff]  ;;  %v4442_v19 = vpack.c.bf16 %v3435_v23, %v3433_v15  ;;  %v3541_v7 = vld [vmem:[#allocation10 + $0x368] sm:$0xff]  ;;  %v3546_v15 = vld [vmem:[#allocation10 + $0x390] sm:$0xff] }
 0x42c   :  { %v5818_v46 = vadd.f32 %v3956_v13, %v3178_v4  ;;  %v3103_v21 = vpop.f32.mrb[52].mxu1  ;;  %4407 = vmatprep.subr.bf16.mxu1 %v4406_v49  ;;  %v4438_v49 = vpack.c.bf16 %v3431_v30, %v3429_v3  ;;  %v3437_v4 = vld [vmem:[#allocation10 + $0x288] sm:$0xff]  ;;  %v3201_v39 = vmax.f32 %v3197_v32, 0.0  ;;  %v4474_v58 = vpack.c.bf16 %v3543_v1, %v3541_v7  ;;  %v3540_v32 = vld [vmem:[#allocation10 + $0x360] sm:$0xff]  ;;  %v3542_v3 = vld [vmem:[#allocation10 + $0x370] sm:$0xff] }
 0x42d   :  { %v3105_v36 = vpop.f32.mrb[53].mxu1  ;;  %v3545_v30 = vld [vmem:[#allocation10 + $0x388] sm:$0xff] }
 0x42e   :  { %v3179_v8 = vmax.f32 %v3103_v21, %v3105_v36  ;;  %v4444_v21 = vpack.c.bf16 %v3434_v37, %v3432_v12  ;;  %v3441_v36 = vld [vmem:[#allocation10 + $0x2a8] sm:$0xff]  ;;  %v3548_v37 = vld [vmem:[#allocation10 + $0x3a0] sm:$0xff] }
 0x42f   :  { %4409 = vmatpush1.bf16.msra.mxu1 %v4408_v51  ;;  %v3439_v51 = vld [vmem:[#allocation10 + $0x298] sm:$0xff]  ;;  %v3549_v23 = vld [vmem:[#allocation10 + $0x3a8] sm:$0xff] }
 0x430   :  { %v5820_v9 = vadd.f32 %v3956_v13, %v3179_v8  ;;  %4411 = vmatprep.subr.bf16.mxu1 %v4410_v45  ;;  %v4420_v13 = vpack.c.bf16 %v3230_v62, %v3228_v5  ;;  %v4446_v45 = vpack.c.bf16 %v3439_v51, %v3437_v4  ;;  %v4450_v8 = vpack.c.bf16 %v3443_v2, %v3441_v36  ;;  %v3449_v5 = vld [vmem:[#allocation10 + $0x2e8] sm:$0xff]  ;;  %v3451_v62 = vld [vmem:[#allocation10 + $0x2f8] sm:$0xff]  ;;  %v3550_v4 = vld [vmem:[#allocation10 + $0x3b0] sm:$0xff] }
 0x431   :  { %v4458_v63 = vpack.c.bf16 %v3451_v62, %v3449_v5  ;;  %v3553_v51 = vld [vmem:[#allocation10 + $0x3c8] sm:$0xff]  ;;  %v3554_v36 = vld [vmem:[#allocation10 + $0x3d0] sm:$0xff] }
 0x432   :  { %v3198_v50 = vmax.f32 %v5818_v46, %v5820_v9  ;;  %v3557_v2 = vld [vmem:[#allocation10 + $0x3e8] sm:$0xff]  ;;  %v3667_v62 = vld [vmem:[%s5999_s7 + $0x90] sm:$0xff]  ;;  %v4500_v46 = vpack.c.bf16 %v3652_v38, %v3651_v31  ;;  %v3766_v31 = vld [vmem:[%s6001_s9 + $0x38] sm:$0xff] }
 0x433   :  { %4413 = vmatpush1.bf16.msra.mxu1 %v4412_v17  ;;  %v3440_v17 = vld [vmem:[#allocation10 + $0x2a0] sm:$0xff]  ;;  %v3650_v5 = vld [vmem:[%s5999_s7 + $0x8] sm:$0xff] }
 0x434   :  { %4415 = vmatprep.subr.bf16.mxu1 %v4414_v28  ;;  %v3442_v28 = vld [vmem:[#allocation10 + $0x2b0] sm:$0xff] }
 0x435   :  { %v4452_v26 = vpack.c.bf16 %v3442_v28, %v3440_v17  ;;  %v3556_v28 = vld [vmem:[#allocation10 + $0x3e0] sm:$0xff] }
 0x437   :  { %4417 = vmatpush1.bf16.msra.mxu1 %v4416_v59  ;;  %v3444_v59 = vld [vmem:[#allocation10 + $0x2c0] sm:$0xff] }
 0x438   :  { %4419 = vmatprep.subr.bf16.mxu1 %v4418_v55  ;;  %v3446_v55 = vld [vmem:[#allocation10 + $0x2d0] sm:$0xff] }
 0x439   :  { %v4456_v27 = vpack.c.bf16 %v3446_v55, %v3444_v59  ;;  %v3649_v55 = vld [vmem:[%s5999_s7] sm:$0xff] }
 0x43b   :  { %4421 = vmatpush1.bf16.msra.mxu1 %v4420_v13  ;;  %v3448_v13 = vld [vmem:[#allocation10 + $0x2e0] sm:$0xff] }
 0x43c   :  { %4423 = vmatprep.subr.bf16.mxu1 %v4422_v20  ;;  %v3450_v20 = vld [vmem:[#allocation10 + $0x2f0] sm:$0xff] }
 0x43d   :  { %v4460_v29 = vpack.c.bf16 %v3450_v20, %v3448_v13  ;;  %v3202_v13 = vmax.f32 %v3198_v50, 0.0  ;;  %v3653_v50 = vld [vmem:[%s5999_s7 + $0x20] sm:$0xff] }
 0x43f   :  { %4425 = vmatpush1.bf16.msra.mxu1 %v4424_v6  ;;  %v3528_v6 = vld [vmem:[#allocation10 + $0x300] sm:$0xff] }
 0x440   :  { %4427 = vmatprep.subr.bf16.mxu1 %v4426_v33  ;;  %v3530_v33 = vld [vmem:[#allocation10 + $0x310] sm:$0xff] }
 0x441   :  { %v4464_v18 = vpack.c.bf16 %v3530_v33, %v3528_v6  ;;  %v3654_v6 = vld [vmem:[%s5999_s7 + $0x28] sm:$0xff]  ;;  %v3671_v33 = vld [vmem:[%s5999_s7 + $0xb0] sm:$0xff] }
 0x443   :  { %4429 = vmatpush1.bf16.msra.mxu1 %v4428_v53  ;;  %v4466_v53 = vpack.c.bf16 %v3535_v22, %v3533_v25  ;;  %v3672_v25 = vld [vmem:[%s5999_s7 + $0xb8] sm:$0xff]  ;;  %v4504_v22 = vpack.c.bf16 %v3654_v6, %v3653_v50 }
 0x444   :  { %4431 = vmatprep.subr.bf16.mxu1 %v4430_v14  ;;  %v3532_v14 = vld [vmem:[#allocation10 + $0x320] sm:$0xff]  ;;  %v3770_v50 = vld [vmem:[%s6001_s9 + $0x58] sm:$0xff] }
 0x445   :  { %v4468_v60 = vpack.c.bf16 %v3534_v48, %v3532_v14  ;;  %v3673_v14 = vld [vmem:[%s5999_s7 + $0xc0] sm:$0xff]  ;;  %v3674_v48 = vld [vmem:[%s5999_s7 + $0xc8] sm:$0xff] }
 0x446   :  { %3411 = vmatmul.mubr.f32.vlgmr.msra.gmra.mrb[54].mxu1 %v3199_v56  ;;  %v3536_v56 = vld [vmem:[#allocation10 + $0x340] sm:$0xff] }
 0x447   :  { %4433 = vmatpush1.bf16.msra.mxu1 %v4432_v35  ;;  %3516 = vmatprep.mubr.f32.mxu1 %v4911_v0  ;;  %v4470_v35 = vpack.c.bf16 %v3539_v43, %v3537_v57  ;;  %v4510_v43 = vpack.c.bf16 %v3674_v48, %v3673_v14  ;;  %v3957_v48 = vld [vmem:[%s6000_s8] ss:$0 sm:$0xff] }
 0x448   :  { %4435 = vmatprep.subr.bf16.mxu1 %v4434_v24  ;;  %v3538_v24 = vld [vmem:[#allocation10 + $0x350] sm:$0xff] }
 0x449   :  { %v4472_v40 = vpack.c.bf16 %v3538_v24, %v3536_v56  ;;  %v3675_v56 = vld [vmem:[%s5999_s7 + $0xd0] sm:$0xff]  ;;  %v3676_v24 = vld [vmem:[%s5999_s7 + $0xd8] sm:$0xff] }
 0x44a   :  { %v4514_v1 = vpack.c.bf16 %v3676_v24, %v3675_v56  ;;  %v3958_v56 = vld [vmem:[%s6002_s10] ss:$0 sm:$0xff] }
 0x44b   :  { %4437 = vmatpush1.bf16.msra.mxu1 %v4436_v61  ;;  %v3547_v61 = vld [vmem:[#allocation10 + $0x398] sm:$0xff] }
 0x44c   :  { %4439 = vmatprep.subr.bf16.mxu1 %v4438_v49  ;;  %v4476_v49 = vpack.c.bf16 %v3542_v3, %v3540_v32  ;;  %v4478_v34 = vpack.c.bf16 %v3547_v61, %v3545_v30  ;;  %v3677_v32 = vld [vmem:[%s5999_s7 + $0xe0] sm:$0xff]  ;;  %v3678_v3 = vld [vmem:[%s5999_s7 + $0xe8] sm:$0xff] }
 0x44d   :  { %v4518_v61 = vpack.c.bf16 %v3678_v3, %v3677_v32 }
 0x44f   :  { %4441 = vmatpush1.bf16.msra.mxu1 %v4440_v52  ;;  %v3551_v52 = vld [vmem:[#allocation10 + $0x3b8] sm:$0xff] }
 0x450   :  { %4443 = vmatprep.subr.bf16.mxu1 %v4442_v19  ;;  %v4480_v19 = vpack.c.bf16 %v3546_v15, %v3544_v11  ;;  %v4482_v12 = vpack.c.bf16 %v3551_v52, %v3549_v23  ;;  %v3679_v15 = vld [vmem:[%s5999_s7 + $0xf0] sm:$0xff]  ;;  %v3680_v23 = vld [vmem:[%s5999_s7 + $0xf8] sm:$0xff] }
 0x451   :  { %v4522_v52 = vpack.c.bf16 %v3680_v23, %v3679_v15 }
 0x453   :  { %4445 = vmatpush1.bf16.msra.mxu1 %v4444_v21  ;;  %v3555_v21 = vld [vmem:[#allocation10 + $0x3d8] sm:$0xff] }
 0x454   :  { %4447 = vmatprep.subr.bf16.mxu1 %v4446_v45  ;;  %v4484_v45 = vpack.c.bf16 %v3550_v4, %v3548_v37  ;;  %v4486_v16 = vpack.c.bf16 %v3555_v21, %v3553_v51  ;;  %v4912_v4 = vmov 0.0|0.0   ;;  %v3635_v51 = vlaneseq }
 0x456   :  { %v3636_v21 = vshrl.u32 %v3635_v51, 7 }
 0x457   :  { %4449 = vmatpush1.bf16.msra.mxu1 %v4448_v44  ;;  %v3559_v44 = vld [vmem:[#allocation10 + $0x3f8] sm:$0xff] }
 0x458   :  { %4451 = vmatprep.subr.bf16.mxu1 %v4450_v8  ;;  %v4488_v8 = vpack.c.bf16 %v3554_v36, %v3552_v42  ;;  %v4490_v17 = vpack.c.bf16 %v3559_v44, %v3557_v2  ;;  %v3641_v42 = vsub.s32 1, %v3636_v21 }
 0x45b   :  { %4453 = vmatpush1.bf16.msra.mxu1 %v4452_v26  ;;  %v3666_v26 = vld [vmem:[%s5999_s7 + $0x88] sm:$0xff] }
 0x45c   :  { %4455 = vmatprep.subr.bf16.mxu1 %v4454_v47  ;;  %v4492_v47 = vpack.c.bf16 %v3558_v54, %v3556_v28  ;;  %v4494_v59 = vpack.c.bf16 %v3666_v26, %v3665_v10  ;;  %v3759_v28 = vld [vmem:[%s6001_s9] sm:$0xff]  ;;  %v3760_v54 = vld [vmem:[%s6001_s9 + $0x8] sm:$0xff] }
 0x45f   :  { %4457 = vmatpush1.bf16.msra.mxu1 %v4456_v27  ;;  %v3668_v27 = vld [vmem:[%s5999_s7 + $0x98] sm:$0xff] }
 0x460   :  { %4459 = vmatprep.subr.bf16.mxu1 %v4458_v63  ;;  %v4496_v63 = vpack.c.bf16 %v3650_v5, %v3649_v55  ;;  %v4498_v20 = vpack.c.bf16 %v3668_v27, %v3667_v62  ;;  %v3761_v55 = vld [vmem:[%s6001_s9 + $0x10] sm:$0xff]  ;;  %v3762_v5 = vld [vmem:[%s6001_s9 + $0x18] sm:$0xff]  ;;  %v3763_v27 = vld [vmem:[%s6001_s9 + $0x20] sm:$0xff] }
 0x461   :  { %v4530_v62 = vpack.c.bf16 %v3762_v5, %v3761_v55 }
 0x463   :  { %4461 = vmatpush1.bf16.msra.mxu1 %v4460_v29  ;;  %v3669_v29 = vld [vmem:[%s5999_s7 + $0xa0] sm:$0xff] }
 0x464   :  { %4463 = vmatprep.subr.bf16.mxu1 %v4462_v41  ;;  %v3670_v41 = vld [vmem:[%s5999_s7 + $0xa8] sm:$0xff] }
 0x465   :  { %v4502_v9 = vpack.c.bf16 %v3670_v41, %v3669_v29  ;;  %v3767_v29 = vld [vmem:[%s6001_s9 + $0x40] sm:$0xff]  ;;  %v3768_v41 = vld [vmem:[%s6001_s9 + $0x48] sm:$0xff] }
 0x466   :  { %3517 = vmatmul.mubr.f32.vlgmr.msra.gmra.mrb[54].mxu1 %v3201_v39  ;;  %v3655_v39 = vld [vmem:[%s5999_s7 + $0x30] sm:$0xff] }
 0x467   :  { %4465 = vmatpush1.bf16.msra.mxu1 %v4464_v18  ;;  %3624 = vmatprep.mubr.f32.mxu1 %v4911_v0  ;;  %v4506_v18 = vpack.c.bf16 %v3672_v25, %v3671_v33  ;;  %v3771_v33 = vld [vmem:[%s6001_s9 + $0x60] sm:$0xff]  ;;  %v3772_v25 = vld [vmem:[%s6001_s9 + $0x68] sm:$0xff] }
 0x468   :  { %4467 = vmatprep.subr.bf16.mxu1 %v4466_v53  ;;  %v3656_v53 = vld [vmem:[%s5999_s7 + $0x38] sm:$0xff] }
 0x469   :  { %v4508_v57 = vpack.c.bf16 %v3656_v53, %v3655_v39  ;;  %v3774_v39 = vld [vmem:[%s6001_s9 + $0x78] sm:$0xff] }
 0x46b   :  { %4469 = vmatpush1.bf16.msra.mxu1 %v4468_v60  ;;  %v3657_v60 = vld [vmem:[%s5999_s7 + $0x40] sm:$0xff] }
 0x46c   :  { %4471 = vmatprep.subr.bf16.mxu1 %v4470_v35  ;;  %v3658_v35 = vld [vmem:[%s5999_s7 + $0x48] sm:$0xff] }
 0x46d   :  { %v4512_v7 = vpack.c.bf16 %v3658_v35, %v3657_v60 }
 0x46f   :  { %4473 = vmatpush1.bf16.msra.mxu1 %v4472_v40  ;;  %v3659_v40 = vld [vmem:[%s5999_s7 + $0x50] sm:$0xff] }
 0x470   :  { %4475 = vmatprep.subr.bf16.mxu1 %v4474_v58  ;;  %v3660_v58 = vld [vmem:[%s5999_s7 + $0x58] sm:$0xff] }
 0x471   :  { %v4516_v30 = vpack.c.bf16 %v3660_v58, %v3659_v40 }
 0x473   :  { %4477 = vmatpush1.bf16.msra.mxu1 %v4476_v49  ;;  %v3661_v49 = vld [vmem:[%s5999_s7 + $0x60] sm:$0xff] }
 0x474   :  { %4479 = vmatprep.subr.bf16.mxu1 %v4478_v34  ;;  %v3662_v34 = vld [vmem:[%s5999_s7 + $0x68] sm:$0xff] }
 0x475   :  { %v4520_v11 = vpack.c.bf16 %v3662_v34, %v3661_v49 }
 0x477   :  { %4481 = vmatpush1.bf16.msra.mxu1 %v4480_v19  ;;  %v3663_v19 = vld [vmem:[%s5999_s7 + $0x70] sm:$0xff] }
 0x478   :  { %4483 = vmatprep.subr.bf16.mxu1 %v4482_v12  ;;  %v3664_v12 = vld [vmem:[%s5999_s7 + $0x78] sm:$0xff] }
 0x479   :  { %v4524_v37 = vpack.c.bf16 %v3664_v12, %v3663_v19 }
 0x47b   :  { %4485 = vmatpush1.bf16.msra.mxu1 %v4484_v45  ;;  %v3637_v45 = vsub.s32 0, %v3636_v21 }
 0x47c   :  { %4487 = vmatprep.subr.bf16.mxu1 %v4486_v16  ;;  %v3633_v16 = vld [vmem:[%s5998_s6] sm:$0x3] }
 0x47d   :  { %v3638_v36 = vrot.slane %v3633_v16, %v3637_v45  ;;  %v3642_v2 = vrot.slane %v3633_v16, %v3641_v42 }
 0x47f   :  { %4489 = vmatpush1.bf16.msra.mxu1 %v4488_v8 }
 0x480   :  { %4491 = vmatprep.subr.bf16.mxu1 %v4490_v17 }
 0x483   :  { %4493 = vmatpush1.bf16.msra.mxu1 %v4492_v47  ;;  %v4527_v47 = vpack.c.bf16 %v3760_v54, %v3759_v28 }
 0x484   :  { %4495 = vmatprep.subr.bf16.mxu1 %v4494_v59 }
 0x486   :  { %3625 = vmatmul.mubr.f32.vlgmr.msra.gmra.mrb[54].mxu1 %v3202_v13 }
 0x487   :  { %4497 = vmatpush3.bf16.msra.mxu1 %v4496_v63  ;;  %v3764_v63 = vld [vmem:[%s6001_s9 + $0x28] sm:$0xff] }
 0x488   :  { %4499 = vmatprep.subr.bf16.mxu1 %v4498_v20  ;;  %v4533_v13 = vpack.c.bf16 %v3764_v63, %v3763_v27  ;;  %v3765_v20 = vld [vmem:[%s6001_s9 + $0x30] sm:$0xff] }
 0x489   :  { %v4536_v38 = vpack.c.bf16 %v3766_v31, %v3765_v20 }
 0x48b   :  { %4501 = vmatpush3.bf16.msra.mxu1 %v4500_v46  ;;  %v4539_v46 = vpack.c.bf16 %v3768_v41, %v3767_v29 }
 0x48c   :  { %4503 = vmatprep.subr.bf16.mxu1 %v4502_v9  ;;  %v3769_v9 = vld [vmem:[%s6001_s9 + $0x50] sm:$0xff] }
 0x48d   :  { %v4542_v6 = vpack.c.bf16 %v3770_v50, %v3769_v9 }
 0x48f   :  { %4505 = vmatpush3.bf16.msra.mxu1 %v4504_v22  ;;  %v4545_v22 = vpack.c.bf16 %v3772_v25, %v3771_v33 }
 0x490   :  { %4507 = vmatprep.subr.bf16.mxu1 %v4506_v18  ;;  %v3773_v18 = vld [vmem:[%s6001_s9 + $0x70] sm:$0xff] }
 0x491   :  { %v4548_v53 = vpack.c.bf16 %v3774_v39, %v3773_v18 }
 0x493   :  { %4509 = vmatpush3.bf16.msra.mxu1 %v4508_v57 }
 0x494   :  { %4511 = vmatprep.subr.bf16.mxu1 %v4510_v43 }
 0x497   :  { %4513 = vmatpush3.bf16.msra.mxu1 %v4512_v7 }
 0x498   :  { %4515 = vmatprep.subr.bf16.mxu1 %v4514_v1 }
 0x49b   :  { %4517 = vmatpush3.bf16.msra.mxu1 %v4516_v30 }
 0x49c   :  { %4519 = vmatprep.subr.bf16.mxu1 %v4518_v61 }
 0x49f   :  { %4521 = vmatpush3.bf16.msra.mxu1 %v4520_v11 }
 0x4a0   :  { %4523 = vmatprep.subr.bf16.mxu1 %v4522_v52 }
 0x4a3   :  { %4525 = vmatpush3.bf16.msra.mxu1 %v4524_v37 }
 0x4a4   :  { %4526 = vmatprep.subr.bf16.mxu1 %v4912_v4 }
 0x559   :  { %v3626_v44 = vpop.f32.mrb[54].mxu1 }
 0x55a   :  { %v3645_v8 = vadd.f32 %v3638_v36, %v3626_v44  ;;  %v3628_v17 = vpop.f32.mrb[55].mxu1 }
 0x55b   :  { %v3646_v10 = vadd.f32 %v3642_v2, %v3628_v17 }
 0x55c   :  { %v3647_v59 = vmax.f32 %v3645_v8, 0.0 }
 0x55d   :  { %v3648_v26 = vmax.f32 %v3646_v10, 0.0 }
 0x55f   :  { %3752 = vmatprep.mubr.f32.mxu1 %v3648_v26 }
 0x560   :  { %3753 = vmatmul.mubr.f32.vlgmr.msra.gmra.mrb[56].mxu1 %v3647_v59 }
 0x561   :  { %4528 = vmatpush3.bf16.msra.mxu1 %v4527_v47  ;;  %4043 = vmatprep.mubr.msk.f32.mxu1 %vm4913_vm0, %v4911_v0 }
 0x562   :  { %4529 = vmatprep.subr.bf16.mxu1 %v4912_v4 }
 0x565   :  { %4531 = vmatpush3.bf16.msra.mxu1 %v4530_v62 }
 0x566   :  { %4532 = vmatprep.subr.bf16.mxu1 %v4912_v4 }
 0x569   :  { %4534 = vmatpush3.bf16.msra.mxu1 %v4533_v13 }
 0x56a   :  { %4535 = vmatprep.subr.bf16.mxu1 %v4912_v4 }
 0x56d   :  { %4537 = vmatpush3.bf16.msra.mxu1 %v4536_v38 }
 0x56e   :  { %4538 = vmatprep.subr.bf16.mxu1 %v4912_v4 }
 0x571   :  { %4540 = vmatpush3.bf16.msra.mxu1 %v4539_v46 }
 0x572   :  { %4541 = vmatprep.subr.bf16.mxu1 %v4912_v4 }
 0x575   :  { %4543 = vmatpush3.bf16.msra.mxu1 %v4542_v6 }
 0x576   :  { %4544 = vmatprep.subr.bf16.mxu1 %v4912_v4 }
 0x579   :  { %4546 = vmatpush3.bf16.msra.mxu1 %v4545_v22 }
 0x57a   :  { %4547 = vmatprep.subr.bf16.mxu1 %v4912_v4 }
 0x57d   :  { %4549 = vmatpush3.bf16.msra.mxu1 %v4548_v53 }
 0x633   :  { %v3991_v14 = vpop.f32.mrb[56].mxu1 }
 0x634   :  { %v3992_v57 = vpop.f32.mrb[57].mxu1 }
 0x635   :  { %v3993_v43 = vadd.f32 %v3992_v57, %v3991_v14 }
 0x637   :  { %v3755_v60 = vadd.f32 %v3993_v43, %v3957_v48 }
 0x639   :  { %v3758_v35 = vmax.f32 %v3755_v60, 0.0 }
 0x63b   :  { %4044 = vmatmul.mubr.f32.vlgmr.msra.gmra.mrb[58].mxu1 %v3758_v35 }
 0x70e   :  { %v3848_v24 = vpop.f32.mrb[58].mxu1 }
 0x70f   :  { %v3849_v7 = vadd.f32 %v3958_v56, %v3848_v24  ;;  %v4045_v1 = vpop.f32.mrb[59].mxu1 }
 0x711   :  { %3852 = vst [vmem:[%s6003_s11] sm:$0xff] %v3849_v7 }
 0x712   :  { %3857 = vsyncpa [#allocation7], 1 }
 0x713   :  { %3858 = vsyncpa [#allocation9], 1 }

</bundles_post_ra>
